<compile_context>
chip_gen: v5e
topology: v5e:2x2
jax: 0.10.0
libtpu: 0.0.40
codegen_flags: <defaults>
</compile_context>

<pallas_src>
import math
import functools

import jax
import jax.numpy as jnp
from jax.experimental import pallas as pl
from jax.experimental.pallas import tpu as pltpu


# ------------------------------ per-generation config ------------------------------

def _hw_config():
    vmem = None
    try:
        vmem = getattr(pltpu.get_tpu_info(), "vmem_capacity_bytes", None)
    except Exception:
        vmem = None
    if vmem is not None and vmem >= 100 * 1024 * 1024:
        # v5e / v6e: 128 MiB physical VMEM -> larger tiles and scoped budget.
        return {"vmem_limit": 64 * 1024 * 1024,
                "mn_tiles": (512, 256, 128), "k_tiles": (512, 256)}
    # v7x (64 MiB physical) or unknown generation: conservative.
    return {"vmem_limit": 32 * 1024 * 1024,
            "mn_tiles": (256, 128), "k_tiles": (512, 256)}


_HW = _hw_config()


def _cparams(dims):
    return pltpu.CompilerParams(dimension_semantics=dims,
                                vmem_limit_bytes=_HW["vmem_limit"])


def _pick_tile(dim, candidates):
    # Largest candidate that evenly divides `dim`; otherwise the full dim
    # (full dims always satisfy the (8,128) BlockSpec rule).
    for c in candidates:
        if dim >= c and dim % c == 0:
            return c
    return dim


# ------------------------------ Pallas kernels ------------------------------

def _make_matmul_kernel(*, n_k, prenorm, has_bias, has_residual, eps):
    """o = [RMSNorm(x)] @ w [+ b] [+ residual]; f32 accumulation, bf16 MXU inputs."""
    def kernel(*refs):
        it = iter(refs)
        x_ref = next(it)
        w_ref = next(it)
        s_ref = next(it) if prenorm else None
        b_ref = next(it) if has_bias else None
        r_ref = next(it) if has_residual else None
        o_ref = next(it)
        acc_ref = next(it, None)   # only present when n_k > 1

        def partial_dot():
            x = x_ref[...]
            if prenorm:
                # Full K resident when prenorm is fused (enforced by the wrapper).
                x32 = x.astype(jnp.float32)
                r = jax.lax.rsqrt(jnp.mean(x32 * x32, axis=-1, keepdims=True) + eps)
                x = (x32 * r * s_ref[...]).astype(jnp.bfloat16)
            else:
                x = x.astype(jnp.bfloat16)
            return jnp.dot(x, w_ref[...], preferred_element_type=jnp.float32)

        def finalize(out):
            if has_bias:
                out = out + b_ref[...]
            if has_residual:
                out = out + r_ref[...]
            o_ref[...] = out.astype(o_ref.dtype)

        if n_k == 1:
            finalize(partial_dot())          # no scratch accumulator needed
        else:
            k = pl.program_id(2)

            @pl.when(k == 0)
            def _():
                acc_ref[...] = jnp.zeros_like(acc_ref)

            acc_ref[...] += partial_dot()

            @pl.when(k == n_k - 1)
            def _():
                finalize(acc_ref[...])

    return kernel


def _make_gated_matmul_kernel(*, n_k):
    """o = silu(x @ w1) * (x @ w2)  (swiGLU gate)."""
    def kernel(*refs):
        if n_k == 1:
            x_ref, w1_ref, w2_ref, o_ref = refs
            acc1_ref = acc2_ref = None
        else:
            x_ref, w1_ref, w2_ref, o_ref, acc1_ref, acc2_ref = refs

        xb = x_ref[...].astype(jnp.bfloat16)
        p1 = jnp.dot(xb, w1_ref[...], preferred_element_type=jnp.float32)
        p2 = jnp.dot(xb, w2_ref[...], preferred_element_type=jnp.float32)

        if n_k == 1:
            o_ref[...] = (p1 * jax.nn.sigmoid(p1) * p2).astype(o_ref.dtype)
        else:
            k = pl.program_id(2)

            @pl.when(k == 0)
            def _():
                acc1_ref[...] = jnp.zeros_like(acc1_ref)
                acc2_ref[...] = jnp.zeros_like(acc2_ref)

            acc1_ref[...] += p1
            acc2_ref[...] += p2

            @pl.when(k == n_k - 1)
            def _():
                g = acc1_ref[...]
                o_ref[...] = (g * jax.nn.sigmoid(g) * acc2_ref[...]).astype(o_ref.dtype)

    return kernel


def _rmsnorm_kernel(x_ref, s_ref, o_ref, *, eps):
    x = x_ref[...].astype(jnp.float32)
    r = jax.lax.rsqrt(jnp.mean(x * x, axis=-1, keepdims=True) + eps)
    o_ref[...] = (x * r * s_ref[...]).astype(o_ref.dtype)


def _rmsnorm_res_kernel(x_ref, s_ref, on_ref, osum_ref, *, eps):
    # Emits both RMSNorm(x) and x + RMSNorm(x) (fuses the residual-stream add).
    x = x_ref[...].astype(jnp.float32)
    r = jax.lax.rsqrt(jnp.mean(x * x, axis=-1, keepdims=True) + eps)
    xn = x * r * s_ref[...]
    on_ref[...] = xn.astype(on_ref.dtype)
    osum_ref[...] = (x + xn).astype(osum_ref.dtype)


def _softmax_last(x):
    m = jnp.max(x, axis=-1, keepdims=True)
    e = jnp.exp(x - m)
    return e * pl.reciprocal(jnp.sum(e, axis=-1, keepdims=True), approx=True)


def _make_diff_attn_kernel(*, n_heads, d_head, scale, causal, q_tile):
    """Differential attention over head-major slabs.

    q_ref  : (1, tq, 2*H*dh)  [h-major: (h, component, d)]
    kv_ref : (1, Sk, 3*H*dh)  [k h-major (2*H*dh) | v h-major (H*dh)]
    o_ref  : (1, tq, H*dh)    lane-dense output (one unmasked store).
    """
    def kernel(lam_ref, q_ref, kv_ref, o_ref):
        qi = pl.program_id(1)
        tq = o_ref.shape[1]
        sk = kv_ref.shape[1]
        kv_off = 2 * n_heads * d_head

        if causal:
            row = jax.lax.broadcasted_iota(jnp.int32, (tq, sk), 0) + qi * q_tile
            col = jax.lax.broadcasted_iota(jnp.int32, (tq, sk), 1)
            neg_inf = jnp.float32(-jnp.inf)

        outs = []
        for h in range(n_heads):
            qo = h * 2 * d_head
            q1 = q_ref[0, :, qo: qo + d_head]
            q2 = q_ref[0, :, qo + d_head: qo + 2 * d_head]
            k1 = kv_ref[0, :, qo: qo + d_head]
            k2 = kv_ref[0, :, qo + d_head: qo + 2 * d_head]
            vh = kv_ref[0, :, kv_off + h * d_head: kv_off + (h + 1) * d_head]

            s1 = jax.lax.dot_general(q1, k1, (((1,), (1,)), ((), ())),
                                     preferred_element_type=jnp.float32) * scale
            s2 = jax.lax.dot_general(q2, k2, (((1,), (1,)), ((), ())),
                                     preferred_element_type=jnp.float32) * scale
            a1 = _softmax_last(s1)
            a2 = _softmax_last(s2)
            diff = a1 - lam_ref[h] * a2        # lambda scalar read from SMEM
            if causal:
                diff = jnp.where(col > row, neg_inf, diff)   # masked_fill(-inf)
            w = _softmax_last(diff)
            outs.append(jnp.dot(w.astype(jnp.bfloat16), vh,
                                preferred_element_type=jnp.float32))

        o_ref[0] = jnp.concatenate(outs, axis=-1).astype(o_ref.dtype)

    return kernel


# ------------------------------ Pallas wrappers ------------------------------

def pallas_matmul(x, w, bias=None, prenorm_scale=None, residual=None,
                  out_dtype=jnp.float32, eps=1e-6):
    M, K = x.shape
    N = w.shape[1]
    prenorm = prenorm_scale is not None
    has_bias = bias is not None
    has_residual = residual is not None

    tm = _pick_tile(M, _HW["mn_tiles"])
    tn = _pick_tile(N, _HW["mn_tiles"])
    tk = K if prenorm else _pick_tile(K, _HW["k_tiles"])   # prenorm needs full K per tile
    n_k = K // tk

    operands = [x, w]
    in_specs = [pl.BlockSpec((tm, tk), lambda i, j, k: (i, k)),
                pl.BlockSpec((tk, tn), lambda i, j, k: (k, j))]
    if prenorm:
        operands.append(prenorm_scale.reshape(1, K).astype(jnp.float32))
        in_specs.append(pl.BlockSpec((1, tk), lambda i, j, k: (0, k)))
    if has_bias:
        operands.append(bias.reshape(1, N).astype(jnp.float32))
        in_specs.append(pl.BlockSpec((1, tn), lambda i, j, k: (0, j)))
    if has_residual:
        operands.append(residual)
        in_specs.append(pl.BlockSpec((tm, tn), lambda i, j, k: (i, j)))

    scratch = [] if n_k == 1 else [pltpu.VMEM((tm, tn), jnp.float32)]
    kernel = _make_matmul_kernel(n_k=n_k, prenorm=prenorm, has_bias=has_bias,
                                 has_residual=has_residual, eps=eps)
    return pl.pallas_call(
        kernel,
        grid=(M // tm, N // tn, n_k),
        in_specs=in_specs,
        out_specs=pl.BlockSpec((tm, tn), lambda i, j, k: (i, j)),
        out_shape=jax.ShapeDtypeStruct((M, N), out_dtype),
        scratch_shapes=scratch,
        compiler_params=_cparams(("parallel", "parallel", "arbitrary")),
    )(*operands)


def pallas_gated_matmul(x, w1, w2, out_dtype=jnp.bfloat16):
    M, K = x.shape
    N = w1.shape[1]
    tm = _pick_tile(M, _HW["mn_tiles"])
    tn = _pick_tile(N, _HW["mn_tiles"])
    tk = _pick_tile(K, _HW["k_tiles"])
    n_k = K // tk
    scratch = [] if n_k == 1 else [pltpu.VMEM((tm, tn), jnp.float32),
                                   pltpu.VMEM((tm, tn), jnp.float32)]
    return pl.pallas_call(
        _make_gated_matmul_kernel(n_k=n_k),
        grid=(M // tm, N // tn, n_k),
        in_specs=[pl.BlockSpec((tm, tk), lambda i, j, k: (i, k)),
                  pl.BlockSpec((tk, tn), lambda i, j, k: (k, j)),
                  pl.BlockSpec((tk, tn), lambda i, j, k: (k, j))],
        out_specs=pl.BlockSpec((tm, tn), lambda i, j, k: (i, j)),
        out_shape=jax.ShapeDtypeStruct((M, N), out_dtype),
        scratch_shapes=scratch,
        compiler_params=_cparams(("parallel", "parallel", "arbitrary")),
    )(x, w1, w2)


def pallas_rmsnorm(x2d, scale, eps=1e-6, with_residual_sum=False):
    # Reproduces RMSNorm's pad/truncate-to-dim behaviour.
    dim = scale.shape[0]
    d_in = x2d.shape[-1]
    if d_in < dim:
        x2d = jnp.pad(x2d, ((0, 0), (0, dim - d_in)))
    elif d_in > dim:
        x2d = x2d[:, :dim]
    M = x2d.shape[0]
    tm = _pick_tile(M, _HW["mn_tiles"])
    in_specs = [pl.BlockSpec((tm, dim), lambda i: (i, 0)),
                pl.BlockSpec((1, dim), lambda i: (0, 0))]
    if with_residual_sum:
        return pl.pallas_call(
            functools.partial(_rmsnorm_res_kernel, eps=eps),
            grid=(M // tm,),
            in_specs=in_specs,
            out_specs=(pl.BlockSpec((tm, dim), lambda i: (i, 0)),
                       pl.BlockSpec((tm, dim), lambda i: (i, 0))),
            out_shape=(jax.ShapeDtypeStruct((M, dim), jnp.float32),
                       jax.ShapeDtypeStruct((M, dim), jnp.float32)),
            compiler_params=_cparams(("parallel",)),
        )(x2d, scale.reshape(1, dim))
    return pl.pallas_call(
        functools.partial(_rmsnorm_kernel, eps=eps),
        grid=(M // tm,),
        in_specs=in_specs,
        out_specs=pl.BlockSpec((tm, dim), lambda i: (i, 0)),
        out_shape=jax.ShapeDtypeStruct((M, dim), jnp.float32),
        compiler_params=_cparams(("parallel",)),
    )(x2d, scale.reshape(1, dim))


def matmul_prenormed(x2d, scale, w, bias=None, residual=None,
                     out_dtype=jnp.float32, eps=1e-6):
    """RMSNorm(scale) fused into x @ w when dims match (always true when
    d_model == n_heads * d_head, as in this model)."""
    if scale is None:
        return pallas_matmul(x2d, w, bias=bias, residual=residual, out_dtype=out_dtype)
    if scale.shape[0] == x2d.shape[1]:
        return pallas_matmul(x2d, w, bias=bias, prenorm_scale=scale, residual=residual,
                             out_dtype=out_dtype, eps=eps)
    # TODO(synk): pad/truncate RMSNorm fallback (never hit with d_model == n_heads*d_head).
    return pallas_matmul(pallas_rmsnorm(x2d, scale, eps), w, bias=bias,
                         residual=residual, out_dtype=out_dtype)


def pallas_diff_attention(q_slab, kv_slab, lam, *, n_heads, d_head, causal):
    B, Sq, _ = q_slab.shape
    Sk = kv_slab.shape[1]
    tq = _pick_tile(Sq, (256, 128))
    scale = 1.0 / math.sqrt(d_head)
    kernel = _make_diff_attn_kernel(n_heads=n_heads, d_head=d_head, scale=scale,
                                    causal=causal, q_tile=tq)
    return pl.pallas_call(
        kernel,
        grid=(B, Sq // tq),
        in_specs=[
            pl.BlockSpec(memory_space=pltpu.MemorySpace.SMEM),            # lambda (H,)
            pl.BlockSpec((1, tq, 2 * n_heads * d_head), lambda b, qi: (b, qi, 0)),
            pl.BlockSpec((1, Sk, 3 * n_heads * d_head), lambda b, qi: (b, 0, 0)),
        ],
        out_specs=pl.BlockSpec((1, tq, n_heads * d_head), lambda b, qi: (b, qi, 0)),
        out_shape=jax.ShapeDtypeStruct((B, Sq, n_heads * d_head), jnp.bfloat16),
        compiler_params=_cparams(("parallel", "parallel")),
    )(lam, q_slab, kv_slab)


# ------------------------------ model (glue in plain JAX) ------------------------------

def diff_attention(x, p, cfg, *, context=None, causal=False, prenorm_scale=None,
                   residual2d=None):
    """DifferentialAttention.forward.  `prenorm_scale` is the RMSNorm applied to x
    immediately before the attention (fused into the Q / K/V projections);
    `residual2d` (if given) is added in the o_proj finalize."""
    H, dh, D = cfg['n_heads'], cfg['d_head'], cfg['d_model']
    B, Sq, _ = x.shape
    x2d = x.reshape(B * Sq, D)

    q2d = matmul_prenormed(x2d, prenorm_scale, p['q_w'], out_dtype=jnp.bfloat16)
    if context is None:               # self-attention: K/V from the same (normed) stream
        Sk = Sq
        kv2d = matmul_prenormed(x2d, prenorm_scale, p['kv_w'], out_dtype=jnp.bfloat16)
    else:                             # cross-attention: K/V from the raw encoder output
        Sk = context.shape[1]
        kv2d = pallas_matmul(context.reshape(B * Sk, D), p['kv_w'],
                             out_dtype=jnp.bfloat16)

    q_slab = q2d.reshape(B, Sq, 2 * H * dh)       # head-major columns, no transposes
    kv_slab = kv2d.reshape(B, Sk, 3 * H * dh)

    attn = pallas_diff_attention(q_slab, kv_slab, p['lambda'],
                                 n_heads=H, d_head=dh, causal=causal)   # (B,Sq,H*dh) bf16
    attn2d = attn.reshape(B * Sq, H * dh)

    # Epilogue: RMSNorm(norm_scale) * (1 - mean(lambda)) folded into o_proj prenorm scale;
    # the residual add is fused into the same finalize.
    eff_scale = p['norm_scale'] * (1.0 - jnp.mean(p['lambda']))
    out2d = matmul_prenormed(attn2d, eff_scale, p['o_w'], residual=residual2d)
    return out2d.reshape(B, Sq, D)


def ffn_forward(x, p, prenorm_scale, residual2d):
    B, S, D = x.shape
    h = x.reshape(B * S, D)
    h = matmul_prenormed(h, prenorm_scale, p['lin1_w'], bias=p['lin1_b'],
                         out_dtype=jnp.bfloat16)
    g = pallas_gated_matmul(h, p['sw1'], p['sw2'])            # silu(h@w1) * (h@w2), bf16
    h = pallas_matmul(g, p['sw3'], out_dtype=jnp.bfloat16)
    h = pallas_matmul(h, p['lin2_w'], bias=p['lin2_b'], residual=residual2d,
                      out_dtype=jnp.float32)                  # + residual fused
    return h.reshape(B, S, D)                                 # dropout = identity (eval)


def encoder_block(x, p, cfg):
    B, S, D = x.shape
    x2d = x.reshape(B * S, D)
    # n1 = prenorm1(x);  base = x + n1  (DifferentialTransformerLayer residual), fused.
    n1, base2d = pallas_rmsnorm(x2d, p['prenorm1'], with_residual_sum=True)
    x = diff_attention(n1.reshape(B, S, D), p['attn_layer']['attn'], cfg,
                       prenorm_scale=p['attn_layer']['norm_scale'],
                       residual2d=base2d)                     # = x + n1 + attn
    x = ffn_forward(x, p['ffn'], p['prenorm2'], residual2d=x.reshape(B * S, D))
    return x


def decoder_block(x, enc_out, p, cfg):
    B, S, D = x.shape
    x2d = x.reshape(B * S, D)
    n1, base2d = pallas_rmsnorm(x2d, p['prenorm1'], with_residual_sum=True)
    x = diff_attention(n1.reshape(B, S, D), p['self_attn']['attn'], cfg,
                       causal=True,
                       prenorm_scale=p['self_attn']['norm_scale'],
                       residual2d=base2d)                     # = x + n1 + self_attn
    # DecoderBlock calls cross_attention.attention directly (no inner norm/residual);
    # prenorm2 is fused into the Q projection, encoder output feeds K/V raw.
    x = diff_attention(x, p['cross_attn']['attn'], cfg, context=enc_out,
                       prenorm_scale=p['prenorm2'],
                       residual2d=x.reshape(B * S, D))
    x = ffn_forward(x, p['ffn'], p['prenorm3'], residual2d=x.reshape(B * S, D))
    return x


def embedding(tokens, tok_emb, pos_emb):
    S = tokens.shape[1]
    return tok_emb[tokens] + pos_emb[:S][None, :, :]


def transformer_forward(params, src_tokens, tgt_tokens, cfg):
    src = embedding(src_tokens, params['tok_emb'], params['pos_emb'])
    tgt = embedding(tgt_tokens, params['tok_emb'], params['pos_emb'])
    enc = src
    for p in params['encoder']:
        enc = encoder_block(enc, p, cfg)
    dec = tgt
    for p in params['decoder']:
        dec = decoder_block(dec, enc, p, cfg)
    B, S, D = dec.shape
    logits = pallas_matmul(dec.reshape(B * S, D), params['out_w'], bias=params['out_b'])
    return logits.reshape(B, S, -1)


# ------------------------------ deterministic init ------------------------------

def _dense(key, fan_in, fan_out, std=0.02):
    # Weights stored directly as bf16 (review: halve weight HBM traffic, no per-tile cast).
    return (std * jax.random.normal(key, (fan_in, fan_out), jnp.float32)).astype(jnp.bfloat16)


def init_attention_params(key, d_model, d_head, n_heads):
    ks = jax.random.split(key, 3)
    return {
        # Column layouts are head-major: q_w -> [h][{q1,q2}][d_head];
        # kv_w -> [k head-major (2*H*dh) | v head-major (H*dh)].
        'q_w': _dense(ks[0], d_model, 2 * d_head * n_heads),
        'kv_w': _dense(ks[1], d_model, 3 * d_head * n_heads),
        'o_w': _dense(ks[2], d_head * n_heads, d_model),
        'norm_scale': jnp.ones((d_model,), jnp.float32),
        'lambda': jnp.full((n_heads,), 0.8, jnp.float32),
    }


def init_layer_params(key, d_model, d_head, n_heads):
    return {'norm_scale': jnp.ones((d_model,), jnp.float32),
            'attn': init_attention_params(key, d_model, d_head, n_heads)}


def init_ffn_params(key, d_model, d_ff):
    d_ff2 = int(d_ff * 8 / 3)
    ks = jax.random.split(key, 5)
    return {
        'lin1_w': _dense(ks[0], d_model, d_ff),
        'lin1_b': jnp.zeros((d_ff,), jnp.float32),
        'sw1': _dense(ks[1], d_ff, d_ff2),
        'sw2': _dense(ks[2], d_ff, d_ff2),
        'sw3': _dense(ks[3], d_ff2, d_ff),
        'lin2_w': _dense(ks[4], d_ff, d_model),
        'lin2_b': jnp.zeros((d_model,), jnp.float32),
    }


def init_encoder_block(key, d_model, d_head, n_heads, d_ff):
    ks = jax.random.split(key, 2)
    return {
        'prenorm1': jnp.ones((d_model,), jnp.float32),
        'attn_layer': init_layer_params(ks[0], d_model, d_head, n_heads),
        'prenorm2': jnp.ones((d_model,), jnp.float32),
        'ffn': init_ffn_params(ks[1], d_model, d_ff),
    }


def init_decoder_block(key, d_model, d_head, n_heads, d_ff):
    ks = jax.random.split(key, 3)
    return {
        'prenorm1': jnp.ones((d_model,), jnp.float32),
        'self_attn': init_layer_params(ks[0], d_model, d_head, n_heads),
        'prenorm2': jnp.ones((d_model,), jnp.float32),
        'cross_attn': init_layer_params(ks[1], d_model, d_head, n_heads),
        'prenorm3': jnp.ones((d_model,), jnp.float32),
        'ffn': init_ffn_params(ks[2], d_model, d_ff),
    }


def init_params(key, vocab, d_model, n_heads, n_layers, d_head, d_ff, max_seq_len):
    ks = jax.random.split(key, 4 + 2 * n_layers)
    return {
        'tok_emb': 0.02 * jax.random.normal(ks[0], (vocab, d_model), jnp.float32),
        'pos_emb': 0.02 * jax.random.normal(ks[1], (max_seq_len, d_model), jnp.float32),
        'out_w': _dense(ks[2], d_model, vocab),
        'out_b': jnp.zeros((vocab,), jnp.float32),
        'encoder': [init_encoder_block(ks[4 + i], d_model, d_head, n_heads, d_ff)
                    for i in range(n_layers)],
        'decoder': [init_decoder_block(ks[4 + n_layers + i], d_model, d_head, n_heads, d_ff)
                    for i in range(n_layers)],
    }


# ------------------------------ main ------------------------------

if __name__ == "__main__":
    # Small config consistent with the module (d_model = n_heads * d_head).
    vocab_size = 64
    d_model = 32
    n_heads = 4
    d_head = 8
    n_layers = 2
    d_ff = 64
    max_seq_len = 16
    batch = 2
    seq = 8

    cfg = dict(n_heads=n_heads, d_head=d_head, d_model=d_model)

    root = jax.random.PRNGKey(0)
    k_params, k_src, k_tgt = jax.random.split(root, 3)
    params = init_params(k_params, vocab_size, d_model, n_heads, n_layers,
                         d_head, d_ff, max_seq_len)
    src_tokens = jax.random.randint(k_src, (batch, seq), 0, vocab_size, dtype=jnp.int32)
    tgt_tokens = jax.random.randint(k_tgt, (batch, seq), 0, vocab_size, dtype=jnp.int32)

    fwd = jax.jit(functools.partial(transformer_forward, cfg=cfg))
    logits = fwd(params, src_tokens, tgt_tokens)
    jax.block_until_ready(logits)

    assert logits.shape == (batch, seq, vocab_size), logits.shape
    assert bool(jnp.all(jnp.isfinite(logits)))
    print("KERNEL_OK")
</pallas_src>

<mosaic_0001>
module attributes {stable_mosaic.version = 11 : i64} {
  func.func @_rmsnorm_res_kernel(%arg0: i32, %arg1: memref<16x32xf32, #tpu.memory_space<vmem>>, %arg2: memref<1x32xf32, #tpu.memory_space<vmem>>, %arg3: memref<16x32xf32, #tpu.memory_space<vmem>>, %arg4: memref<16x32xf32, #tpu.memory_space<vmem>>) attributes {dimension_semantics = [#tpu.dimension_semantics<parallel>], iteration_bounds = array<i64: 1>, scalar_prefetch = 0 : i64, scratch_operands = 0 : i64, tpu.core_type = #tpu.core_type<tc>, window_params = [{transform_indices = @transform_0, window_bounds = array<i64: 16, 32>}, {pipeline_mode = #tpu.pipeline_mode<synchronous>, transform_indices = @transform_1, window_bounds = array<i64: 1, 32>}, {transform_indices = @transform_2, window_bounds = array<i64: 16, 32>}, {transform_indices = @transform_3, window_bounds = array<i64: 16, 32>}]} {
    %c0 = arith.constant 0 : index
    %c0_0 = arith.constant 0 : index
    %0 = vector.load %arg1[%c0, %c0_0] : memref<16x32xf32, #tpu.memory_space<vmem>>, vector<16x32xf32>
    %1 = arith.mulf %0, %0 : vector<16x32xf32>
    %cst = arith.constant dense<0.000000e+00> : vector<16xf32>
    %2 = vector.multi_reduction <add>, %1, %cst [1] : vector<16x32xf32> to vector<16xf32>
    %3 = vector.shape_cast %2 : vector<16xf32> to vector<16x1xf32>
    %cst_1 = arith.constant 3.200000e+01 : f32
    %4 = vector.broadcast %cst_1 : f32 to vector<16x1xf32>
    %5 = arith.divf %3, %4 : vector<16x1xf32>
    %cst_2 = arith.constant 9.99999997E-7 : f32
    %6 = vector.broadcast %cst_2 : f32 to vector<16x1xf32>
    %7 = arith.addf %5, %6 : vector<16x1xf32>
    %8 = math.rsqrt %7 : vector<16x1xf32>
    %9 = vector.broadcast %8 : vector<16x1xf32> to vector<16x32xf32>
    %10 = arith.mulf %0, %9 : vector<16x32xf32>
    %c0_3 = arith.constant 0 : index
    %c0_4 = arith.constant 0 : index
    %11 = vector.load %arg2[%c0_3, %c0_4] : memref<1x32xf32, #tpu.memory_space<vmem>>, vector<1x32xf32>
    %12 = vector.broadcast %11 : vector<1x32xf32> to vector<16x32xf32>
    %13 = arith.mulf %10, %12 : vector<16x32xf32>
    %c0_5 = arith.constant 0 : index
    %c0_6 = arith.constant 0 : index
    %14 = vector.load %arg3[%c0_5, %c0_6] : memref<16x32xf32, #tpu.memory_space<vmem>>, vector<16x32xf32>
    tpu.vector_store %arg3[%c0_5, %c0_6], %13 {strides = array<i32>} : memref<16x32xf32, #tpu.memory_space<vmem>>, vector<16x32xf32>,
    %15 = arith.addf %0, %13 : vector<16x32xf32>
    %c0_7 = arith.constant 0 : index
    %c0_8 = arith.constant 0 : index
    %16 = vector.load %arg4[%c0_7, %c0_8] : memref<16x32xf32, #tpu.memory_space<vmem>>, vector<16x32xf32>
    tpu.vector_store %arg4[%c0_7, %c0_8], %15 {strides = array<i32>} : memref<16x32xf32, #tpu.memory_space<vmem>>, vector<16x32xf32>,
    return
  }
  func.func @transform_0(%arg0: i32) -> (i32, i32) {
    %c0_i32 = arith.constant 0 : i32
    %c0_i32_0 = arith.constant 0 : i32
    return %arg0, %c0_i32 : i32, i32
  }
  func.func @transform_1(%arg0: i32) -> (i32, i32) {
    %c0_i32 = arith.constant 0 : i32
    %c0_i32_0 = arith.constant 0 : i32
    %c0_i32_1 = arith.constant 0 : i32
    return %c0_i32, %c0_i32_0 : i32, i32
  }
  func.func @transform_2(%arg0: i32) -> (i32, i32) {
    %c0_i32 = arith.constant 0 : i32
    %c0_i32_0 = arith.constant 0 : i32
    return %arg0, %c0_i32 : i32, i32
  }
  func.func @transform_3(%arg0: i32) -> (i32, i32) {
    %c0_i32 = arith.constant 0 : i32
    %c0_i32_0 = arith.constant 0 : i32
    return %arg0, %c0_i32 : i32, i32
  }
}

module attributes {stable_mosaic.version = 11 : i64} {
  func.func @kernel(%arg0: i32, %arg1: i32, %arg2: i32, %arg3: memref<16x32xf32, #tpu.memory_space<vmem>>, %arg4: memref<32x64xbf16, #tpu.memory_space<vmem>>, %arg5: memref<1x32xf32, #tpu.memory_space<vmem>>, %arg6: memref<16x64xbf16, #tpu.memory_space<vmem>>) attributes {dimension_semantics = [#tpu.dimension_semantics<parallel>, #tpu.dimension_semantics<parallel>, #tpu.dimension_semantics<arbitrary>], iteration_bounds = array<i64: 1, 1, 1>, scalar_prefetch = 0 : i64, scratch_operands = 0 : i64, tpu.core_type = #tpu.core_type<tc>, window_params = [{transform_indices = @transform_0, window_bounds = array<i64: 16, 32>}, {transform_indices = @transform_1, window_bounds = array<i64: 32, 64>}, {transform_indices = @transform_2, window_bounds = array<i64: 1, 32>}, {transform_indices = @transform_3, window_bounds = array<i64: 16, 64>}]} {
    %c0 = arith.constant 0 : index
    %c0_0 = arith.constant 0 : index
    %0 = vector.load %arg3[%c0, %c0_0] : memref<16x32xf32, #tpu.memory_space<vmem>>, vector<16x32xf32>
    %1 = arith.mulf %0, %0 : vector<16x32xf32>
    %cst = arith.constant dense<0.000000e+00> : vector<16xf32>
    %2 = vector.multi_reduction <add>, %1, %cst [1] : vector<16x32xf32> to vector<16xf32>
    %3 = vector.shape_cast %2 : vector<16xf32> to vector<16x1xf32>
    %cst_1 = arith.constant 3.200000e+01 : f32
    %4 = vector.broadcast %cst_1 : f32 to vector<16x1xf32>
    %5 = arith.divf %3, %4 : vector<16x1xf32>
    %cst_2 = arith.constant 9.99999997E-7 : f32
    %6 = vector.broadcast %cst_2 : f32 to vector<16x1xf32>
    %7 = arith.addf %5, %6 : vector<16x1xf32>
    %8 = math.rsqrt %7 : vector<16x1xf32>
    %9 = vector.broadcast %8 : vector<16x1xf32> to vector<16x32xf32>
    %10 = arith.mulf %0, %9 : vector<16x32xf32>
    %c0_3 = arith.constant 0 : index
    %c0_4 = arith.constant 0 : index
    %11 = vector.load %arg5[%c0_3, %c0_4] : memref<1x32xf32, #tpu.memory_space<vmem>>, vector<1x32xf32>
    %12 = vector.broadcast %11 : vector<1x32xf32> to vector<16x32xf32>
    %13 = arith.mulf %10, %12 : vector<16x32xf32>
    %14 = arith.truncf %13 : vector<16x32xf32> to vector<16x32xbf16>
    %c0_5 = arith.constant 0 : index
    %c0_6 = arith.constant 0 : index
    %15 = vector.load %arg4[%c0_5, %c0_6] : memref<32x64xbf16, #tpu.memory_space<vmem>>, vector<32x64xbf16>
    %cst_7 = arith.constant dense<0.000000e+00> : vector<16x64xf32>
    %16 = tpu.matmul %14, %15, %cst_7 {dimension_numbers = #tpu.dot_dimension_numbers<[1], [0], [0], [1], [0, 0, 1, 1], [], []>} : vector<16x32xbf16>, vector<32x64xbf16>, vector<16x64xf32> -> vector<16x64xf32>
    %17 = arith.truncf %16 : vector<16x64xf32> to vector<16x64xbf16>
    %c0_8 = arith.constant 0 : index
    %c0_9 = arith.constant 0 : index
    %18 = vector.load %arg6[%c0_8, %c0_9] : memref<16x64xbf16, #tpu.memory_space<vmem>>, vector<16x64xbf16>
    tpu.vector_store %arg6[%c0_8, %c0_9], %17 {strides = array<i32>} : memref<16x64xbf16, #tpu.memory_space<vmem>>, vector<16x64xbf16>,
    return
  }
  func.func @transform_0(%arg0: i32, %arg1: i32, %arg2: i32) -> (i32, i32) {
    %c0_i32 = arith.constant 0 : i32
    return %arg0, %arg2 : i32, i32
  }
  func.func @transform_1(%arg0: i32, %arg1: i32, %arg2: i32) -> (i32, i32) {
    %c0_i32 = arith.constant 0 : i32
    return %arg2, %arg1 : i32, i32
  }
  func.func @transform_2(%arg0: i32, %arg1: i32, %arg2: i32) -> (i32, i32) {
    %c0_i32 = arith.constant 0 : i32
    %c0_i32_0 = arith.constant 0 : i32
    return %c0_i32, %arg2 : i32, i32
  }
  func.func @transform_3(%arg0: i32, %arg1: i32, %arg2: i32) -> (i32, i32) {
    %c0_i32 = arith.constant 0 : i32
    return %arg0, %arg1 : i32, i32
  }
}

module attributes {stable_mosaic.version = 11 : i64} {
  func.func @kernel(%arg0: i32, %arg1: i32, %arg2: i32, %arg3: memref<16x32xf32, #tpu.memory_space<vmem>>, %arg4: memref<32x96xbf16, #tpu.memory_space<vmem>>, %arg5: memref<1x32xf32, #tpu.memory_space<vmem>>, %arg6: memref<16x96xbf16, #tpu.memory_space<vmem>>) attributes {dimension_semantics = [#tpu.dimension_semantics<parallel>, #tpu.dimension_semantics<parallel>, #tpu.dimension_semantics<arbitrary>], iteration_bounds = array<i64: 1, 1, 1>, scalar_prefetch = 0 : i64, scratch_operands = 0 : i64, tpu.core_type = #tpu.core_type<tc>, window_params = [{transform_indices = @transform_0, window_bounds = array<i64: 16, 32>}, {transform_indices = @transform_1, window_bounds = array<i64: 32, 96>}, {transform_indices = @transform_2, window_bounds = array<i64: 1, 32>}, {transform_indices = @transform_3, window_bounds = array<i64: 16, 96>}]} {
    %c0 = arith.constant 0 : index
    %c0_0 = arith.constant 0 : index
    %0 = vector.load %arg3[%c0, %c0_0] : memref<16x32xf32, #tpu.memory_space<vmem>>, vector<16x32xf32>
    %1 = arith.mulf %0, %0 : vector<16x32xf32>
    %cst = arith.constant dense<0.000000e+00> : vector<16xf32>
    %2 = vector.multi_reduction <add>, %1, %cst [1] : vector<16x32xf32> to vector<16xf32>
    %3 = vector.shape_cast %2 : vector<16xf32> to vector<16x1xf32>
    %cst_1 = arith.constant 3.200000e+01 : f32
    %4 = vector.broadcast %cst_1 : f32 to vector<16x1xf32>
    %5 = arith.divf %3, %4 : vector<16x1xf32>
    %cst_2 = arith.constant 9.99999997E-7 : f32
    %6 = vector.broadcast %cst_2 : f32 to vector<16x1xf32>
    %7 = arith.addf %5, %6 : vector<16x1xf32>
    %8 = math.rsqrt %7 : vector<16x1xf32>
    %9 = vector.broadcast %8 : vector<16x1xf32> to vector<16x32xf32>
    %10 = arith.mulf %0, %9 : vector<16x32xf32>
    %c0_3 = arith.constant 0 : index
    %c0_4 = arith.constant 0 : index
    %11 = vector.load %arg5[%c0_3, %c0_4] : memref<1x32xf32, #tpu.memory_space<vmem>>, vector<1x32xf32>
    %12 = vector.broadcast %11 : vector<1x32xf32> to vector<16x32xf32>
    %13 = arith.mulf %10, %12 : vector<16x32xf32>
    %14 = arith.truncf %13 : vector<16x32xf32> to vector<16x32xbf16>
    %c0_5 = arith.constant 0 : index
    %c0_6 = arith.constant 0 : index
    %15 = vector.load %arg4[%c0_5, %c0_6] : memref<32x96xbf16, #tpu.memory_space<vmem>>, vector<32x96xbf16>
    %cst_7 = arith.constant dense<0.000000e+00> : vector<16x96xf32>
    %16 = tpu.matmul %14, %15, %cst_7 {dimension_numbers = #tpu.dot_dimension_numbers<[1], [0], [0], [1], [0, 0, 1, 1], [], []>} : vector<16x32xbf16>, vector<32x96xbf16>, vector<16x96xf32> -> vector<16x96xf32>
    %17 = arith.truncf %16 : vector<16x96xf32> to vector<16x96xbf16>
    %c0_8 = arith.constant 0 : index
    %c0_9 = arith.constant 0 : index
    %18 = vector.load %arg6[%c0_8, %c0_9] : memref<16x96xbf16, #tpu.memory_space<vmem>>, vector<16x96xbf16>
    tpu.vector_store %arg6[%c0_8, %c0_9], %17 {strides = array<i32>} : memref<16x96xbf16, #tpu.memory_space<vmem>>, vector<16x96xbf16>,
    return
  }
  func.func @transform_0(%arg0: i32, %arg1: i32, %arg2: i32) -> (i32, i32) {
    %c0_i32 = arith.constant 0 : i32
    return %arg0, %arg2 : i32, i32
  }
  func.func @transform_1(%arg0: i32, %arg1: i32, %arg2: i32) -> (i32, i32) {
    %c0_i32 = arith.constant 0 : i32
    return %arg2, %arg1 : i32, i32
  }
  func.func @transform_2(%arg0: i32, %arg1: i32, %arg2: i32) -> (i32, i32) {
    %c0_i32 = arith.constant 0 : i32
    %c0_i32_0 = arith.constant 0 : i32
    return %c0_i32, %arg2 : i32, i32
  }
  func.func @transform_3(%arg0: i32, %arg1: i32, %arg2: i32) -> (i32, i32) {
    %c0_i32 = arith.constant 0 : i32
    return %arg0, %arg1 : i32, i32
  }
}

module attributes {stable_mosaic.version = 11 : i64} {
  func.func @kernel(%arg0: i32, %arg1: i32, %arg2: memref<4xf32, #tpu.memory_space<smem>>, %arg3: memref<1x8x64xbf16, #tpu.memory_space<vmem>>, %arg4: memref<1x8x96xbf16, #tpu.memory_space<vmem>>, %arg5: memref<1x8x32xbf16, #tpu.memory_space<vmem>>) attributes {dimension_semantics = [#tpu.dimension_semantics<parallel>, #tpu.dimension_semantics<parallel>], iteration_bounds = array<i64: 2, 1>, scalar_prefetch = 0 : i64, scratch_operands = 0 : i64, tpu.core_type = #tpu.core_type<tc>, window_params = [{transform_indices = @transform_0, window_bounds = array<i64: 4>}, {transform_indices = @transform_1, window_bounds = array<i64: 1, 8, 64>}, {transform_indices = @transform_2, window_bounds = array<i64: 1, 8, 96>}, {transform_indices = @transform_3, window_bounds = array<i64: 1, 8, 32>}]} {
    %c0 = arith.constant 0 : index
    %c0_0 = arith.constant 0 : index
    %c0_1 = arith.constant 0 : index
    %0 = vector.load %arg3[%c0, %c0_0, %c0_1] : memref<1x8x64xbf16, #tpu.memory_space<vmem>>, vector<1x8x8xbf16>
    %1 = vector.shape_cast %0 : vector<1x8x8xbf16> to vector<8x8xbf16>
    %c0_2 = arith.constant 0 : index
    %c0_3 = arith.constant 0 : index
    %c8 = arith.constant 8 : index
    %2 = vector.load %arg3[%c0_2, %c0_3, %c8] : memref<1x8x64xbf16, #tpu.memory_space<vmem>>, vector<1x8x8xbf16>
    %3 = vector.shape_cast %2 : vector<1x8x8xbf16> to vector<8x8xbf16>
    %c0_4 = arith.constant 0 : index
    %c0_5 = arith.constant 0 : index
    %c0_6 = arith.constant 0 : index
    %4 = vector.load %arg4[%c0_4, %c0_5, %c0_6] : memref<1x8x96xbf16, #tpu.memory_space<vmem>>, vector<1x8x8xbf16>
    %5 = vector.shape_cast %4 : vector<1x8x8xbf16> to vector<8x8xbf16>
    %c0_7 = arith.constant 0 : index
    %c0_8 = arith.constant 0 : index
    %c8_9 = arith.constant 8 : index
    %6 = vector.load %arg4[%c0_7, %c0_8, %c8_9] : memref<1x8x96xbf16, #tpu.memory_space<vmem>>, vector<1x8x8xbf16>
    %7 = vector.shape_cast %6 : vector<1x8x8xbf16> to vector<8x8xbf16>
    %c0_10 = arith.constant 0 : index
    %c0_11 = arith.constant 0 : index
    %c64 = arith.constant 64 : index
    %8 = vector.load %arg4[%c0_10, %c0_11, %c64] : memref<1x8x96xbf16, #tpu.memory_space<vmem>>, vector<1x8x8xbf16>
    %9 = vector.shape_cast %8 : vector<1x8x8xbf16> to vector<8x8xbf16>
    %cst = arith.constant dense<0.000000e+00> : vector<8x8xf32>
    %10 = tpu.matmul %1, %5, %cst {dimension_numbers = #tpu.dot_dimension_numbers<[1], [1], [0], [0], [0, 0, 1, 0], [], []>} : vector<8x8xbf16>, vector<8x8xbf16>, vector<8x8xf32> -> vector<8x8xf32>
    %cst_12 = arith.constant 0.353553385 : f32
    %11 = vector.broadcast %cst_12 : f32 to vector<8x8xf32>
    %12 = arith.mulf %10, %11 : vector<8x8xf32>
    %cst_13 = arith.constant dense<0.000000e+00> : vector<8x8xf32>
    %13 = tpu.matmul %3, %7, %cst_13 {dimension_numbers = #tpu.dot_dimension_numbers<[1], [1], [0], [0], [0, 0, 1, 0], [], []>} : vector<8x8xbf16>, vector<8x8xbf16>, vector<8x8xf32> -> vector<8x8xf32>
    %cst_14 = arith.constant 0.353553385 : f32
    %14 = vector.broadcast %cst_14 : f32 to vector<8x8xf32>
    %15 = arith.mulf %13, %14 : vector<8x8xf32>
    %cst_15 = arith.constant dense<0xFF800000> : vector<8xf32>
    %16 = vector.multi_reduction <maximumf>, %12, %cst_15 [1] : vector<8x8xf32> to vector<8xf32>
    %17 = vector.shape_cast %16 : vector<8xf32> to vector<8x1xf32>
    %18 = vector.broadcast %17 : vector<8x1xf32> to vector<8x8xf32>
    %19 = arith.subf %12, %18 : vector<8x8xf32>
    %20 = math.exp %19 : vector<8x8xf32>
    %cst_16 = arith.constant dense<0.000000e+00> : vector<8xf32>
    %21 = vector.multi_reduction <add>, %20, %cst_16 [1] : vector<8x8xf32> to vector<8xf32>
    %22 = vector.shape_cast %21 : vector<8xf32> to vector<8x1xf32>
    %23 = tpu.reciprocal %22 {approx = true} : vector<8x1xf32> -> vector<8x1xf32>
    %24 = vector.broadcast %23 : vector<8x1xf32> to vector<8x8xf32>
    %25 = arith.mulf %20, %24 : vector<8x8xf32>
    %cst_17 = arith.constant dense<0xFF800000> : vector<8xf32>
    %26 = vector.multi_reduction <maximumf>, %15, %cst_17 [1] : vector<8x8xf32> to vector<8xf32>
    %27 = vector.shape_cast %26 : vector<8xf32> to vector<8x1xf32>
    %28 = vector.broadcast %27 : vector<8x1xf32> to vector<8x8xf32>
    %29 = arith.subf %15, %28 : vector<8x8xf32>
    %30 = math.exp %29 : vector<8x8xf32>
    %cst_18 = arith.constant dense<0.000000e+00> : vector<8xf32>
    %31 = vector.multi_reduction <add>, %30, %cst_18 [1] : vector<8x8xf32> to vector<8xf32>
    %32 = vector.shape_cast %31 : vector<8xf32> to vector<8x1xf32>
    %33 = tpu.reciprocal %32 {approx = true} : vector<8x1xf32> -> vector<8x1xf32>
    %34 = vector.broadcast %33 : vector<8x1xf32> to vector<8x8xf32>
    %35 = arith.mulf %30, %34 : vector<8x8xf32>
    %c0_19 = arith.constant 0 : index
    %36 = memref.load %arg2[%c0_19] : memref<4xf32, #tpu.memory_space<smem>>
    %37 = vector.broadcast %36 : f32 to vector<8x8xf32>
    %38 = arith.mulf %37, %35 : vector<8x8xf32>
    %39 = arith.subf %25, %38 : vector<8x8xf32>
    %cst_20 = arith.constant dense<0xFF800000> : vector<8xf32>
    %40 = vector.multi_reduction <maximumf>, %39, %cst_20 [1] : vector<8x8xf32> to vector<8xf32>
    %41 = vector.shape_cast %40 : vector<8xf32> to vector<8x1xf32>
    %42 = vector.broadcast %41 : vector<8x1xf32> to vector<8x8xf32>
    %43 = arith.subf %39, %42 : vector<8x8xf32>
    %44 = math.exp %43 : vector<8x8xf32>
    %cst_21 = arith.constant dense<0.000000e+00> : vector<8xf32>
    %45 = vector.multi_reduction <add>, %44, %cst_21 [1] : vector<8x8xf32> to vector<8xf32>
    %46 = vector.shape_cast %45 : vector<8xf32> to vector<8x1xf32>
    %47 = tpu.reciprocal %46 {approx = true} : vector<8x1xf32> -> vector<8x1xf32>
    %48 = vector.broadcast %47 : vector<8x1xf32> to vector<8x8xf32>
    %49 = arith.mulf %44, %48 : vector<8x8xf32>
    %50 = arith.truncf %49 : vector<8x8xf32> to vector<8x8xbf16>
    %cst_22 = arith.constant dense<0.000000e+00> : vector<8x8xf32>
    %51 = tpu.matmul %50, %9, %cst_22 {dimension_numbers = #tpu.dot_dimension_numbers<[1], [0], [0], [1], [0, 0, 1, 1], [], []>} : vector<8x8xbf16>, vector<8x8xbf16>, vector<8x8xf32> -> vector<8x8xf32>
    %c0_23 = arith.constant 0 : index
    %c0_24 = arith.constant 0 : index
    %c16 = arith.constant 16 : index
    %52 = vector.load %arg3[%c0_23, %c0_24, %c16] : memref<1x8x64xbf16, #tpu.memory_space<vmem>>, vector<1x8x8xbf16>
    %53 = vector.shape_cast %52 : vector<1x8x8xbf16> to vector<8x8xbf16>
    %c0_25 = arith.constant 0 : index
    %c0_26 = arith.constant 0 : index
    %c24 = arith.constant 24 : index
    %54 = vector.load %arg3[%c0_25, %c0_26, %c24] : memref<1x8x64xbf16, #tpu.memory_space<vmem>>, vector<1x8x8xbf16>
    %55 = vector.shape_cast %54 : vector<1x8x8xbf16> to vector<8x8xbf16>
    %c0_27 = arith.constant 0 : index
    %c0_28 = arith.constant 0 : index
    %c16_29 = arith.constant 16 : index
    %56 = vector.load %arg4[%c0_27, %c0_28, %c16_29] : memref<1x8x96xbf16, #tpu.memory_space<vmem>>, vector<1x8x8xbf16>
    %57 = vector.shape_cast %56 : vector<1x8x8xbf16> to vector<8x8xbf16>
    %c0_30 = arith.constant 0 : index
    %c0_31 = arith.constant 0 : index
    %c24_32 = arith.constant 24 : index
    %58 = vector.load %arg4[%c0_30, %c0_31, %c24_32] : memref<1x8x96xbf16, #tpu.memory_space<vmem>>, vector<1x8x8xbf16>
    %59 = vector.shape_cast %58 : vector<1x8x8xbf16> to vector<8x8xbf16>
    %c0_33 = arith.constant 0 : index
    %c0_34 = arith.constant 0 : index
    %c72 = arith.constant 72 : index
    %60 = vector.load %arg4[%c0_33, %c0_34, %c72] : memref<1x8x96xbf16, #tpu.memory_space<vmem>>, vector<1x8x8xbf16>
    %61 = vector.shape_cast %60 : vector<1x8x8xbf16> to vector<8x8xbf16>
    %cst_35 = arith.constant dense<0.000000e+00> : vector<8x8xf32>
    %62 = tpu.matmul %53, %57, %cst_35 {dimension_numbers = #tpu.dot_dimension_numbers<[1], [1], [0], [0], [0, 0, 1, 0], [], []>} : vector<8x8xbf16>, vector<8x8xbf16>, vector<8x8xf32> -> vector<8x8xf32>
    %cst_36 = arith.constant 0.353553385 : f32
    %63 = vector.broadcast %cst_36 : f32 to vector<8x8xf32>
    %64 = arith.mulf %62, %63 : vector<8x8xf32>
    %cst_37 = arith.constant dense<0.000000e+00> : vector<8x8xf32>
    %65 = tpu.matmul %55, %59, %cst_37 {dimension_numbers = #tpu.dot_dimension_numbers<[1], [1], [0], [0], [0, 0, 1, 0], [], []>} : vector<8x8xbf16>, vector<8x8xbf16>, vector<8x8xf32> -> vector<8x8xf32>
    %cst_38 = arith.constant 0.353553385 : f32
    %66 = vector.broadcast %cst_38 : f32 to vector<8x8xf32>
    %67 = arith.mulf %65, %66 : vector<8x8xf32>
    %cst_39 = arith.constant dense<0xFF800000> : vector<8xf32>
    %68 = vector.multi_reduction <maximumf>, %64, %cst_39 [1] : vector<8x8xf32> to vector<8xf32>
    %69 = vector.shape_cast %68 : vector<8xf32> to vector<8x1xf32>
    %70 = vector.broadcast %69 : vector<8x1xf32> to vector<8x8xf32>
    %71 = arith.subf %64, %70 : vector<8x8xf32>
    %72 = math.exp %71 : vector<8x8xf32>
    %cst_40 = arith.constant dense<0.000000e+00> : vector<8xf32>
    %73 = vector.multi_reduction <add>, %72, %cst_40 [1] : vector<8x8xf32> to vector<8xf32>
    %74 = vector.shape_cast %73 : vector<8xf32> to vector<8x1xf32>
    %75 = tpu.reciprocal %74 {approx = true} : vector<8x1xf32> -> vector<8x1xf32>
    %76 = vector.broadcast %75 : vector<8x1xf32> to vector<8x8xf32>
    %77 = arith.mulf %72, %76 : vector<8x8xf32>
    %cst_41 = arith.constant dense<0xFF800000> : vector<8xf32>
    %78 = vector.multi_reduction <maximumf>, %67, %cst_41 [1] : vector<8x8xf32> to vector<8xf32>
    %79 = vector.shape_cast %78 : vector<8xf32> to vector<8x1xf32>
    %80 = vector.broadcast %79 : vector<8x1xf32> to vector<8x8xf32>
    %81 = arith.subf %67, %80 : vector<8x8xf32>
    %82 = math.exp %81 : vector<8x8xf32>
    %cst_42 = arith.constant dense<0.000000e+00> : vector<8xf32>
    %83 = vector.multi_reduction <add>, %82, %cst_42 [1] : vector<8x8xf32> to vector<8xf32>
    %84 = vector.shape_cast %83 : vector<8xf32> to vector<8x1xf32>
    %85 = tpu.reciprocal %84 {approx = true} : vector<8x1xf32> -> vector<8x1xf32>
    %86 = vector.broadcast %85 : vector<8x1xf32> to vector<8x8xf32>
    %87 = arith.mulf %82, %86 : vector<8x8xf32>
    %c1 = arith.constant 1 : index
    %88 = memref.load %arg2[%c1] : memref<4xf32, #tpu.memory_space<smem>>
    %89 = vector.broadcast %88 : f32 to vector<8x8xf32>
    %90 = arith.mulf %89, %87 : vector<8x8xf32>
    %91 = arith.subf %77, %90 : vector<8x8xf32>
    %cst_43 = arith.constant dense<0xFF800000> : vector<8xf32>
    %92 = vector.multi_reduction <maximumf>, %91, %cst_43 [1] : vector<8x8xf32> to vector<8xf32>
    %93 = vector.shape_cast %92 : vector<8xf32> to vector<8x1xf32>
    %94 = vector.broadcast %93 : vector<8x1xf32> to vector<8x8xf32>
    %95 = arith.subf %91, %94 : vector<8x8xf32>
    %96 = math.exp %95 : vector<8x8xf32>
    %cst_44 = arith.constant dense<0.000000e+00> : vector<8xf32>
    %97 = vector.multi_reduction <add>, %96, %cst_44 [1] : vector<8x8xf32> to vector<8xf32>
    %98 = vector.shape_cast %97 : vector<8xf32> to vector<8x1xf32>
    %99 = tpu.reciprocal %98 {approx = true} : vector<8x1xf32> -> vector<8x1xf32>
    %100 = vector.broadcast %99 : vector<8x1xf32> to vector<8x8xf32>
    %101 = arith.mulf %96, %100 : vector<8x8xf32>
    %102 = arith.truncf %101 : vector<8x8xf32> to vector<8x8xbf16>
    %cst_45 = arith.constant dense<0.000000e+00> : vector<8x8xf32>
    %103 = tpu.matmul %102, %61, %cst_45 {dimension_numbers = #tpu.dot_dimension_numbers<[1], [0], [0], [1], [0, 0, 1, 1], [], []>} : vector<8x8xbf16>, vector<8x8xbf16>, vector<8x8xf32> -> vector<8x8xf32>
    %c0_46 = arith.constant 0 : index
    %c0_47 = arith.constant 0 : index
    %c32 = arith.constant 32 : index
    %104 = vector.load %arg3[%c0_46, %c0_47, %c32] : memref<1x8x64xbf16, #tpu.memory_space<vmem>>, vector<1x8x8xbf16>
    %105 = vector.shape_cast %104 : vector<1x8x8xbf16> to vector<8x8xbf16>
    %c0_48 = arith.constant 0 : index
    %c0_49 = arith.constant 0 : index
    %c40 = arith.constant 40 : index
    %106 = vector.load %arg3[%c0_48, %c0_49, %c40] : memref<1x8x64xbf16, #tpu.memory_space<vmem>>, vector<1x8x8xbf16>
    %107 = vector.shape_cast %106 : vector<1x8x8xbf16> to vector<8x8xbf16>
    %c0_50 = arith.constant 0 : index
    %c0_51 = arith.constant 0 : index
    %c32_52 = arith.constant 32 : index
    %108 = vector.load %arg4[%c0_50, %c0_51, %c32_52] : memref<1x8x96xbf16, #tpu.memory_space<vmem>>, vector<1x8x8xbf16>
    %109 = vector.shape_cast %108 : vector<1x8x8xbf16> to vector<8x8xbf16>
    %c0_53 = arith.constant 0 : index
    %c0_54 = arith.constant 0 : index
    %c40_55 = arith.constant 40 : index
    %110 = vector.load %arg4[%c0_53, %c0_54, %c40_55] : memref<1x8x96xbf16, #tpu.memory_space<vmem>>, vector<1x8x8xbf16>
    %111 = vector.shape_cast %110 : vector<1x8x8xbf16> to vector<8x8xbf16>
    %c0_56 = arith.constant 0 : index
    %c0_57 = arith.constant 0 : index
    %c80 = arith.constant 80 : index
    %112 = vector.load %arg4[%c0_56, %c0_57, %c80] : memref<1x8x96xbf16, #tpu.memory_space<vmem>>, vector<1x8x8xbf16>
    %113 = vector.shape_cast %112 : vector<1x8x8xbf16> to vector<8x8xbf16>
    %cst_58 = arith.constant dense<0.000000e+00> : vector<8x8xf32>
    %114 = tpu.matmul %105, %109, %cst_58 {dimension_numbers = #tpu.dot_dimension_numbers<[1], [1], [0], [0], [0, 0, 1, 0], [], []>} : vector<8x8xbf16>, vector<8x8xbf16>, vector<8x8xf32> -> vector<8x8xf32>
    %cst_59 = arith.constant 0.353553385 : f32
    %115 = vector.broadcast %cst_59 : f32 to vector<8x8xf32>
    %116 = arith.mulf %114, %115 : vector<8x8xf32>
    %cst_60 = arith.constant dense<0.000000e+00> : vector<8x8xf32>
    %117 = tpu.matmul %107, %111, %cst_60 {dimension_numbers = #tpu.dot_dimension_numbers<[1], [1], [0], [0], [0, 0, 1, 0], [], []>} : vector<8x8xbf16>, vector<8x8xbf16>, vector<8x8xf32> -> vector<8x8xf32>
    %cst_61 = arith.constant 0.353553385 : f32
    %118 = vector.broadcast %cst_61 : f32 to vector<8x8xf32>
    %119 = arith.mulf %117, %118 : vector<8x8xf32>
    %cst_62 = arith.constant dense<0xFF800000> : vector<8xf32>
    %120 = vector.multi_reduction <maximumf>, %116, %cst_62 [1] : vector<8x8xf32> to vector<8xf32>
    %121 = vector.shape_cast %120 : vector<8xf32> to vector<8x1xf32>
    %122 = vector.broadcast %121 : vector<8x1xf32> to vector<8x8xf32>
    %123 = arith.subf %116, %122 : vector<8x8xf32>
    %124 = math.exp %123 : vector<8x8xf32>
    %cst_63 = arith.constant dense<0.000000e+00> : vector<8xf32>
    %125 = vector.multi_reduction <add>, %124, %cst_63 [1] : vector<8x8xf32> to vector<8xf32>
    %126 = vector.shape_cast %125 : vector<8xf32> to vector<8x1xf32>
    %127 = tpu.reciprocal %126 {approx = true} : vector<8x1xf32> -> vector<8x1xf32>
    %128 = vector.broadcast %127 : vector<8x1xf32> to vector<8x8xf32>
    %129 = arith.mulf %124, %128 : vector<8x8xf32>
    %cst_64 = arith.constant dense<0xFF800000> : vector<8xf32>
    %130 = vector.multi_reduction <maximumf>, %119, %cst_64 [1] : vector<8x8xf32> to vector<8xf32>
    %131 = vector.shape_cast %130 : vector<8xf32> to vector<8x1xf32>
    %132 = vector.broadcast %131 : vector<8x1xf32> to vector<8x8xf32>
    %133 = arith.subf %119, %132 : vector<8x8xf32>
    %134 = math.exp %133 : vector<8x8xf32>
    %cst_65 = arith.constant dense<0.000000e+00> : vector<8xf32>
    %135 = vector.multi_reduction <add>, %134, %cst_65 [1] : vector<8x8xf32> to vector<8xf32>
    %136 = vector.shape_cast %135 : vector<8xf32> to vector<8x1xf32>
    %137 = tpu.reciprocal %136 {approx = true} : vector<8x1xf32> -> vector<8x1xf32>
    %138 = vector.broadcast %137 : vector<8x1xf32> to vector<8x8xf32>
    %139 = arith.mulf %134, %138 : vector<8x8xf32>
    %c2 = arith.constant 2 : index
    %140 = memref.load %arg2[%c2] : memref<4xf32, #tpu.memory_space<smem>>
    %141 = vector.broadcast %140 : f32 to vector<8x8xf32>
    %142 = arith.mulf %141, %139 : vector<8x8xf32>
    %143 = arith.subf %129, %142 : vector<8x8xf32>
    %cst_66 = arith.constant dense<0xFF800000> : vector<8xf32>
    %144 = vector.multi_reduction <maximumf>, %143, %cst_66 [1] : vector<8x8xf32> to vector<8xf32>
    %145 = vector.shape_cast %144 : vector<8xf32> to vector<8x1xf32>
    %146 = vector.broadcast %145 : vector<8x1xf32> to vector<8x8xf32>
    %147 = arith.subf %143, %146 : vector<8x8xf32>
    %148 = math.exp %147 : vector<8x8xf32>
    %cst_67 = arith.constant dense<0.000000e+00> : vector<8xf32>
    %149 = vector.multi_reduction <add>, %148, %cst_67 [1] : vector<8x8xf32> to vector<8xf32>
    %150 = vector.shape_cast %149 : vector<8xf32> to vector<8x1xf32>
    %151 = tpu.reciprocal %150 {approx = true} : vector<8x1xf32> -> vector<8x1xf32>
    %152 = vector.broadcast %151 : vector<8x1xf32> to vector<8x8xf32>
    %153 = arith.mulf %148, %152 : vector<8x8xf32>
    %154 = arith.truncf %153 : vector<8x8xf32> to vector<8x8xbf16>
    %cst_68 = arith.constant dense<0.000000e+00> : vector<8x8xf32>
    %155 = tpu.matmul %154, %113, %cst_68 {dimension_numbers = #tpu.dot_dimension_numbers<[1], [0], [0], [1], [0, 0, 1, 1], [], []>} : vector<8x8xbf16>, vector<8x8xbf16>, vector<8x8xf32> -> vector<8x8xf32>
    %c0_69 = arith.constant 0 : index
    %c0_70 = arith.constant 0 : index
    %c48 = arith.constant 48 : index
    %156 = vector.load %arg3[%c0_69, %c0_70, %c48] : memref<1x8x64xbf16, #tpu.memory_space<vmem>>, vector<1x8x8xbf16>
    %157 = vector.shape_cast %156 : vector<1x8x8xbf16> to vector<8x8xbf16>
    %c0_71 = arith.constant 0 : index
    %c0_72 = arith.constant 0 : index
    %c56 = arith.constant 56 : index
    %158 = vector.load %arg3[%c0_71, %c0_72, %c56] : memref<1x8x64xbf16, #tpu.memory_space<vmem>>, vector<1x8x8xbf16>
    %159 = vector.shape_cast %158 : vector<1x8x8xbf16> to vector<8x8xbf16>
    %c0_73 = arith.constant 0 : index
    %c0_74 = arith.constant 0 : index
    %c48_75 = arith.constant 48 : index
    %160 = vector.load %arg4[%c0_73, %c0_74, %c48_75] : memref<1x8x96xbf16, #tpu.memory_space<vmem>>, vector<1x8x8xbf16>
    %161 = vector.shape_cast %160 : vector<1x8x8xbf16> to vector<8x8xbf16>
    %c0_76 = arith.constant 0 : index
    %c0_77 = arith.constant 0 : index
    %c56_78 = arith.constant 56 : index
    %162 = vector.load %arg4[%c0_76, %c0_77, %c56_78] : memref<1x8x96xbf16, #tpu.memory_space<vmem>>, vector<1x8x8xbf16>
    %163 = vector.shape_cast %162 : vector<1x8x8xbf16> to vector<8x8xbf16>
    %c0_79 = arith.constant 0 : index
    %c0_80 = arith.constant 0 : index
    %c88 = arith.constant 88 : index
    %164 = vector.load %arg4[%c0_79, %c0_80, %c88] : memref<1x8x96xbf16, #tpu.memory_space<vmem>>, vector<1x8x8xbf16>
    %165 = vector.shape_cast %164 : vector<1x8x8xbf16> to vector<8x8xbf16>
    %cst_81 = arith.constant dense<0.000000e+00> : vector<8x8xf32>
    %166 = tpu.matmul %157, %161, %cst_81 {dimension_numbers = #tpu.dot_dimension_numbers<[1], [1], [0], [0], [0, 0, 1, 0], [], []>} : vector<8x8xbf16>, vector<8x8xbf16>, vector<8x8xf32> -> vector<8x8xf32>
    %cst_82 = arith.constant 0.353553385 : f32
    %167 = vector.broadcast %cst_82 : f32 to vector<8x8xf32>
    %168 = arith.mulf %166, %167 : vector<8x8xf32>
    %cst_83 = arith.constant dense<0.000000e+00> : vector<8x8xf32>
    %169 = tpu.matmul %159, %163, %cst_83 {dimension_numbers = #tpu.dot_dimension_numbers<[1], [1], [0], [0], [0, 0, 1, 0], [], []>} : vector<8x8xbf16>, vector<8x8xbf16>, vector<8x8xf32> -> vector<8x8xf32>
    %cst_84 = arith.constant 0.353553385 : f32
    %170 = vector.broadcast %cst_84 : f32 to vector<8x8xf32>
    %171 = arith.mulf %169, %170 : vector<8x8xf32>
    %cst_85 = arith.constant dense<0xFF800000> : vector<8xf32>
    %172 = vector.multi_reduction <maximumf>, %168, %cst_85 [1] : vector<8x8xf32> to vector<8xf32>
    %173 = vector.shape_cast %172 : vector<8xf32> to vector<8x1xf32>
    %174 = vector.broadcast %173 : vector<8x1xf32> to vector<8x8xf32>
    %175 = arith.subf %168, %174 : vector<8x8xf32>
    %176 = math.exp %175 : vector<8x8xf32>
    %cst_86 = arith.constant dense<0.000000e+00> : vector<8xf32>
    %177 = vector.multi_reduction <add>, %176, %cst_86 [1] : vector<8x8xf32> to vector<8xf32>
    %178 = vector.shape_cast %177 : vector<8xf32> to vector<8x1xf32>
    %179 = tpu.reciprocal %178 {approx = true} : vector<8x1xf32> -> vector<8x1xf32>
    %180 = vector.broadcast %179 : vector<8x1xf32> to vector<8x8xf32>
    %181 = arith.mulf %176, %180 : vector<8x8xf32>
    %cst_87 = arith.constant dense<0xFF800000> : vector<8xf32>
    %182 = vector.multi_reduction <maximumf>, %171, %cst_87 [1] : vector<8x8xf32> to vector<8xf32>
    %183 = vector.shape_cast %182 : vector<8xf32> to vector<8x1xf32>
    %184 = vector.broadcast %183 : vector<8x1xf32> to vector<8x8xf32>
    %185 = arith.subf %171, %184 : vector<8x8xf32>
    %186 = math.exp %185 : vector<8x8xf32>
    %cst_88 = arith.constant dense<0.000000e+00> : vector<8xf32>
    %187 = vector.multi_reduction <add>, %186, %cst_88 [1] : vector<8x8xf32> to vector<8xf32>
    %188 = vector.shape_cast %187 : vector<8xf32> to vector<8x1xf32>
    %189 = tpu.reciprocal %188 {approx = true} : vector<8x1xf32> -> vector<8x1xf32>
    %190 = vector.broadcast %189 : vector<8x1xf32> to vector<8x8xf32>
    %191 = arith.mulf %186, %190 : vector<8x8xf32>
    %c3 = arith.constant 3 : index
    %192 = memref.load %arg2[%c3] : memref<4xf32, #tpu.memory_space<smem>>
    %193 = vector.broadcast %192 : f32 to vector<8x8xf32>
    %194 = arith.mulf %193, %191 : vector<8x8xf32>
    %195 = arith.subf %181, %194 : vector<8x8xf32>
    %cst_89 = arith.constant dense<0xFF800000> : vector<8xf32>
    %196 = vector.multi_reduction <maximumf>, %195, %cst_89 [1] : vector<8x8xf32> to vector<8xf32>
    %197 = vector.shape_cast %196 : vector<8xf32> to vector<8x1xf32>
    %198 = vector.broadcast %197 : vector<8x1xf32> to vector<8x8xf32>
    %199 = arith.subf %195, %198 : vector<8x8xf32>
    %200 = math.exp %199 : vector<8x8xf32>
    %cst_90 = arith.constant dense<0.000000e+00> : vector<8xf32>
    %201 = vector.multi_reduction <add>, %200, %cst_90 [1] : vector<8x8xf32> to vector<8xf32>
    %202 = vector.shape_cast %201 : vector<8xf32> to vector<8x1xf32>
    %203 = tpu.reciprocal %202 {approx = true} : vector<8x1xf32> -> vector<8x1xf32>
    %204 = vector.broadcast %203 : vector<8x1xf32> to vector<8x8xf32>
    %205 = arith.mulf %200, %204 : vector<8x8xf32>
    %206 = arith.truncf %205 : vector<8x8xf32> to vector<8x8xbf16>
    %cst_91 = arith.constant dense<0.000000e+00> : vector<8x8xf32>
    %207 = tpu.matmul %206, %165, %cst_91 {dimension_numbers = #tpu.dot_dimension_numbers<[1], [0], [0], [1], [0, 0, 1, 1], [], []>} : vector<8x8xbf16>, vector<8x8xbf16>, vector<8x8xf32> -> vector<8x8xf32>
    %208 = tpu.concatenate %51, %103, %155, %207 in 1 : vector<8x8xf32>, vector<8x8xf32>, vector<8x8xf32>, vector<8x8xf32> -> vector<8x32xf32>
    %209 = arith.truncf %208 : vector<8x32xf32> to vector<8x32xbf16>
    %c0_92 = arith.constant 0 : index
    %c0_93 = arith.constant 0 : index
    %c0_94 = arith.constant 0 : index
    %210 = vector.load %arg5[%c0_92, %c0_93, %c0_94] : memref<1x8x32xbf16, #tpu.memory_space<vmem>>, vector<1x8x32xbf16>
    %211 = vector.shape_cast %210 : vector<1x8x32xbf16> to vector<8x32xbf16>
    %212 = vector.shape_cast %209 : vector<8x32xbf16> to vector<1x8x32xbf16>
    tpu.vector_store %arg5[%c0_92, %c0_93, %c0_94], %212 {strides = array<i32>} : memref<1x8x32xbf16, #tpu.memory_space<vmem>>, vector<1x8x32xbf16>,
    return
  }
  func.func @transform_0(%arg0: i32, %arg1: i32) -> i32 {
    %c0_i32 = arith.constant 0 : i32
    %c0_i32_0 = arith.constant 0 : i32
    return %c0_i32 : i32
  }
  func.func @transform_1(%arg0: i32, %arg1: i32) -> (i32, i32, i32) {
    %c0_i32 = arith.constant 0 : i32
    %c0_i32_0 = arith.constant 0 : i32
    return %arg0, %arg1, %c0_i32 : i32, i32, i32
  }
  func.func @transform_2(%arg0: i32, %arg1: i32) -> (i32, i32, i32) {
    %c0_i32 = arith.constant 0 : i32
    %c0_i32_0 = arith.constant 0 : i32
    %c0_i32_1 = arith.constant 0 : i32
    return %arg0, %c0_i32, %c0_i32_0 : i32, i32, i32
  }
  func.func @transform_3(%arg0: i32, %arg1: i32) -> (i32, i32, i32) {
    %c0_i32 = arith.constant 0 : i32
    %c0_i32_0 = arith.constant 0 : i32
    return %arg0, %arg1, %c0_i32 : i32, i32, i32
  }
}

module attributes {stable_mosaic.version = 11 : i64} {
  func.func @kernel(%arg0: i32, %arg1: i32, %arg2: i32, %arg3: memref<16x64xbf16, #tpu.memory_space<vmem>>, %arg4: memref<64x170xbf16, #tpu.memory_space<vmem>>, %arg5: memref<64x170xbf16, #tpu.memory_space<vmem>>, %arg6: memref<16x170xbf16, #tpu.memory_space<vmem>>) attributes {dimension_semantics = [#tpu.dimension_semantics<parallel>, #tpu.dimension_semantics<parallel>, #tpu.dimension_semantics<arbitrary>], iteration_bounds = array<i64: 1, 1, 1>, scalar_prefetch = 0 : i64, scratch_operands = 0 : i64, tpu.core_type = #tpu.core_type<tc>, window_params = [{transform_indices = @transform_0, window_bounds = array<i64: 16, 64>}, {transform_indices = @transform_1, window_bounds = array<i64: 64, 170>}, {transform_indices = @transform_2, window_bounds = array<i64: 64, 170>}, {transform_indices = @transform_3, window_bounds = array<i64: 16, 170>}]} {
    %c0 = arith.constant 0 : index
    %c0_0 = arith.constant 0 : index
    %0 = vector.load %arg3[%c0, %c0_0] : memref<16x64xbf16, #tpu.memory_space<vmem>>, vector<16x64xbf16>
    %c0_1 = arith.constant 0 : index
    %c0_2 = arith.constant 0 : index
    %1 = vector.load %arg4[%c0_1, %c0_2] : memref<64x170xbf16, #tpu.memory_space<vmem>>, vector<64x170xbf16>
    %cst = arith.constant dense<0.000000e+00> : vector<16x170xf32>
    %2 = tpu.matmul %0, %1, %cst {dimension_numbers = #tpu.dot_dimension_numbers<[1], [0], [0], [1], [0, 0, 1, 1], [], []>} : vector<16x64xbf16>, vector<64x170xbf16>, vector<16x170xf32> -> vector<16x170xf32>
    %c0_3 = arith.constant 0 : index
    %c0_4 = arith.constant 0 : index
    %3 = vector.load %arg5[%c0_3, %c0_4] : memref<64x170xbf16, #tpu.memory_space<vmem>>, vector<64x170xbf16>
    %cst_5 = arith.constant dense<0.000000e+00> : vector<16x170xf32>
    %4 = tpu.matmul %0, %3, %cst_5 {dimension_numbers = #tpu.dot_dimension_numbers<[1], [0], [0], [1], [0, 0, 1, 1], [], []>} : vector<16x64xbf16>, vector<64x170xbf16>, vector<16x170xf32> -> vector<16x170xf32>
    %5 = arith.negf %2 : vector<16x170xf32>
    %6 = math.exp %5 : vector<16x170xf32>
    %cst_6 = arith.constant 1.000000e+00 : f32
    %7 = vector.broadcast %cst_6 : f32 to vector<16x170xf32>
    %8 = arith.addf %7, %6 : vector<16x170xf32>
    %9 = arith.divf %7, %8 : vector<16x170xf32>
    %10 = arith.mulf %2, %9 : vector<16x170xf32>
    %11 = arith.mulf %10, %4 : vector<16x170xf32>
    %12 = arith.truncf %11 : vector<16x170xf32> to vector<16x170xbf16>
    %c0_7 = arith.constant 0 : index
    %c0_8 = arith.constant 0 : index
    %13 = vector.load %arg6[%c0_7, %c0_8] : memref<16x170xbf16, #tpu.memory_space<vmem>>, vector<16x170xbf16>
    tpu.vector_store %arg6[%c0_7, %c0_8], %12 {strides = array<i32>} : memref<16x170xbf16, #tpu.memory_space<vmem>>, vector<16x170xbf16>,
    return
  }
  func.func @transform_0(%arg0: i32, %arg1: i32, %arg2: i32) -> (i32, i32) {
    %c0_i32 = arith.constant 0 : i32
    return %arg0, %arg2 : i32, i32
  }
  func.func @transform_1(%arg0: i32, %arg1: i32, %arg2: i32) -> (i32, i32) {
    %c0_i32 = arith.constant 0 : i32
    return %arg2, %arg1 : i32, i32
  }
  func.func @transform_2(%arg0: i32, %arg1: i32, %arg2: i32) -> (i32, i32) {
    %c0_i32 = arith.constant 0 : i32
    return %arg2, %arg1 : i32, i32
  }
  func.func @transform_3(%arg0: i32, %arg1: i32, %arg2: i32) -> (i32, i32) {
    %c0_i32 = arith.constant 0 : i32
    return %arg0, %arg1 : i32, i32
  }
}

module attributes {stable_mosaic.version = 11 : i64} {
  func.func @kernel(%arg0: i32, %arg1: i32, %arg2: i32, %arg3: memref<16x32xbf16, #tpu.memory_space<vmem>>, %arg4: memref<32x32xbf16, #tpu.memory_space<vmem>>, %arg5: memref<1x32xf32, #tpu.memory_space<vmem>>, %arg6: memref<16x32xf32, #tpu.memory_space<vmem>>, %arg7: memref<16x32xf32, #tpu.memory_space<vmem>>) attributes {dimension_semantics = [#tpu.dimension_semantics<parallel>, #tpu.dimension_semantics<parallel>, #tpu.dimension_semantics<arbitrary>], iteration_bounds = array<i64: 1, 1, 1>, scalar_prefetch = 0 : i64, scratch_operands = 0 : i64, tpu.core_type = #tpu.core_type<tc>, window_params = [{transform_indices = @transform_0, window_bounds = array<i64: 16, 32>}, {transform_indices = @transform_1, window_bounds = array<i64: 32, 32>}, {transform_indices = @transform_2, window_bounds = array<i64: 1, 32>}, {transform_indices = @transform_3, window_bounds = array<i64: 16, 32>}, {transform_indices = @transform_4, window_bounds = array<i64: 16, 32>}]} {
    %c0 = arith.constant 0 : index
    %c0_0 = arith.constant 0 : index
    %0 = vector.load %arg3[%c0, %c0_0] : memref<16x32xbf16, #tpu.memory_space<vmem>>, vector<16x32xbf16>
    %1 = arith.extf %0 : vector<16x32xbf16> to vector<16x32xf32>
    %2 = arith.mulf %1, %1 : vector<16x32xf32>
    %cst = arith.constant dense<0.000000e+00> : vector<16xf32>
    %3 = vector.multi_reduction <add>, %2, %cst [1] : vector<16x32xf32> to vector<16xf32>
    %4 = vector.shape_cast %3 : vector<16xf32> to vector<16x1xf32>
    %cst_1 = arith.constant 3.200000e+01 : f32
    %5 = vector.broadcast %cst_1 : f32 to vector<16x1xf32>
    %6 = arith.divf %4, %5 : vector<16x1xf32>
    %cst_2 = arith.constant 9.99999997E-7 : f32
    %7 = vector.broadcast %cst_2 : f32 to vector<16x1xf32>
    %8 = arith.addf %6, %7 : vector<16x1xf32>
    %9 = math.rsqrt %8 : vector<16x1xf32>
    %10 = vector.broadcast %9 : vector<16x1xf32> to vector<16x32xf32>
    %11 = arith.mulf %1, %10 : vector<16x32xf32>
    %c0_3 = arith.constant 0 : index
    %c0_4 = arith.constant 0 : index
    %12 = vector.load %arg5[%c0_3, %c0_4] : memref<1x32xf32, #tpu.memory_space<vmem>>, vector<1x32xf32>
    %13 = vector.broadcast %12 : vector<1x32xf32> to vector<16x32xf32>
    %14 = arith.mulf %11, %13 : vector<16x32xf32>
    %15 = arith.truncf %14 : vector<16x32xf32> to vector<16x32xbf16>
    %c0_5 = arith.constant 0 : index
    %c0_6 = arith.constant 0 : index
    %16 = vector.load %arg4[%c0_5, %c0_6] : memref<32x32xbf16, #tpu.memory_space<vmem>>, vector<32x32xbf16>
    %cst_7 = arith.constant dense<0.000000e+00> : vector<16x32xf32>
    %17 = tpu.matmul %15, %16, %cst_7 {dimension_numbers = #tpu.dot_dimension_numbers<[1], [0], [0], [1], [0, 0, 1, 1], [], []>} : vector<16x32xbf16>, vector<32x32xbf16>, vector<16x32xf32> -> vector<16x32xf32>
    %c0_8 = arith.constant 0 : index
    %c0_9 = arith.constant 0 : index
    %18 = vector.load %arg6[%c0_8, %c0_9] : memref<16x32xf32, #tpu.memory_space<vmem>>, vector<16x32xf32>
    %19 = arith.addf %17, %18 : vector<16x32xf32>
    %c0_10 = arith.constant 0 : index
    %c0_11 = arith.constant 0 : index
    %20 = vector.load %arg7[%c0_10, %c0_11] : memref<16x32xf32, #tpu.memory_space<vmem>>, vector<16x32xf32>
    tpu.vector_store %arg7[%c0_10, %c0_11], %19 {strides = array<i32>} : memref<16x32xf32, #tpu.memory_space<vmem>>, vector<16x32xf32>,
    return
  }
  func.func @transform_0(%arg0: i32, %arg1: i32, %arg2: i32) -> (i32, i32) {
    %c0_i32 = arith.constant 0 : i32
    return %arg0, %arg2 : i32, i32
  }
  func.func @transform_1(%arg0: i32, %arg1: i32, %arg2: i32) -> (i32, i32) {
    %c0_i32 = arith.constant 0 : i32
    return %arg2, %arg1 : i32, i32
  }
  func.func @transform_2(%arg0: i32, %arg1: i32, %arg2: i32) -> (i32, i32) {
    %c0_i32 = arith.constant 0 : i32
    %c0_i32_0 = arith.constant 0 : i32
    return %c0_i32, %arg2 : i32, i32
  }
  func.func @transform_3(%arg0: i32, %arg1: i32, %arg2: i32) -> (i32, i32) {
    %c0_i32 = arith.constant 0 : i32
    return %arg0, %arg1 : i32, i32
  }
  func.func @transform_4(%arg0: i32, %arg1: i32, %arg2: i32) -> (i32, i32) {
    %c0_i32 = arith.constant 0 : i32
    return %arg0, %arg1 : i32, i32
  }
}

module attributes {stable_mosaic.version = 11 : i64} {
  func.func @kernel(%arg0: i32, %arg1: i32, %arg2: i32, %arg3: memref<16x32xf32, #tpu.memory_space<vmem>>, %arg4: memref<32x64xbf16, #tpu.memory_space<vmem>>, %arg5: memref<1x32xf32, #tpu.memory_space<vmem>>, %arg6: memref<1x64xf32, #tpu.memory_space<vmem>>, %arg7: memref<16x64xbf16, #tpu.memory_space<vmem>>) attributes {dimension_semantics = [#tpu.dimension_semantics<parallel>, #tpu.dimension_semantics<parallel>, #tpu.dimension_semantics<arbitrary>], iteration_bounds = array<i64: 1, 1, 1>, scalar_prefetch = 0 : i64, scratch_operands = 0 : i64, tpu.core_type = #tpu.core_type<tc>, window_params = [{transform_indices = @transform_0, window_bounds = array<i64: 16, 32>}, {transform_indices = @transform_1, window_bounds = array<i64: 32, 64>}, {transform_indices = @transform_2, window_bounds = array<i64: 1, 32>}, {transform_indices = @transform_3, window_bounds = array<i64: 1, 64>}, {transform_indices = @transform_4, window_bounds = array<i64: 16, 64>}]} {
    %c0 = arith.constant 0 : index
    %c0_0 = arith.constant 0 : index
    %0 = vector.load %arg3[%c0, %c0_0] : memref<16x32xf32, #tpu.memory_space<vmem>>, vector<16x32xf32>
    %1 = arith.mulf %0, %0 : vector<16x32xf32>
    %cst = arith.constant dense<0.000000e+00> : vector<16xf32>
    %2 = vector.multi_reduction <add>, %1, %cst [1] : vector<16x32xf32> to vector<16xf32>
    %3 = vector.shape_cast %2 : vector<16xf32> to vector<16x1xf32>
    %cst_1 = arith.constant 3.200000e+01 : f32
    %4 = vector.broadcast %cst_1 : f32 to vector<16x1xf32>
    %5 = arith.divf %3, %4 : vector<16x1xf32>
    %cst_2 = arith.constant 9.99999997E-7 : f32
    %6 = vector.broadcast %cst_2 : f32 to vector<16x1xf32>
    %7 = arith.addf %5, %6 : vector<16x1xf32>
    %8 = math.rsqrt %7 : vector<16x1xf32>
    %9 = vector.broadcast %8 : vector<16x1xf32> to vector<16x32xf32>
    %10 = arith.mulf %0, %9 : vector<16x32xf32>
    %c0_3 = arith.constant 0 : index
    %c0_4 = arith.constant 0 : index
    %11 = vector.load %arg5[%c0_3, %c0_4] : memref<1x32xf32, #tpu.memory_space<vmem>>, vector<1x32xf32>
    %12 = vector.broadcast %11 : vector<1x32xf32> to vector<16x32xf32>
    %13 = arith.mulf %10, %12 : vector<16x32xf32>
    %14 = arith.truncf %13 : vector<16x32xf32> to vector<16x32xbf16>
    %c0_5 = arith.constant 0 : index
    %c0_6 = arith.constant 0 : index
    %15 = vector.load %arg4[%c0_5, %c0_6] : memref<32x64xbf16, #tpu.memory_space<vmem>>, vector<32x64xbf16>
    %cst_7 = arith.constant dense<0.000000e+00> : vector<16x64xf32>
    %16 = tpu.matmul %14, %15, %cst_7 {dimension_numbers = #tpu.dot_dimension_numbers<[1], [0], [0], [1], [0, 0, 1, 1], [], []>} : vector<16x32xbf16>, vector<32x64xbf16>, vector<16x64xf32> -> vector<16x64xf32>
    %c0_8 = arith.constant 0 : index
    %c0_9 = arith.constant 0 : index
    %17 = vector.load %arg6[%c0_8, %c0_9] : memref<1x64xf32, #tpu.memory_space<vmem>>, vector<1x64xf32>
    %18 = vector.broadcast %17 : vector<1x64xf32> to vector<16x64xf32>
    %19 = arith.addf %16, %18 : vector<16x64xf32>
    %20 = arith.truncf %19 : vector<16x64xf32> to vector<16x64xbf16>
    %c0_10 = arith.constant 0 : index
    %c0_11 = arith.constant 0 : index
    %21 = vector.load %arg7[%c0_10, %c0_11] : memref<16x64xbf16, #tpu.memory_space<vmem>>, vector<16x64xbf16>
    tpu.vector_store %arg7[%c0_10, %c0_11], %20 {strides = array<i32>} : memref<16x64xbf16, #tpu.memory_space<vmem>>, vector<16x64xbf16>,
    return
  }
  func.func @transform_0(%arg0: i32, %arg1: i32, %arg2: i32) -> (i32, i32) {
    %c0_i32 = arith.constant 0 : i32
    return %arg0, %arg2 : i32, i32
  }
  func.func @transform_1(%arg0: i32, %arg1: i32, %arg2: i32) -> (i32, i32) {
    %c0_i32 = arith.constant 0 : i32
    return %arg2, %arg1 : i32, i32
  }
  func.func @transform_2(%arg0: i32, %arg1: i32, %arg2: i32) -> (i32, i32) {
    %c0_i32 = arith.constant 0 : i32
    %c0_i32_0 = arith.constant 0 : i32
    return %c0_i32, %arg2 : i32, i32
  }
  func.func @transform_3(%arg0: i32, %arg1: i32, %arg2: i32) -> (i32, i32) {
    %c0_i32 = arith.constant 0 : i32
    %c0_i32_0 = arith.constant 0 : i32
    return %c0_i32, %arg1 : i32, i32
  }
  func.func @transform_4(%arg0: i32, %arg1: i32, %arg2: i32) -> (i32, i32) {
    %c0_i32 = arith.constant 0 : i32
    return %arg0, %arg1 : i32, i32
  }
}

module attributes {stable_mosaic.version = 11 : i64} {
  func.func @kernel(%arg0: i32, %arg1: i32, %arg2: i32, %arg3: memref<16x170xbf16, #tpu.memory_space<vmem>>, %arg4: memref<170x64xbf16, #tpu.memory_space<vmem>>, %arg5: memref<16x64xbf16, #tpu.memory_space<vmem>>) attributes {dimension_semantics = [#tpu.dimension_semantics<parallel>, #tpu.dimension_semantics<parallel>, #tpu.dimension_semantics<arbitrary>], iteration_bounds = array<i64: 1, 1, 1>, scalar_prefetch = 0 : i64, scratch_operands = 0 : i64, tpu.core_type = #tpu.core_type<tc>, window_params = [{transform_indices = @transform_0, window_bounds = array<i64: 16, 170>}, {transform_indices = @transform_1, window_bounds = array<i64: 170, 64>}, {transform_indices = @transform_2, window_bounds = array<i64: 16, 64>}]} {
    %c0 = arith.constant 0 : index
    %c0_0 = arith.constant 0 : index
    %0 = vector.load %arg3[%c0, %c0_0] : memref<16x170xbf16, #tpu.memory_space<vmem>>, vector<16x170xbf16>
    %c0_1 = arith.constant 0 : index
    %c0_2 = arith.constant 0 : index
    %1 = vector.load %arg4[%c0_1, %c0_2] : memref<170x64xbf16, #tpu.memory_space<vmem>>, vector<170x64xbf16>
    %cst = arith.constant dense<0.000000e+00> : vector<16x64xf32>
    %2 = tpu.matmul %0, %1, %cst {dimension_numbers = #tpu.dot_dimension_numbers<[1], [0], [0], [1], [0, 0, 1, 1], [], []>} : vector<16x170xbf16>, vector<170x64xbf16>, vector<16x64xf32> -> vector<16x64xf32>
    %3 = arith.truncf %2 : vector<16x64xf32> to vector<16x64xbf16>
    %c0_3 = arith.constant 0 : index
    %c0_4 = arith.constant 0 : index
    %4 = vector.load %arg5[%c0_3, %c0_4] : memref<16x64xbf16, #tpu.memory_space<vmem>>, vector<16x64xbf16>
    tpu.vector_store %arg5[%c0_3, %c0_4], %3 {strides = array<i32>} : memref<16x64xbf16, #tpu.memory_space<vmem>>, vector<16x64xbf16>,
    return
  }
  func.func @transform_0(%arg0: i32, %arg1: i32, %arg2: i32) -> (i32, i32) {
    %c0_i32 = arith.constant 0 : i32
    return %arg0, %arg2 : i32, i32
  }
  func.func @transform_1(%arg0: i32, %arg1: i32, %arg2: i32) -> (i32, i32) {
    %c0_i32 = arith.constant 0 : i32
    return %arg2, %arg1 : i32, i32
  }
  func.func @transform_2(%arg0: i32, %arg1: i32, %arg2: i32) -> (i32, i32) {
    %c0_i32 = arith.constant 0 : i32
    return %arg0, %arg1 : i32, i32
  }
}

module attributes {stable_mosaic.version = 11 : i64} {
  func.func @kernel(%arg0: i32, %arg1: i32, %arg2: i32, %arg3: memref<16x32xf32, #tpu.memory_space<vmem>>, %arg4: memref<32x96xbf16, #tpu.memory_space<vmem>>, %arg5: memref<16x96xbf16, #tpu.memory_space<vmem>>) attributes {dimension_semantics = [#tpu.dimension_semantics<parallel>, #tpu.dimension_semantics<parallel>, #tpu.dimension_semantics<arbitrary>], iteration_bounds = array<i64: 1, 1, 1>, scalar_prefetch = 0 : i64, scratch_operands = 0 : i64, tpu.core_type = #tpu.core_type<tc>, window_params = [{transform_indices = @transform_0, window_bounds = array<i64: 16, 32>}, {transform_indices = @transform_1, window_bounds = array<i64: 32, 96>}, {transform_indices = @transform_2, window_bounds = array<i64: 16, 96>}]} {
    %c0 = arith.constant 0 : index
    %c0_0 = arith.constant 0 : index
    %0 = vector.load %arg3[%c0, %c0_0] : memref<16x32xf32, #tpu.memory_space<vmem>>, vector<16x32xf32>
    %1 = arith.truncf %0 : vector<16x32xf32> to vector<16x32xbf16>
    %c0_1 = arith.constant 0 : index
    %c0_2 = arith.constant 0 : index
    %2 = vector.load %arg4[%c0_1, %c0_2] : memref<32x96xbf16, #tpu.memory_space<vmem>>, vector<32x96xbf16>
    %cst = arith.constant dense<0.000000e+00> : vector<16x96xf32>
    %3 = tpu.matmul %1, %2, %cst {dimension_numbers = #tpu.dot_dimension_numbers<[1], [0], [0], [1], [0, 0, 1, 1], [], []>} : vector<16x32xbf16>, vector<32x96xbf16>, vector<16x96xf32> -> vector<16x96xf32>
    %4 = arith.truncf %3 : vector<16x96xf32> to vector<16x96xbf16>
    %c0_3 = arith.constant 0 : index
    %c0_4 = arith.constant 0 : index
    %5 = vector.load %arg5[%c0_3, %c0_4] : memref<16x96xbf16, #tpu.memory_space<vmem>>, vector<16x96xbf16>
    tpu.vector_store %arg5[%c0_3, %c0_4], %4 {strides = array<i32>} : memref<16x96xbf16, #tpu.memory_space<vmem>>, vector<16x96xbf16>,
    return
  }
  func.func @transform_0(%arg0: i32, %arg1: i32, %arg2: i32) -> (i32, i32) {
    %c0_i32 = arith.constant 0 : i32
    return %arg0, %arg2 : i32, i32
  }
  func.func @transform_1(%arg0: i32, %arg1: i32, %arg2: i32) -> (i32, i32) {
    %c0_i32 = arith.constant 0 : i32
    return %arg2, %arg1 : i32, i32
  }
  func.func @transform_2(%arg0: i32, %arg1: i32, %arg2: i32) -> (i32, i32) {
    %c0_i32 = arith.constant 0 : i32
    return %arg0, %arg1 : i32, i32
  }
}

module attributes {stable_mosaic.version = 11 : i64} {
  func.func @kernel(%arg0: i32, %arg1: i32, %arg2: i32, %arg3: memref<16x64xbf16, #tpu.memory_space<vmem>>, %arg4: memref<64x32xbf16, #tpu.memory_space<vmem>>, %arg5: memref<1x32xf32, #tpu.memory_space<vmem>>, %arg6: memref<16x32xf32, #tpu.memory_space<vmem>>, %arg7: memref<16x32xf32, #tpu.memory_space<vmem>>) attributes {dimension_semantics = [#tpu.dimension_semantics<parallel>, #tpu.dimension_semantics<parallel>, #tpu.dimension_semantics<arbitrary>], iteration_bounds = array<i64: 1, 1, 1>, scalar_prefetch = 0 : i64, scratch_operands = 0 : i64, tpu.core_type = #tpu.core_type<tc>, window_params = [{transform_indices = @transform_0, window_bounds = array<i64: 16, 64>}, {transform_indices = @transform_1, window_bounds = array<i64: 64, 32>}, {transform_indices = @transform_2, window_bounds = array<i64: 1, 32>}, {transform_indices = @transform_3, window_bounds = array<i64: 16, 32>}, {transform_indices = @transform_4, window_bounds = array<i64: 16, 32>}]} {
    %c0 = arith.constant 0 : index
    %c0_0 = arith.constant 0 : index
    %0 = vector.load %arg3[%c0, %c0_0] : memref<16x64xbf16, #tpu.memory_space<vmem>>, vector<16x64xbf16>
    %c0_1 = arith.constant 0 : index
    %c0_2 = arith.constant 0 : index
    %1 = vector.load %arg4[%c0_1, %c0_2] : memref<64x32xbf16, #tpu.memory_space<vmem>>, vector<64x32xbf16>
    %cst = arith.constant dense<0.000000e+00> : vector<16x32xf32>
    %2 = tpu.matmul %0, %1, %cst {dimension_numbers = #tpu.dot_dimension_numbers<[1], [0], [0], [1], [0, 0, 1, 1], [], []>} : vector<16x64xbf16>, vector<64x32xbf16>, vector<16x32xf32> -> vector<16x32xf32>
    %c0_3 = arith.constant 0 : index
    %c0_4 = arith.constant 0 : index
    %3 = vector.load %arg5[%c0_3, %c0_4] : memref<1x32xf32, #tpu.memory_space<vmem>>, vector<1x32xf32>
    %4 = vector.broadcast %3 : vector<1x32xf32> to vector<16x32xf32>
    %5 = arith.addf %2, %4 : vector<16x32xf32>
    %c0_5 = arith.constant 0 : index
    %c0_6 = arith.constant 0 : index
    %6 = vector.load %arg6[%c0_5, %c0_6] : memref<16x32xf32, #tpu.memory_space<vmem>>, vector<16x32xf32>
    %7 = arith.addf %5, %6 : vector<16x32xf32>
    %c0_7 = arith.constant 0 : index
    %c0_8 = arith.constant 0 : index
    %8 = vector.load %arg7[%c0_7, %c0_8] : memref<16x32xf32, #tpu.memory_space<vmem>>, vector<16x32xf32>
    tpu.vector_store %arg7[%c0_7, %c0_8], %7 {strides = array<i32>} : memref<16x32xf32, #tpu.memory_space<vmem>>, vector<16x32xf32>,
    return
  }
  func.func @transform_0(%arg0: i32, %arg1: i32, %arg2: i32) -> (i32, i32) {
    %c0_i32 = arith.constant 0 : i32
    return %arg0, %arg2 : i32, i32
  }
  func.func @transform_1(%arg0: i32, %arg1: i32, %arg2: i32) -> (i32, i32) {
    %c0_i32 = arith.constant 0 : i32
    return %arg2, %arg1 : i32, i32
  }
  func.func @transform_2(%arg0: i32, %arg1: i32, %arg2: i32) -> (i32, i32) {
    %c0_i32 = arith.constant 0 : i32
    %c0_i32_0 = arith.constant 0 : i32
    return %c0_i32, %arg1 : i32, i32
  }
  func.func @transform_3(%arg0: i32, %arg1: i32, %arg2: i32) -> (i32, i32) {
    %c0_i32 = arith.constant 0 : i32
    return %arg0, %arg1 : i32, i32
  }
  func.func @transform_4(%arg0: i32, %arg1: i32, %arg2: i32) -> (i32, i32) {
    %c0_i32 = arith.constant 0 : i32
    return %arg0, %arg1 : i32, i32
  }
}

module attributes {stable_mosaic.version = 11 : i64} {
  func.func @kernel(%arg0: i32, %arg1: i32, %arg2: i32, %arg3: memref<16x32xf32, #tpu.memory_space<vmem>>, %arg4: memref<32x96xbf16, #tpu.memory_space<vmem>>, %arg5: memref<1x32xf32, #tpu.memory_space<vmem>>, %arg6: memref<16x96xbf16, #tpu.memory_space<vmem>>) attributes {dimension_semantics = [#tpu.dimension_semantics<parallel>, #tpu.dimension_semantics<parallel>, #tpu.dimension_semantics<arbitrary>], iteration_bounds = array<i64: 1, 1, 1>, scalar_prefetch = 0 : i64, scratch_operands = 0 : i64, tpu.core_type = #tpu.core_type<tc>, window_params = [{transform_indices = @transform_0, window_bounds = array<i64: 16, 32>}, {transform_indices = @transform_1, window_bounds = array<i64: 32, 96>}, {transform_indices = @transform_2, window_bounds = array<i64: 1, 32>}, {transform_indices = @transform_3, window_bounds = array<i64: 16, 96>}]} {
    %c0 = arith.constant 0 : index
    %c0_0 = arith.constant 0 : index
    %0 = vector.load %arg3[%c0, %c0_0] : memref<16x32xf32, #tpu.memory_space<vmem>>, vector<16x32xf32>
    %1 = arith.mulf %0, %0 : vector<16x32xf32>
    %cst = arith.constant dense<0.000000e+00> : vector<16xf32>
    %2 = vector.multi_reduction <add>, %1, %cst [1] : vector<16x32xf32> to vector<16xf32>
    %3 = vector.shape_cast %2 : vector<16xf32> to vector<16x1xf32>
    %cst_1 = arith.constant 3.200000e+01 : f32
    %4 = vector.broadcast %cst_1 : f32 to vector<16x1xf32>
    %5 = arith.divf %3, %4 : vector<16x1xf32>
    %cst_2 = arith.constant 9.99999997E-7 : f32
    %6 = vector.broadcast %cst_2 : f32 to vector<16x1xf32>
    %7 = arith.addf %5, %6 : vector<16x1xf32>
    %8 = math.rsqrt %7 : vector<16x1xf32>
    %9 = vector.broadcast %8 : vector<16x1xf32> to vector<16x32xf32>
    %10 = arith.mulf %0, %9 : vector<16x32xf32>
    %c0_3 = arith.constant 0 : index
    %c0_4 = arith.constant 0 : index
    %11 = vector.load %arg5[%c0_3, %c0_4] : memref<1x32xf32, #tpu.memory_space<vmem>>, vector<1x32xf32>
    %12 = vector.broadcast %11 : vector<1x32xf32> to vector<16x32xf32>
    %13 = arith.mulf %10, %12 : vector<16x32xf32>
    %14 = arith.truncf %13 : vector<16x32xf32> to vector<16x32xbf16>
    %c0_5 = arith.constant 0 : index
    %c0_6 = arith.constant 0 : index
    %15 = vector.load %arg4[%c0_5, %c0_6] : memref<32x96xbf16, #tpu.memory_space<vmem>>, vector<32x96xbf16>
    %cst_7 = arith.constant dense<0.000000e+00> : vector<16x96xf32>
    %16 = tpu.matmul %14, %15, %cst_7 {dimension_numbers = #tpu.dot_dimension_numbers<[1], [0], [0], [1], [0, 0, 1, 1], [], []>} : vector<16x32xbf16>, vector<32x96xbf16>, vector<16x96xf32> -> vector<16x96xf32>
    %17 = arith.truncf %16 : vector<16x96xf32> to vector<16x96xbf16>
    %c0_8 = arith.constant 0 : index
    %c0_9 = arith.constant 0 : index
    %18 = vector.load %arg6[%c0_8, %c0_9] : memref<16x96xbf16, #tpu.memory_space<vmem>>, vector<16x96xbf16>
    tpu.vector_store %arg6[%c0_8, %c0_9], %17 {strides = array<i32>} : memref<16x96xbf16, #tpu.memory_space<vmem>>, vector<16x96xbf16>,
    return
  }
  func.func @transform_0(%arg0: i32, %arg1: i32, %arg2: i32) -> (i32, i32) {
    %c0_i32 = arith.constant 0 : i32
    return %arg0, %arg2 : i32, i32
  }
  func.func @transform_1(%arg0: i32, %arg1: i32, %arg2: i32) -> (i32, i32) {
    %c0_i32 = arith.constant 0 : i32
    return %arg2, %arg1 : i32, i32
  }
  func.func @transform_2(%arg0: i32, %arg1: i32, %arg2: i32) -> (i32, i32) {
    %c0_i32 = arith.constant 0 : i32
    %c0_i32_0 = arith.constant 0 : i32
    return %c0_i32, %arg2 : i32, i32
  }
  func.func @transform_3(%arg0: i32, %arg1: i32, %arg2: i32) -> (i32, i32) {
    %c0_i32 = arith.constant 0 : i32
    return %arg0, %arg1 : i32, i32
  }
}

module attributes {stable_mosaic.version = 11 : i64} {
  func.func @kernel(%arg0: i32, %arg1: i32, %arg2: i32, %arg3: memref<16x32xf32, #tpu.memory_space<vmem>>, %arg4: memref<32x64xbf16, #tpu.memory_space<vmem>>, %arg5: memref<1x32xf32, #tpu.memory_space<vmem>>, %arg6: memref<16x64xbf16, #tpu.memory_space<vmem>>) attributes {dimension_semantics = [#tpu.dimension_semantics<parallel>, #tpu.dimension_semantics<parallel>, #tpu.dimension_semantics<arbitrary>], iteration_bounds = array<i64: 1, 1, 1>, scalar_prefetch = 0 : i64, scratch_operands = 0 : i64, tpu.core_type = #tpu.core_type<tc>, window_params = [{transform_indices = @transform_0, window_bounds = array<i64: 16, 32>}, {transform_indices = @transform_1, window_bounds = array<i64: 32, 64>}, {transform_indices = @transform_2, window_bounds = array<i64: 1, 32>}, {transform_indices = @transform_3, window_bounds = array<i64: 16, 64>}]} {
    %c0 = arith.constant 0 : index
    %c0_0 = arith.constant 0 : index
    %0 = vector.load %arg3[%c0, %c0_0] : memref<16x32xf32, #tpu.memory_space<vmem>>, vector<16x32xf32>
    %1 = arith.mulf %0, %0 : vector<16x32xf32>
    %cst = arith.constant dense<0.000000e+00> : vector<16xf32>
    %2 = vector.multi_reduction <add>, %1, %cst [1] : vector<16x32xf32> to vector<16xf32>
    %3 = vector.shape_cast %2 : vector<16xf32> to vector<16x1xf32>
    %cst_1 = arith.constant 3.200000e+01 : f32
    %4 = vector.broadcast %cst_1 : f32 to vector<16x1xf32>
    %5 = arith.divf %3, %4 : vector<16x1xf32>
    %cst_2 = arith.constant 9.99999997E-7 : f32
    %6 = vector.broadcast %cst_2 : f32 to vector<16x1xf32>
    %7 = arith.addf %5, %6 : vector<16x1xf32>
    %8 = math.rsqrt %7 : vector<16x1xf32>
    %9 = vector.broadcast %8 : vector<16x1xf32> to vector<16x32xf32>
    %10 = arith.mulf %0, %9 : vector<16x32xf32>
    %c0_3 = arith.constant 0 : index
    %c0_4 = arith.constant 0 : index
    %11 = vector.load %arg5[%c0_3, %c0_4] : memref<1x32xf32, #tpu.memory_space<vmem>>, vector<1x32xf32>
    %12 = vector.broadcast %11 : vector<1x32xf32> to vector<16x32xf32>
    %13 = arith.mulf %10, %12 : vector<16x32xf32>
    %14 = arith.truncf %13 : vector<16x32xf32> to vector<16x32xbf16>
    %c0_5 = arith.constant 0 : index
    %c0_6 = arith.constant 0 : index
    %15 = vector.load %arg4[%c0_5, %c0_6] : memref<32x64xbf16, #tpu.memory_space<vmem>>, vector<32x64xbf16>
    %cst_7 = arith.constant dense<0.000000e+00> : vector<16x64xf32>
    %16 = tpu.matmul %14, %15, %cst_7 {dimension_numbers = #tpu.dot_dimension_numbers<[1], [0], [0], [1], [0, 0, 1, 1], [], []>} : vector<16x32xbf16>, vector<32x64xbf16>, vector<16x64xf32> -> vector<16x64xf32>
    %17 = arith.truncf %16 : vector<16x64xf32> to vector<16x64xbf16>
    %c0_8 = arith.constant 0 : index
    %c0_9 = arith.constant 0 : index
    %18 = vector.load %arg6[%c0_8, %c0_9] : memref<16x64xbf16, #tpu.memory_space<vmem>>, vector<16x64xbf16>
    tpu.vector_store %arg6[%c0_8, %c0_9], %17 {strides = array<i32>} : memref<16x64xbf16, #tpu.memory_space<vmem>>, vector<16x64xbf16>,
    return
  }
  func.func @transform_0(%arg0: i32, %arg1: i32, %arg2: i32) -> (i32, i32) {
    %c0_i32 = arith.constant 0 : i32
    return %arg0, %arg2 : i32, i32
  }
  func.func @transform_1(%arg0: i32, %arg1: i32, %arg2: i32) -> (i32, i32) {
    %c0_i32 = arith.constant 0 : i32
    return %arg2, %arg1 : i32, i32
  }
  func.func @transform_2(%arg0: i32, %arg1: i32, %arg2: i32) -> (i32, i32) {
    %c0_i32 = arith.constant 0 : i32
    %c0_i32_0 = arith.constant 0 : i32
    return %c0_i32, %arg2 : i32, i32
  }
  func.func @transform_3(%arg0: i32, %arg1: i32, %arg2: i32) -> (i32, i32) {
    %c0_i32 = arith.constant 0 : i32
    return %arg0, %arg1 : i32, i32
  }
}

module attributes {stable_mosaic.version = 11 : i64} {
  func.func @kernel(%arg0: i32, %arg1: i32, %arg2: memref<4xf32, #tpu.memory_space<smem>>, %arg3: memref<1x8x64xbf16, #tpu.memory_space<vmem>>, %arg4: memref<1x8x96xbf16, #tpu.memory_space<vmem>>, %arg5: memref<1x8x32xbf16, #tpu.memory_space<vmem>>) attributes {dimension_semantics = [#tpu.dimension_semantics<parallel>, #tpu.dimension_semantics<parallel>], iteration_bounds = array<i64: 2, 1>, scalar_prefetch = 0 : i64, scratch_operands = 0 : i64, tpu.core_type = #tpu.core_type<tc>, window_params = [{transform_indices = @transform_0, window_bounds = array<i64: 4>}, {transform_indices = @transform_1, window_bounds = array<i64: 1, 8, 64>}, {transform_indices = @transform_2, window_bounds = array<i64: 1, 8, 96>}, {transform_indices = @transform_3, window_bounds = array<i64: 1, 8, 32>}]} {
    %0 = tpu.iota {dimensions = array<i32: 0>} : vector<8x8xi32>
    %c8_i32 = arith.constant 8 : i32
    %1 = arith.muli %arg1, %c8_i32 : i32
    %2 = vector.broadcast %1 : i32 to vector<8x8xi32>
    %3 = arith.addi %0, %2 : vector<8x8xi32>
    %4 = tpu.iota {dimensions = array<i32: 1>} : vector<8x8xi32>
    %c0 = arith.constant 0 : index
    %c0_0 = arith.constant 0 : index
    %c0_1 = arith.constant 0 : index
    %5 = vector.load %arg3[%c0, %c0_0, %c0_1] : memref<1x8x64xbf16, #tpu.memory_space<vmem>>, vector<1x8x8xbf16>
    %6 = vector.shape_cast %5 : vector<1x8x8xbf16> to vector<8x8xbf16>
    %c0_2 = arith.constant 0 : index
    %c0_3 = arith.constant 0 : index
    %c8 = arith.constant 8 : index
    %7 = vector.load %arg3[%c0_2, %c0_3, %c8] : memref<1x8x64xbf16, #tpu.memory_space<vmem>>, vector<1x8x8xbf16>
    %8 = vector.shape_cast %7 : vector<1x8x8xbf16> to vector<8x8xbf16>
    %c0_4 = arith.constant 0 : index
    %c0_5 = arith.constant 0 : index
    %c0_6 = arith.constant 0 : index
    %9 = vector.load %arg4[%c0_4, %c0_5, %c0_6] : memref<1x8x96xbf16, #tpu.memory_space<vmem>>, vector<1x8x8xbf16>
    %10 = vector.shape_cast %9 : vector<1x8x8xbf16> to vector<8x8xbf16>
    %c0_7 = arith.constant 0 : index
    %c0_8 = arith.constant 0 : index
    %c8_9 = arith.constant 8 : index
    %11 = vector.load %arg4[%c0_7, %c0_8, %c8_9] : memref<1x8x96xbf16, #tpu.memory_space<vmem>>, vector<1x8x8xbf16>
    %12 = vector.shape_cast %11 : vector<1x8x8xbf16> to vector<8x8xbf16>
    %c0_10 = arith.constant 0 : index
    %c0_11 = arith.constant 0 : index
    %c64 = arith.constant 64 : index
    %13 = vector.load %arg4[%c0_10, %c0_11, %c64] : memref<1x8x96xbf16, #tpu.memory_space<vmem>>, vector<1x8x8xbf16>
    %14 = vector.shape_cast %13 : vector<1x8x8xbf16> to vector<8x8xbf16>
    %cst = arith.constant dense<0.000000e+00> : vector<8x8xf32>
    %15 = tpu.matmul %6, %10, %cst {dimension_numbers = #tpu.dot_dimension_numbers<[1], [1], [0], [0], [0, 0, 1, 0], [], []>} : vector<8x8xbf16>, vector<8x8xbf16>, vector<8x8xf32> -> vector<8x8xf32>
    %cst_12 = arith.constant 0.353553385 : f32
    %16 = vector.broadcast %cst_12 : f32 to vector<8x8xf32>
    %17 = arith.mulf %15, %16 : vector<8x8xf32>
    %cst_13 = arith.constant dense<0.000000e+00> : vector<8x8xf32>
    %18 = tpu.matmul %8, %12, %cst_13 {dimension_numbers = #tpu.dot_dimension_numbers<[1], [1], [0], [0], [0, 0, 1, 0], [], []>} : vector<8x8xbf16>, vector<8x8xbf16>, vector<8x8xf32> -> vector<8x8xf32>
    %cst_14 = arith.constant 0.353553385 : f32
    %19 = vector.broadcast %cst_14 : f32 to vector<8x8xf32>
    %20 = arith.mulf %18, %19 : vector<8x8xf32>
    %cst_15 = arith.constant dense<0xFF800000> : vector<8xf32>
    %21 = vector.multi_reduction <maximumf>, %17, %cst_15 [1] : vector<8x8xf32> to vector<8xf32>
    %22 = vector.shape_cast %21 : vector<8xf32> to vector<8x1xf32>
    %23 = vector.broadcast %22 : vector<8x1xf32> to vector<8x8xf32>
    %24 = arith.subf %17, %23 : vector<8x8xf32>
    %25 = math.exp %24 : vector<8x8xf32>
    %cst_16 = arith.constant dense<0.000000e+00> : vector<8xf32>
    %26 = vector.multi_reduction <add>, %25, %cst_16 [1] : vector<8x8xf32> to vector<8xf32>
    %27 = vector.shape_cast %26 : vector<8xf32> to vector<8x1xf32>
    %28 = tpu.reciprocal %27 {approx = true} : vector<8x1xf32> -> vector<8x1xf32>
    %29 = vector.broadcast %28 : vector<8x1xf32> to vector<8x8xf32>
    %30 = arith.mulf %25, %29 : vector<8x8xf32>
    %cst_17 = arith.constant dense<0xFF800000> : vector<8xf32>
    %31 = vector.multi_reduction <maximumf>, %20, %cst_17 [1] : vector<8x8xf32> to vector<8xf32>
    %32 = vector.shape_cast %31 : vector<8xf32> to vector<8x1xf32>
    %33 = vector.broadcast %32 : vector<8x1xf32> to vector<8x8xf32>
    %34 = arith.subf %20, %33 : vector<8x8xf32>
    %35 = math.exp %34 : vector<8x8xf32>
    %cst_18 = arith.constant dense<0.000000e+00> : vector<8xf32>
    %36 = vector.multi_reduction <add>, %35, %cst_18 [1] : vector<8x8xf32> to vector<8xf32>
    %37 = vector.shape_cast %36 : vector<8xf32> to vector<8x1xf32>
    %38 = tpu.reciprocal %37 {approx = true} : vector<8x1xf32> -> vector<8x1xf32>
    %39 = vector.broadcast %38 : vector<8x1xf32> to vector<8x8xf32>
    %40 = arith.mulf %35, %39 : vector<8x8xf32>
    %c0_19 = arith.constant 0 : index
    %41 = memref.load %arg2[%c0_19] : memref<4xf32, #tpu.memory_space<smem>>
    %42 = vector.broadcast %41 : f32 to vector<8x8xf32>
    %43 = arith.mulf %42, %40 : vector<8x8xf32>
    %44 = arith.subf %30, %43 : vector<8x8xf32>
    %45 = arith.cmpi sgt, %4, %3 : vector<8x8xi32>
    %cst_20 = arith.constant 0xFF800000 : f32
    %46 = vector.broadcast %cst_20 : f32 to vector<8x8xf32>
    %47 = arith.select %45, %46, %44 : vector<8x8xi1>, vector<8x8xf32>
    %cst_21 = arith.constant dense<0xFF800000> : vector<8xf32>
    %48 = vector.multi_reduction <maximumf>, %47, %cst_21 [1] : vector<8x8xf32> to vector<8xf32>
    %49 = vector.shape_cast %48 : vector<8xf32> to vector<8x1xf32>
    %50 = vector.broadcast %49 : vector<8x1xf32> to vector<8x8xf32>
    %51 = arith.subf %47, %50 : vector<8x8xf32>
    %52 = math.exp %51 : vector<8x8xf32>
    %cst_22 = arith.constant dense<0.000000e+00> : vector<8xf32>
    %53 = vector.multi_reduction <add>, %52, %cst_22 [1] : vector<8x8xf32> to vector<8xf32>
    %54 = vector.shape_cast %53 : vector<8xf32> to vector<8x1xf32>
    %55 = tpu.reciprocal %54 {approx = true} : vector<8x1xf32> -> vector<8x1xf32>
    %56 = vector.broadcast %55 : vector<8x1xf32> to vector<8x8xf32>
    %57 = arith.mulf %52, %56 : vector<8x8xf32>
    %58 = arith.truncf %57 : vector<8x8xf32> to vector<8x8xbf16>
    %cst_23 = arith.constant dense<0.000000e+00> : vector<8x8xf32>
    %59 = tpu.matmul %58, %14, %cst_23 {dimension_numbers = #tpu.dot_dimension_numbers<[1], [0], [0], [1], [0, 0, 1, 1], [], []>} : vector<8x8xbf16>, vector<8x8xbf16>, vector<8x8xf32> -> vector<8x8xf32>
    %c0_24 = arith.constant 0 : index
    %c0_25 = arith.constant 0 : index
    %c16 = arith.constant 16 : index
    %60 = vector.load %arg3[%c0_24, %c0_25, %c16] : memref<1x8x64xbf16, #tpu.memory_space<vmem>>, vector<1x8x8xbf16>
    %61 = vector.shape_cast %60 : vector<1x8x8xbf16> to vector<8x8xbf16>
    %c0_26 = arith.constant 0 : index
    %c0_27 = arith.constant 0 : index
    %c24 = arith.constant 24 : index
    %62 = vector.load %arg3[%c0_26, %c0_27, %c24] : memref<1x8x64xbf16, #tpu.memory_space<vmem>>, vector<1x8x8xbf16>
    %63 = vector.shape_cast %62 : vector<1x8x8xbf16> to vector<8x8xbf16>
    %c0_28 = arith.constant 0 : index
    %c0_29 = arith.constant 0 : index
    %c16_30 = arith.constant 16 : index
    %64 = vector.load %arg4[%c0_28, %c0_29, %c16_30] : memref<1x8x96xbf16, #tpu.memory_space<vmem>>, vector<1x8x8xbf16>
    %65 = vector.shape_cast %64 : vector<1x8x8xbf16> to vector<8x8xbf16>
    %c0_31 = arith.constant 0 : index
    %c0_32 = arith.constant 0 : index
    %c24_33 = arith.constant 24 : index
    %66 = vector.load %arg4[%c0_31, %c0_32, %c24_33] : memref<1x8x96xbf16, #tpu.memory_space<vmem>>, vector<1x8x8xbf16>
    %67 = vector.shape_cast %66 : vector<1x8x8xbf16> to vector<8x8xbf16>
    %c0_34 = arith.constant 0 : index
    %c0_35 = arith.constant 0 : index
    %c72 = arith.constant 72 : index
    %68 = vector.load %arg4[%c0_34, %c0_35, %c72] : memref<1x8x96xbf16, #tpu.memory_space<vmem>>, vector<1x8x8xbf16>
    %69 = vector.shape_cast %68 : vector<1x8x8xbf16> to vector<8x8xbf16>
    %cst_36 = arith.constant dense<0.000000e+00> : vector<8x8xf32>
    %70 = tpu.matmul %61, %65, %cst_36 {dimension_numbers = #tpu.dot_dimension_numbers<[1], [1], [0], [0], [0, 0, 1, 0], [], []>} : vector<8x8xbf16>, vector<8x8xbf16>, vector<8x8xf32> -> vector<8x8xf32>
    %cst_37 = arith.constant 0.353553385 : f32
    %71 = vector.broadcast %cst_37 : f32 to vector<8x8xf32>
    %72 = arith.mulf %70, %71 : vector<8x8xf32>
    %cst_38 = arith.constant dense<0.000000e+00> : vector<8x8xf32>
    %73 = tpu.matmul %63, %67, %cst_38 {dimension_numbers = #tpu.dot_dimension_numbers<[1], [1], [0], [0], [0, 0, 1, 0], [], []>} : vector<8x8xbf16>, vector<8x8xbf16>, vector<8x8xf32> -> vector<8x8xf32>
    %cst_39 = arith.constant 0.353553385 : f32
    %74 = vector.broadcast %cst_39 : f32 to vector<8x8xf32>
    %75 = arith.mulf %73, %74 : vector<8x8xf32>
    %cst_40 = arith.constant dense<0xFF800000> : vector<8xf32>
    %76 = vector.multi_reduction <maximumf>, %72, %cst_40 [1] : vector<8x8xf32> to vector<8xf32>
    %77 = vector.shape_cast %76 : vector<8xf32> to vector<8x1xf32>
    %78 = vector.broadcast %77 : vector<8x1xf32> to vector<8x8xf32>
    %79 = arith.subf %72, %78 : vector<8x8xf32>
    %80 = math.exp %79 : vector<8x8xf32>
    %cst_41 = arith.constant dense<0.000000e+00> : vector<8xf32>
    %81 = vector.multi_reduction <add>, %80, %cst_41 [1] : vector<8x8xf32> to vector<8xf32>
    %82 = vector.shape_cast %81 : vector<8xf32> to vector<8x1xf32>
    %83 = tpu.reciprocal %82 {approx = true} : vector<8x1xf32> -> vector<8x1xf32>
    %84 = vector.broadcast %83 : vector<8x1xf32> to vector<8x8xf32>
    %85 = arith.mulf %80, %84 : vector<8x8xf32>
    %cst_42 = arith.constant dense<0xFF800000> : vector<8xf32>
    %86 = vector.multi_reduction <maximumf>, %75, %cst_42 [1] : vector<8x8xf32> to vector<8xf32>
    %87 = vector.shape_cast %86 : vector<8xf32> to vector<8x1xf32>
    %88 = vector.broadcast %87 : vector<8x1xf32> to vector<8x8xf32>
    %89 = arith.subf %75, %88 : vector<8x8xf32>
    %90 = math.exp %89 : vector<8x8xf32>
    %cst_43 = arith.constant dense<0.000000e+00> : vector<8xf32>
    %91 = vector.multi_reduction <add>, %90, %cst_43 [1] : vector<8x8xf32> to vector<8xf32>
    %92 = vector.shape_cast %91 : vector<8xf32> to vector<8x1xf32>
    %93 = tpu.reciprocal %92 {approx = true} : vector<8x1xf32> -> vector<8x1xf32>
    %94 = vector.broadcast %93 : vector<8x1xf32> to vector<8x8xf32>
    %95 = arith.mulf %90, %94 : vector<8x8xf32>
    %c1 = arith.constant 1 : index
    %96 = memref.load %arg2[%c1] : memref<4xf32, #tpu.memory_space<smem>>
    %97 = vector.broadcast %96 : f32 to vector<8x8xf32>
    %98 = arith.mulf %97, %95 : vector<8x8xf32>
    %99 = arith.subf %85, %98 : vector<8x8xf32>
    %100 = arith.cmpi sgt, %4, %3 : vector<8x8xi32>
    %cst_44 = arith.constant 0xFF800000 : f32
    %101 = vector.broadcast %cst_44 : f32 to vector<8x8xf32>
    %102 = arith.select %100, %101, %99 : vector<8x8xi1>, vector<8x8xf32>
    %cst_45 = arith.constant dense<0xFF800000> : vector<8xf32>
    %103 = vector.multi_reduction <maximumf>, %102, %cst_45 [1] : vector<8x8xf32> to vector<8xf32>
    %104 = vector.shape_cast %103 : vector<8xf32> to vector<8x1xf32>
    %105 = vector.broadcast %104 : vector<8x1xf32> to vector<8x8xf32>
    %106 = arith.subf %102, %105 : vector<8x8xf32>
    %107 = math.exp %106 : vector<8x8xf32>
    %cst_46 = arith.constant dense<0.000000e+00> : vector<8xf32>
    %108 = vector.multi_reduction <add>, %107, %cst_46 [1] : vector<8x8xf32> to vector<8xf32>
    %109 = vector.shape_cast %108 : vector<8xf32> to vector<8x1xf32>
    %110 = tpu.reciprocal %109 {approx = true} : vector<8x1xf32> -> vector<8x1xf32>
    %111 = vector.broadcast %110 : vector<8x1xf32> to vector<8x8xf32>
    %112 = arith.mulf %107, %111 : vector<8x8xf32>
    %113 = arith.truncf %112 : vector<8x8xf32> to vector<8x8xbf16>
    %cst_47 = arith.constant dense<0.000000e+00> : vector<8x8xf32>
    %114 = tpu.matmul %113, %69, %cst_47 {dimension_numbers = #tpu.dot_dimension_numbers<[1], [0], [0], [1], [0, 0, 1, 1], [], []>} : vector<8x8xbf16>, vector<8x8xbf16>, vector<8x8xf32> -> vector<8x8xf32>
    %c0_48 = arith.constant 0 : index
    %c0_49 = arith.constant 0 : index
    %c32 = arith.constant 32 : index
    %115 = vector.load %arg3[%c0_48, %c0_49, %c32] : memref<1x8x64xbf16, #tpu.memory_space<vmem>>, vector<1x8x8xbf16>
    %116 = vector.shape_cast %115 : vector<1x8x8xbf16> to vector<8x8xbf16>
    %c0_50 = arith.constant 0 : index
    %c0_51 = arith.constant 0 : index
    %c40 = arith.constant 40 : index
    %117 = vector.load %arg3[%c0_50, %c0_51, %c40] : memref<1x8x64xbf16, #tpu.memory_space<vmem>>, vector<1x8x8xbf16>
    %118 = vector.shape_cast %117 : vector<1x8x8xbf16> to vector<8x8xbf16>
    %c0_52 = arith.constant 0 : index
    %c0_53 = arith.constant 0 : index
    %c32_54 = arith.constant 32 : index
    %119 = vector.load %arg4[%c0_52, %c0_53, %c32_54] : memref<1x8x96xbf16, #tpu.memory_space<vmem>>, vector<1x8x8xbf16>
    %120 = vector.shape_cast %119 : vector<1x8x8xbf16> to vector<8x8xbf16>
    %c0_55 = arith.constant 0 : index
    %c0_56 = arith.constant 0 : index
    %c40_57 = arith.constant 40 : index
    %121 = vector.load %arg4[%c0_55, %c0_56, %c40_57] : memref<1x8x96xbf16, #tpu.memory_space<vmem>>, vector<1x8x8xbf16>
    %122 = vector.shape_cast %121 : vector<1x8x8xbf16> to vector<8x8xbf16>
    %c0_58 = arith.constant 0 : index
    %c0_59 = arith.constant 0 : index
    %c80 = arith.constant 80 : index
    %123 = vector.load %arg4[%c0_58, %c0_59, %c80] : memref<1x8x96xbf16, #tpu.memory_space<vmem>>, vector<1x8x8xbf16>
    %124 = vector.shape_cast %123 : vector<1x8x8xbf16> to vector<8x8xbf16>
    %cst_60 = arith.constant dense<0.000000e+00> : vector<8x8xf32>
    %125 = tpu.matmul %116, %120, %cst_60 {dimension_numbers = #tpu.dot_dimension_numbers<[1], [1], [0], [0], [0, 0, 1, 0], [], []>} : vector<8x8xbf16>, vector<8x8xbf16>, vector<8x8xf32> -> vector<8x8xf32>
    %cst_61 = arith.constant 0.353553385 : f32
    %126 = vector.broadcast %cst_61 : f32 to vector<8x8xf32>
    %127 = arith.mulf %125, %126 : vector<8x8xf32>
    %cst_62 = arith.constant dense<0.000000e+00> : vector<8x8xf32>
    %128 = tpu.matmul %118, %122, %cst_62 {dimension_numbers = #tpu.dot_dimension_numbers<[1], [1], [0], [0], [0, 0, 1, 0], [], []>} : vector<8x8xbf16>, vector<8x8xbf16>, vector<8x8xf32> -> vector<8x8xf32>
    %cst_63 = arith.constant 0.353553385 : f32
    %129 = vector.broadcast %cst_63 : f32 to vector<8x8xf32>
    %130 = arith.mulf %128, %129 : vector<8x8xf32>
    %cst_64 = arith.constant dense<0xFF800000> : vector<8xf32>
    %131 = vector.multi_reduction <maximumf>, %127, %cst_64 [1] : vector<8x8xf32> to vector<8xf32>
    %132 = vector.shape_cast %131 : vector<8xf32> to vector<8x1xf32>
    %133 = vector.broadcast %132 : vector<8x1xf32> to vector<8x8xf32>
    %134 = arith.subf %127, %133 : vector<8x8xf32>
    %135 = math.exp %134 : vector<8x8xf32>
    %cst_65 = arith.constant dense<0.000000e+00> : vector<8xf32>
    %136 = vector.multi_reduction <add>, %135, %cst_65 [1] : vector<8x8xf32> to vector<8xf32>
    %137 = vector.shape_cast %136 : vector<8xf32> to vector<8x1xf32>
    %138 = tpu.reciprocal %137 {approx = true} : vector<8x1xf32> -> vector<8x1xf32>
    %139 = vector.broadcast %138 : vector<8x1xf32> to vector<8x8xf32>
    %140 = arith.mulf %135, %139 : vector<8x8xf32>
    %cst_66 = arith.constant dense<0xFF800000> : vector<8xf32>
    %141 = vector.multi_reduction <maximumf>, %130, %cst_66 [1] : vector<8x8xf32> to vector<8xf32>
    %142 = vector.shape_cast %141 : vector<8xf32> to vector<8x1xf32>
    %143 = vector.broadcast %142 : vector<8x1xf32> to vector<8x8xf32>
    %144 = arith.subf %130, %143 : vector<8x8xf32>
    %145 = math.exp %144 : vector<8x8xf32>
    %cst_67 = arith.constant dense<0.000000e+00> : vector<8xf32>
    %146 = vector.multi_reduction <add>, %145, %cst_67 [1] : vector<8x8xf32> to vector<8xf32>
    %147 = vector.shape_cast %146 : vector<8xf32> to vector<8x1xf32>
    %148 = tpu.reciprocal %147 {approx = true} : vector<8x1xf32> -> vector<8x1xf32>
    %149 = vector.broadcast %148 : vector<8x1xf32> to vector<8x8xf32>
    %150 = arith.mulf %145, %149 : vector<8x8xf32>
    %c2 = arith.constant 2 : index
    %151 = memref.load %arg2[%c2] : memref<4xf32, #tpu.memory_space<smem>>
    %152 = vector.broadcast %151 : f32 to vector<8x8xf32>
    %153 = arith.mulf %152, %150 : vector<8x8xf32>
    %154 = arith.subf %140, %153 : vector<8x8xf32>
    %155 = arith.cmpi sgt, %4, %3 : vector<8x8xi32>
    %cst_68 = arith.constant 0xFF800000 : f32
    %156 = vector.broadcast %cst_68 : f32 to vector<8x8xf32>
    %157 = arith.select %155, %156, %154 : vector<8x8xi1>, vector<8x8xf32>
    %cst_69 = arith.constant dense<0xFF800000> : vector<8xf32>
    %158 = vector.multi_reduction <maximumf>, %157, %cst_69 [1] : vector<8x8xf32> to vector<8xf32>
    %159 = vector.shape_cast %158 : vector<8xf32> to vector<8x1xf32>
    %160 = vector.broadcast %159 : vector<8x1xf32> to vector<8x8xf32>
    %161 = arith.subf %157, %160 : vector<8x8xf32>
    %162 = math.exp %161 : vector<8x8xf32>
    %cst_70 = arith.constant dense<0.000000e+00> : vector<8xf32>
    %163 = vector.multi_reduction <add>, %162, %cst_70 [1] : vector<8x8xf32> to vector<8xf32>
    %164 = vector.shape_cast %163 : vector<8xf32> to vector<8x1xf32>
    %165 = tpu.reciprocal %164 {approx = true} : vector<8x1xf32> -> vector<8x1xf32>
    %166 = vector.broadcast %165 : vector<8x1xf32> to vector<8x8xf32>
    %167 = arith.mulf %162, %166 : vector<8x8xf32>
    %168 = arith.truncf %167 : vector<8x8xf32> to vector<8x8xbf16>
    %cst_71 = arith.constant dense<0.000000e+00> : vector<8x8xf32>
    %169 = tpu.matmul %168, %124, %cst_71 {dimension_numbers = #tpu.dot_dimension_numbers<[1], [0], [0], [1], [0, 0, 1, 1], [], []>} : vector<8x8xbf16>, vector<8x8xbf16>, vector<8x8xf32> -> vector<8x8xf32>
    %c0_72 = arith.constant 0 : index
    %c0_73 = arith.constant 0 : index
    %c48 = arith.constant 48 : index
    %170 = vector.load %arg3[%c0_72, %c0_73, %c48] : memref<1x8x64xbf16, #tpu.memory_space<vmem>>, vector<1x8x8xbf16>
    %171 = vector.shape_cast %170 : vector<1x8x8xbf16> to vector<8x8xbf16>
    %c0_74 = arith.constant 0 : index
    %c0_75 = arith.constant 0 : index
    %c56 = arith.constant 56 : index
    %172 = vector.load %arg3[%c0_74, %c0_75, %c56] : memref<1x8x64xbf16, #tpu.memory_space<vmem>>, vector<1x8x8xbf16>
    %173 = vector.shape_cast %172 : vector<1x8x8xbf16> to vector<8x8xbf16>
    %c0_76 = arith.constant 0 : index
    %c0_77 = arith.constant 0 : index
    %c48_78 = arith.constant 48 : index
    %174 = vector.load %arg4[%c0_76, %c0_77, %c48_78] : memref<1x8x96xbf16, #tpu.memory_space<vmem>>, vector<1x8x8xbf16>
    %175 = vector.shape_cast %174 : vector<1x8x8xbf16> to vector<8x8xbf16>
    %c0_79 = arith.constant 0 : index
    %c0_80 = arith.constant 0 : index
    %c56_81 = arith.constant 56 : index
    %176 = vector.load %arg4[%c0_79, %c0_80, %c56_81] : memref<1x8x96xbf16, #tpu.memory_space<vmem>>, vector<1x8x8xbf16>
    %177 = vector.shape_cast %176 : vector<1x8x8xbf16> to vector<8x8xbf16>
    %c0_82 = arith.constant 0 : index
    %c0_83 = arith.constant 0 : index
    %c88 = arith.constant 88 : index
    %178 = vector.load %arg4[%c0_82, %c0_83, %c88] : memref<1x8x96xbf16, #tpu.memory_space<vmem>>, vector<1x8x8xbf16>
    %179 = vector.shape_cast %178 : vector<1x8x8xbf16> to vector<8x8xbf16>
    %cst_84 = arith.constant dense<0.000000e+00> : vector<8x8xf32>
    %180 = tpu.matmul %171, %175, %cst_84 {dimension_numbers = #tpu.dot_dimension_numbers<[1], [1], [0], [0], [0, 0, 1, 0], [], []>} : vector<8x8xbf16>, vector<8x8xbf16>, vector<8x8xf32> -> vector<8x8xf32>
    %cst_85 = arith.constant 0.353553385 : f32
    %181 = vector.broadcast %cst_85 : f32 to vector<8x8xf32>
    %182 = arith.mulf %180, %181 : vector<8x8xf32>
    %cst_86 = arith.constant dense<0.000000e+00> : vector<8x8xf32>
    %183 = tpu.matmul %173, %177, %cst_86 {dimension_numbers = #tpu.dot_dimension_numbers<[1], [1], [0], [0], [0, 0, 1, 0], [], []>} : vector<8x8xbf16>, vector<8x8xbf16>, vector<8x8xf32> -> vector<8x8xf32>
    %cst_87 = arith.constant 0.353553385 : f32
    %184 = vector.broadcast %cst_87 : f32 to vector<8x8xf32>
    %185 = arith.mulf %183, %184 : vector<8x8xf32>
    %cst_88 = arith.constant dense<0xFF800000> : vector<8xf32>
    %186 = vector.multi_reduction <maximumf>, %182, %cst_88 [1] : vector<8x8xf32> to vector<8xf32>
    %187 = vector.shape_cast %186 : vector<8xf32> to vector<8x1xf32>
    %188 = vector.broadcast %187 : vector<8x1xf32> to vector<8x8xf32>
    %189 = arith.subf %182, %188 : vector<8x8xf32>
    %190 = math.exp %189 : vector<8x8xf32>
    %cst_89 = arith.constant dense<0.000000e+00> : vector<8xf32>
    %191 = vector.multi_reduction <add>, %190, %cst_89 [1] : vector<8x8xf32> to vector<8xf32>
    %192 = vector.shape_cast %191 : vector<8xf32> to vector<8x1xf32>
    %193 = tpu.reciprocal %192 {approx = true} : vector<8x1xf32> -> vector<8x1xf32>
    %194 = vector.broadcast %193 : vector<8x1xf32> to vector<8x8xf32>
    %195 = arith.mulf %190, %194 : vector<8x8xf32>
    %cst_90 = arith.constant dense<0xFF800000> : vector<8xf32>
    %196 = vector.multi_reduction <maximumf>, %185, %cst_90 [1] : vector<8x8xf32> to vector<8xf32>
    %197 = vector.shape_cast %196 : vector<8xf32> to vector<8x1xf32>
    %198 = vector.broadcast %197 : vector<8x1xf32> to vector<8x8xf32>
    %199 = arith.subf %185, %198 : vector<8x8xf32>
    %200 = math.exp %199 : vector<8x8xf32>
    %cst_91 = arith.constant dense<0.000000e+00> : vector<8xf32>
    %201 = vector.multi_reduction <add>, %200, %cst_91 [1] : vector<8x8xf32> to vector<8xf32>
    %202 = vector.shape_cast %201 : vector<8xf32> to vector<8x1xf32>
    %203 = tpu.reciprocal %202 {approx = true} : vector<8x1xf32> -> vector<8x1xf32>
    %204 = vector.broadcast %203 : vector<8x1xf32> to vector<8x8xf32>
    %205 = arith.mulf %200, %204 : vector<8x8xf32>
    %c3 = arith.constant 3 : index
    %206 = memref.load %arg2[%c3] : memref<4xf32, #tpu.memory_space<smem>>
    %207 = vector.broadcast %206 : f32 to vector<8x8xf32>
    %208 = arith.mulf %207, %205 : vector<8x8xf32>
    %209 = arith.subf %195, %208 : vector<8x8xf32>
    %210 = arith.cmpi sgt, %4, %3 : vector<8x8xi32>
    %cst_92 = arith.constant 0xFF800000 : f32
    %211 = vector.broadcast %cst_92 : f32 to vector<8x8xf32>
    %212 = arith.select %210, %211, %209 : vector<8x8xi1>, vector<8x8xf32>
    %cst_93 = arith.constant dense<0xFF800000> : vector<8xf32>
    %213 = vector.multi_reduction <maximumf>, %212, %cst_93 [1] : vector<8x8xf32> to vector<8xf32>
    %214 = vector.shape_cast %213 : vector<8xf32> to vector<8x1xf32>
    %215 = vector.broadcast %214 : vector<8x1xf32> to vector<8x8xf32>
    %216 = arith.subf %212, %215 : vector<8x8xf32>
    %217 = math.exp %216 : vector<8x8xf32>
    %cst_94 = arith.constant dense<0.000000e+00> : vector<8xf32>
    %218 = vector.multi_reduction <add>, %217, %cst_94 [1] : vector<8x8xf32> to vector<8xf32>
    %219 = vector.shape_cast %218 : vector<8xf32> to vector<8x1xf32>
    %220 = tpu.reciprocal %219 {approx = true} : vector<8x1xf32> -> vector<8x1xf32>
    %221 = vector.broadcast %220 : vector<8x1xf32> to vector<8x8xf32>
    %222 = arith.mulf %217, %221 : vector<8x8xf32>
    %223 = arith.truncf %222 : vector<8x8xf32> to vector<8x8xbf16>
    %cst_95 = arith.constant dense<0.000000e+00> : vector<8x8xf32>
    %224 = tpu.matmul %223, %179, %cst_95 {dimension_numbers = #tpu.dot_dimension_numbers<[1], [0], [0], [1], [0, 0, 1, 1], [], []>} : vector<8x8xbf16>, vector<8x8xbf16>, vector<8x8xf32> -> vector<8x8xf32>
    %225 = tpu.concatenate %59, %114, %169, %224 in 1 : vector<8x8xf32>, vector<8x8xf32>, vector<8x8xf32>, vector<8x8xf32> -> vector<8x32xf32>
    %226 = arith.truncf %225 : vector<8x32xf32> to vector<8x32xbf16>
    %c0_96 = arith.constant 0 : index
    %c0_97 = arith.constant 0 : index
    %c0_98 = arith.constant 0 : index
    %227 = vector.load %arg5[%c0_96, %c0_97, %c0_98] : memref<1x8x32xbf16, #tpu.memory_space<vmem>>, vector<1x8x32xbf16>
    %228 = vector.shape_cast %227 : vector<1x8x32xbf16> to vector<8x32xbf16>
    %229 = vector.shape_cast %226 : vector<8x32xbf16> to vector<1x8x32xbf16>
    tpu.vector_store %arg5[%c0_96, %c0_97, %c0_98], %229 {strides = array<i32>} : memref<1x8x32xbf16, #tpu.memory_space<vmem>>, vector<1x8x32xbf16>,
    return
  }
  func.func @transform_0(%arg0: i32, %arg1: i32) -> i32 {
    %c0_i32 = arith.constant 0 : i32
    %c0_i32_0 = arith.constant 0 : i32
    return %c0_i32 : i32
  }
  func.func @transform_1(%arg0: i32, %arg1: i32) -> (i32, i32, i32) {
    %c0_i32 = arith.constant 0 : i32
    %c0_i32_0 = arith.constant 0 : i32
    return %arg0, %arg1, %c0_i32 : i32, i32, i32
  }
  func.func @transform_2(%arg0: i32, %arg1: i32) -> (i32, i32, i32) {
    %c0_i32 = arith.constant 0 : i32
    %c0_i32_0 = arith.constant 0 : i32
    %c0_i32_1 = arith.constant 0 : i32
    return %arg0, %c0_i32, %c0_i32_0 : i32, i32, i32
  }
  func.func @transform_3(%arg0: i32, %arg1: i32) -> (i32, i32, i32) {
    %c0_i32 = arith.constant 0 : i32
    %c0_i32_0 = arith.constant 0 : i32
    return %arg0, %arg1, %c0_i32 : i32, i32, i32
  }
}

module attributes {stable_mosaic.version = 11 : i64} {
  func.func @kernel(%arg0: i32, %arg1: i32, %arg2: i32, %arg3: memref<16x32xf32, #tpu.memory_space<vmem>>, %arg4: memref<32x96xbf16, #tpu.memory_space<vmem>>, %arg5: memref<16x96xbf16, #tpu.memory_space<vmem>>) attributes {dimension_semantics = [#tpu.dimension_semantics<parallel>, #tpu.dimension_semantics<parallel>, #tpu.dimension_semantics<arbitrary>], iteration_bounds = array<i64: 1, 1, 1>, scalar_prefetch = 0 : i64, scratch_operands = 0 : i64, tpu.core_type = #tpu.core_type<tc>, window_params = [{transform_indices = @transform_0, window_bounds = array<i64: 16, 32>}, {transform_indices = @transform_1, window_bounds = array<i64: 32, 96>}, {transform_indices = @transform_2, window_bounds = array<i64: 16, 96>}]} {
    %c0 = arith.constant 0 : index
    %c0_0 = arith.constant 0 : index
    %0 = vector.load %arg3[%c0, %c0_0] : memref<16x32xf32, #tpu.memory_space<vmem>>, vector<16x32xf32>
    %1 = arith.truncf %0 : vector<16x32xf32> to vector<16x32xbf16>
    %c0_1 = arith.constant 0 : index
    %c0_2 = arith.constant 0 : index
    %2 = vector.load %arg4[%c0_1, %c0_2] : memref<32x96xbf16, #tpu.memory_space<vmem>>, vector<32x96xbf16>
    %cst = arith.constant dense<0.000000e+00> : vector<16x96xf32>
    %3 = tpu.matmul %1, %2, %cst {dimension_numbers = #tpu.dot_dimension_numbers<[1], [0], [0], [1], [0, 0, 1, 1], [], []>} : vector<16x32xbf16>, vector<32x96xbf16>, vector<16x96xf32> -> vector<16x96xf32>
    %4 = arith.truncf %3 : vector<16x96xf32> to vector<16x96xbf16>
    %c0_3 = arith.constant 0 : index
    %c0_4 = arith.constant 0 : index
    %5 = vector.load %arg5[%c0_3, %c0_4] : memref<16x96xbf16, #tpu.memory_space<vmem>>, vector<16x96xbf16>
    tpu.vector_store %arg5[%c0_3, %c0_4], %4 {strides = array<i32>} : memref<16x96xbf16, #tpu.memory_space<vmem>>, vector<16x96xbf16>,
    return
  }
  func.func @transform_0(%arg0: i32, %arg1: i32, %arg2: i32) -> (i32, i32) {
    %c0_i32 = arith.constant 0 : i32
    return %arg0, %arg2 : i32, i32
  }
  func.func @transform_1(%arg0: i32, %arg1: i32, %arg2: i32) -> (i32, i32) {
    %c0_i32 = arith.constant 0 : i32
    return %arg2, %arg1 : i32, i32
  }
  func.func @transform_2(%arg0: i32, %arg1: i32, %arg2: i32) -> (i32, i32) {
    %c0_i32 = arith.constant 0 : i32
    return %arg0, %arg1 : i32, i32
  }
}

module attributes {stable_mosaic.version = 11 : i64} {
  func.func @kernel(%arg0: i32, %arg1: i32, %arg2: i32, %arg3: memref<16x32xbf16, #tpu.memory_space<vmem>>, %arg4: memref<32x32xbf16, #tpu.memory_space<vmem>>, %arg5: memref<1x32xf32, #tpu.memory_space<vmem>>, %arg6: memref<16x32xf32, #tpu.memory_space<vmem>>, %arg7: memref<16x32xf32, #tpu.memory_space<vmem>>) attributes {dimension_semantics = [#tpu.dimension_semantics<parallel>, #tpu.dimension_semantics<parallel>, #tpu.dimension_semantics<arbitrary>], iteration_bounds = array<i64: 1, 1, 1>, scalar_prefetch = 0 : i64, scratch_operands = 0 : i64, tpu.core_type = #tpu.core_type<tc>, window_params = [{transform_indices = @transform_0, window_bounds = array<i64: 16, 32>}, {transform_indices = @transform_1, window_bounds = array<i64: 32, 32>}, {transform_indices = @transform_2, window_bounds = array<i64: 1, 32>}, {transform_indices = @transform_3, window_bounds = array<i64: 16, 32>}, {transform_indices = @transform_4, window_bounds = array<i64: 16, 32>}]} {
    %c0 = arith.constant 0 : index
    %c0_0 = arith.constant 0 : index
    %0 = vector.load %arg3[%c0, %c0_0] : memref<16x32xbf16, #tpu.memory_space<vmem>>, vector<16x32xbf16>
    %1 = arith.extf %0 : vector<16x32xbf16> to vector<16x32xf32>
    %2 = arith.mulf %1, %1 : vector<16x32xf32>
    %cst = arith.constant dense<0.000000e+00> : vector<16xf32>
    %3 = vector.multi_reduction <add>, %2, %cst [1] : vector<16x32xf32> to vector<16xf32>
    %4 = vector.shape_cast %3 : vector<16xf32> to vector<16x1xf32>
    %cst_1 = arith.constant 3.200000e+01 : f32
    %5 = vector.broadcast %cst_1 : f32 to vector<16x1xf32>
    %6 = arith.divf %4, %5 : vector<16x1xf32>
    %cst_2 = arith.constant 9.99999997E-7 : f32
    %7 = vector.broadcast %cst_2 : f32 to vector<16x1xf32>
    %8 = arith.addf %6, %7 : vector<16x1xf32>
    %9 = math.rsqrt %8 : vector<16x1xf32>
    %10 = vector.broadcast %9 : vector<16x1xf32> to vector<16x32xf32>
    %11 = arith.mulf %1, %10 : vector<16x32xf32>
    %c0_3 = arith.constant 0 : index
    %c0_4 = arith.constant 0 : index
    %12 = vector.load %arg5[%c0_3, %c0_4] : memref<1x32xf32, #tpu.memory_space<vmem>>, vector<1x32xf32>
    %13 = vector.broadcast %12 : vector<1x32xf32> to vector<16x32xf32>
    %14 = arith.mulf %11, %13 : vector<16x32xf32>
    %15 = arith.truncf %14 : vector<16x32xf32> to vector<16x32xbf16>
    %c0_5 = arith.constant 0 : index
    %c0_6 = arith.constant 0 : index
    %16 = vector.load %arg4[%c0_5, %c0_6] : memref<32x32xbf16, #tpu.memory_space<vmem>>, vector<32x32xbf16>
    %cst_7 = arith.constant dense<0.000000e+00> : vector<16x32xf32>
    %17 = tpu.matmul %15, %16, %cst_7 {dimension_numbers = #tpu.dot_dimension_numbers<[1], [0], [0], [1], [0, 0, 1, 1], [], []>} : vector<16x32xbf16>, vector<32x32xbf16>, vector<16x32xf32> -> vector<16x32xf32>
    %c0_8 = arith.constant 0 : index
    %c0_9 = arith.constant 0 : index
    %18 = vector.load %arg6[%c0_8, %c0_9] : memref<16x32xf32, #tpu.memory_space<vmem>>, vector<16x32xf32>
    %19 = arith.addf %17, %18 : vector<16x32xf32>
    %c0_10 = arith.constant 0 : index
    %c0_11 = arith.constant 0 : index
    %20 = vector.load %arg7[%c0_10, %c0_11] : memref<16x32xf32, #tpu.memory_space<vmem>>, vector<16x32xf32>
    tpu.vector_store %arg7[%c0_10, %c0_11], %19 {strides = array<i32>} : memref<16x32xf32, #tpu.memory_space<vmem>>, vector<16x32xf32>,
    return
  }
  func.func @transform_0(%arg0: i32, %arg1: i32, %arg2: i32) -> (i32, i32) {
    %c0_i32 = arith.constant 0 : i32
    return %arg0, %arg2 : i32, i32
  }
  func.func @transform_1(%arg0: i32, %arg1: i32, %arg2: i32) -> (i32, i32) {
    %c0_i32 = arith.constant 0 : i32
    return %arg2, %arg1 : i32, i32
  }
  func.func @transform_2(%arg0: i32, %arg1: i32, %arg2: i32) -> (i32, i32) {
    %c0_i32 = arith.constant 0 : i32
    %c0_i32_0 = arith.constant 0 : i32
    return %c0_i32, %arg2 : i32, i32
  }
  func.func @transform_3(%arg0: i32, %arg1: i32, %arg2: i32) -> (i32, i32) {
    %c0_i32 = arith.constant 0 : i32
    return %arg0, %arg1 : i32, i32
  }
  func.func @transform_4(%arg0: i32, %arg1: i32, %arg2: i32) -> (i32, i32) {
    %c0_i32 = arith.constant 0 : i32
    return %arg0, %arg1 : i32, i32
  }
}

module attributes {stable_mosaic.version = 11 : i64} {
  func.func @kernel(%arg0: i32, %arg1: i32, %arg2: i32, %arg3: memref<16x32xf32, #tpu.memory_space<vmem>>, %arg4: memref<32x64xbf16, #tpu.memory_space<vmem>>, %arg5: memref<1x32xf32, #tpu.memory_space<vmem>>, %arg6: memref<1x64xf32, #tpu.memory_space<vmem>>, %arg7: memref<16x64xbf16, #tpu.memory_space<vmem>>) attributes {dimension_semantics = [#tpu.dimension_semantics<parallel>, #tpu.dimension_semantics<parallel>, #tpu.dimension_semantics<arbitrary>], iteration_bounds = array<i64: 1, 1, 1>, scalar_prefetch = 0 : i64, scratch_operands = 0 : i64, tpu.core_type = #tpu.core_type<tc>, window_params = [{transform_indices = @transform_0, window_bounds = array<i64: 16, 32>}, {transform_indices = @transform_1, window_bounds = array<i64: 32, 64>}, {transform_indices = @transform_2, window_bounds = array<i64: 1, 32>}, {transform_indices = @transform_3, window_bounds = array<i64: 1, 64>}, {transform_indices = @transform_4, window_bounds = array<i64: 16, 64>}]} {
    %c0 = arith.constant 0 : index
    %c0_0 = arith.constant 0 : index
    %0 = vector.load %arg3[%c0, %c0_0] : memref<16x32xf32, #tpu.memory_space<vmem>>, vector<16x32xf32>
    %1 = arith.mulf %0, %0 : vector<16x32xf32>
    %cst = arith.constant dense<0.000000e+00> : vector<16xf32>
    %2 = vector.multi_reduction <add>, %1, %cst [1] : vector<16x32xf32> to vector<16xf32>
    %3 = vector.shape_cast %2 : vector<16xf32> to vector<16x1xf32>
    %cst_1 = arith.constant 3.200000e+01 : f32
    %4 = vector.broadcast %cst_1 : f32 to vector<16x1xf32>
    %5 = arith.divf %3, %4 : vector<16x1xf32>
    %cst_2 = arith.constant 9.99999997E-7 : f32
    %6 = vector.broadcast %cst_2 : f32 to vector<16x1xf32>
    %7 = arith.addf %5, %6 : vector<16x1xf32>
    %8 = math.rsqrt %7 : vector<16x1xf32>
    %9 = vector.broadcast %8 : vector<16x1xf32> to vector<16x32xf32>
    %10 = arith.mulf %0, %9 : vector<16x32xf32>
    %c0_3 = arith.constant 0 : index
    %c0_4 = arith.constant 0 : index
    %11 = vector.load %arg5[%c0_3, %c0_4] : memref<1x32xf32, #tpu.memory_space<vmem>>, vector<1x32xf32>
    %12 = vector.broadcast %11 : vector<1x32xf32> to vector<16x32xf32>
    %13 = arith.mulf %10, %12 : vector<16x32xf32>
    %14 = arith.truncf %13 : vector<16x32xf32> to vector<16x32xbf16>
    %c0_5 = arith.constant 0 : index
    %c0_6 = arith.constant 0 : index
    %15 = vector.load %arg4[%c0_5, %c0_6] : memref<32x64xbf16, #tpu.memory_space<vmem>>, vector<32x64xbf16>
    %cst_7 = arith.constant dense<0.000000e+00> : vector<16x64xf32>
    %16 = tpu.matmul %14, %15, %cst_7 {dimension_numbers = #tpu.dot_dimension_numbers<[1], [0], [0], [1], [0, 0, 1, 1], [], []>} : vector<16x32xbf16>, vector<32x64xbf16>, vector<16x64xf32> -> vector<16x64xf32>
    %c0_8 = arith.constant 0 : index
    %c0_9 = arith.constant 0 : index
    %17 = vector.load %arg6[%c0_8, %c0_9] : memref<1x64xf32, #tpu.memory_space<vmem>>, vector<1x64xf32>
    %18 = vector.broadcast %17 : vector<1x64xf32> to vector<16x64xf32>
    %19 = arith.addf %16, %18 : vector<16x64xf32>
    %20 = arith.truncf %19 : vector<16x64xf32> to vector<16x64xbf16>
    %c0_10 = arith.constant 0 : index
    %c0_11 = arith.constant 0 : index
    %21 = vector.load %arg7[%c0_10, %c0_11] : memref<16x64xbf16, #tpu.memory_space<vmem>>, vector<16x64xbf16>
    tpu.vector_store %arg7[%c0_10, %c0_11], %20 {strides = array<i32>} : memref<16x64xbf16, #tpu.memory_space<vmem>>, vector<16x64xbf16>,
    return
  }
  func.func @transform_0(%arg0: i32, %arg1: i32, %arg2: i32) -> (i32, i32) {
    %c0_i32 = arith.constant 0 : i32
    return %arg0, %arg2 : i32, i32
  }
  func.func @transform_1(%arg0: i32, %arg1: i32, %arg2: i32) -> (i32, i32) {
    %c0_i32 = arith.constant 0 : i32
    return %arg2, %arg1 : i32, i32
  }
  func.func @transform_2(%arg0: i32, %arg1: i32, %arg2: i32) -> (i32, i32) {
    %c0_i32 = arith.constant 0 : i32
    %c0_i32_0 = arith.constant 0 : i32
    return %c0_i32, %arg2 : i32, i32
  }
  func.func @transform_3(%arg0: i32, %arg1: i32, %arg2: i32) -> (i32, i32) {
    %c0_i32 = arith.constant 0 : i32
    %c0_i32_0 = arith.constant 0 : i32
    return %c0_i32, %arg1 : i32, i32
  }
  func.func @transform_4(%arg0: i32, %arg1: i32, %arg2: i32) -> (i32, i32) {
    %c0_i32 = arith.constant 0 : i32
    return %arg0, %arg1 : i32, i32
  }
}

module attributes {stable_mosaic.version = 11 : i64} {
  func.func @kernel(%arg0: i32, %arg1: i32, %arg2: i32, %arg3: memref<16x32xf32, #tpu.memory_space<vmem>>, %arg4: memref<32x64xbf16, #tpu.memory_space<vmem>>, %arg5: memref<1x64xf32, #tpu.memory_space<vmem>>, %arg6: memref<16x64xf32, #tpu.memory_space<vmem>>) attributes {dimension_semantics = [#tpu.dimension_semantics<parallel>, #tpu.dimension_semantics<parallel>, #tpu.dimension_semantics<arbitrary>], iteration_bounds = array<i64: 1, 1, 1>, scalar_prefetch = 0 : i64, scratch_operands = 0 : i64, tpu.core_type = #tpu.core_type<tc>, window_params = [{transform_indices = @transform_0, window_bounds = array<i64: 16, 32>}, {transform_indices = @transform_1, window_bounds = array<i64: 32, 64>}, {transform_indices = @transform_2, window_bounds = array<i64: 1, 64>}, {transform_indices = @transform_3, window_bounds = array<i64: 16, 64>}]} {
    %c0 = arith.constant 0 : index
    %c0_0 = arith.constant 0 : index
    %0 = vector.load %arg3[%c0, %c0_0] : memref<16x32xf32, #tpu.memory_space<vmem>>, vector<16x32xf32>
    %1 = arith.truncf %0 : vector<16x32xf32> to vector<16x32xbf16>
    %c0_1 = arith.constant 0 : index
    %c0_2 = arith.constant 0 : index
    %2 = vector.load %arg4[%c0_1, %c0_2] : memref<32x64xbf16, #tpu.memory_space<vmem>>, vector<32x64xbf16>
    %cst = arith.constant dense<0.000000e+00> : vector<16x64xf32>
    %3 = tpu.matmul %1, %2, %cst {dimension_numbers = #tpu.dot_dimension_numbers<[1], [0], [0], [1], [0, 0, 1, 1], [], []>} : vector<16x32xbf16>, vector<32x64xbf16>, vector<16x64xf32> -> vector<16x64xf32>
    %c0_3 = arith.constant 0 : index
    %c0_4 = arith.constant 0 : index
    %4 = vector.load %arg5[%c0_3, %c0_4] : memref<1x64xf32, #tpu.memory_space<vmem>>, vector<1x64xf32>
    %5 = vector.broadcast %4 : vector<1x64xf32> to vector<16x64xf32>
    %6 = arith.addf %3, %5 : vector<16x64xf32>
    %c0_5 = arith.constant 0 : index
    %c0_6 = arith.constant 0 : index
    %7 = vector.load %arg6[%c0_5, %c0_6] : memref<16x64xf32, #tpu.memory_space<vmem>>, vector<16x64xf32>
    tpu.vector_store %arg6[%c0_5, %c0_6], %6 {strides = array<i32>} : memref<16x64xf32, #tpu.memory_space<vmem>>, vector<16x64xf32>,
    return
  }
  func.func @transform_0(%arg0: i32, %arg1: i32, %arg2: i32) -> (i32, i32) {
    %c0_i32 = arith.constant 0 : i32
    return %arg0, %arg2 : i32, i32
  }
  func.func @transform_1(%arg0: i32, %arg1: i32, %arg2: i32) -> (i32, i32) {
    %c0_i32 = arith.constant 0 : i32
    return %arg2, %arg1 : i32, i32
  }
  func.func @transform_2(%arg0: i32, %arg1: i32, %arg2: i32) -> (i32, i32) {
    %c0_i32 = arith.constant 0 : i32
    %c0_i32_0 = arith.constant 0 : i32
    return %c0_i32, %arg1 : i32, i32
  }
  func.func @transform_3(%arg0: i32, %arg1: i32, %arg2: i32) -> (i32, i32) {
    %c0_i32 = arith.constant 0 : i32
    return %arg0, %arg1 : i32, i32
  }
}

</mosaic_0001>

<bundles_post_ra>
// kernel: transformer_forward.46
= control target key start
LH: loop header
LB: loop body
LE: loop exit
PB: predicated region body
PF: predicated region fallthrough
CT: control target
= control target key end

     0   :  { %vm19_vm0 = vcmask 261120   ;;  %v127_v6 = vmov 32.0   ;;  %vm101_vm8 = vcmask 519168   ;;  %s172_s0 = inlined_call_operand.vmem [shape: f32[16,32], index: 0, kind: input, shape index: {}]   ;;  %s173_s2 = inlined_call_operand.vmem [shape: f32[1,32], index: 2, kind: input, shape index: {}]   ;;  %s174_s1 = inlined_call_operand.vmem [shape: bf16[32,64], index: 1, kind: input, shape index: {}]   ;;  %s175_s3 = inlined_call_operand.vmem [shape: bf16[16,64], index: 3, kind: output, shape index: {}]  }
   0x1   :  { %v15_v0 = vld [vmem:[%s172_s0] sm:$0xff]  ;;  %v16_v2 = vld [vmem:[%s172_s0 + $0x8] sm:$0xff]  ;;  %121 = vrcp.f32 %v127_v6 }
   0x2   :  { %v17_v1 = vmul.f32 %v15_v0, %v15_v0  ;;  %v18_v4 = vmul.f32 %v16_v2, %v16_v2  ;;  %v118_v12 = vld [vmem:[%s174_s1 + $0x8] sm:$0xff]  ;;  %v117_v14 = vld [vmem:[%s174_s1] sm:$0xff] }
   0x3   :  { %91 = vmatpush.bf16.msra.mxu0 %v118_v12  ;;  %v120_v35 = vld [vmem:[%s173_s2] ss:$0 sm:$0xff] }
   0x4   :  { %v20_v3 = vsel %vm19_vm0, %v17_v1, 0.0  ;;  %v23_v5 = vsel %vm19_vm0, %v18_v4, 0.0 }
   0x5   :  { %21 = vadd.xlane.f32.xlu0 %v20_v3 }
   0x7   :  { %v122_v7 = vpop.eup %121  ;;  %92 = vmatpush.bf16.msra.mxu0 %v117_v14 }
   0x8   :  { %v27_v8 = vmul.f32 32.0, %v122_v7  ;;  %vm31_vm1 = vweird.f32 %v122_v7 }
   0xa   :  { %v28_v9 = vsub.f32 1.0, %v27_v8 }
   0xc   :  { %v29_v10 = vmul.f32 %v122_v7, %v28_v9 }
   0xd   :  { %24 = vadd.xlane.f32.xlu0 %v23_v5 }
   0xe   :  { %v30_v11 = vadd.f32 %v122_v7, %v29_v10 }
  0x10   :  { %v32_v13 = vsel %vm31_vm1, %v122_v7, %v30_v11 }
  0x78   :  { %v22_v15 = vpop.xlane.xlu0 %21 }
  0x79   :  { %v33_v16 = vmul.f32 %v32_v13, %v22_v15 }
  0x7b   :  { %v35_v17 = vadd.f32 1e-06, %v33_v16 }
  0x7d   :  { %123 = vrsqrt.f32 %v35_v17  ;;  %vm43_vm3 = vweird.f32 %v35_v17 }
  0x80   :  { %v25_v18 = vpop.xlane.xlu0 %24 }
  0x81   :  { %v34_v19 = vmul.f32 %v32_v13, %v25_v18 }
  0x83   :  { %v124_v20 = vpop.eup %123  ;;  %v36_v21 = vadd.f32 1e-06, %v34_v19 }
  0x84   :  { %v38_v22 = vmul.f32 %v124_v20, %v35_v17  ;;  %vm44_vm2 = vweird.f32 %v124_v20 }
  0x85   :  { %125 = vrsqrt.f32 %v36_v21  ;;  %vm45_vm4 = vmor %vm43_vm3, %vm44_vm2  ;;  %vm53_vm6 = vweird.f32 %v36_v21 }
  0x86   :  { %v39_v23 = vmul.f32 %v124_v20, %v38_v22 }
  0x88   :  { %v40_v24 = vmul.f32 0.5, %v39_v23 }
  0x8a   :  { %v41_v25 = vsub.f32 1.5, %v40_v24 }
  0x8b   :  { %v126_v26 = vpop.eup %125 }
  0x8c   :  { %v48_v27 = vmul.f32 %v126_v26, %v36_v21  ;;  %v42_v28 = vmul.f32 %v124_v20, %v41_v25  ;;  %vm54_vm5 = vweird.f32 %v126_v26 }
  0x8d   :  { %vm55_vm7 = vmor %vm53_vm6, %vm54_vm5 }
  0x8e   :  { %v49_v29 = vmul.f32 %v126_v26, %v48_v27  ;;  %v46_v31 = vsel %vm45_vm4, %v124_v20, %v42_v28 }
  0x8f   :  { %v57_v34 = vmul.f32 %v46_v31, %v15_v0 }
  0x90   :  { %v50_v30 = vmul.f32 0.5, %v49_v29 }
  0x91   :  { %v63_v38 = vmul.f32 %v120_v35, %v57_v34 }
  0x92   :  { %v51_v32 = vsub.f32 1.5, %v50_v30 }
  0x94   :  { %v52_v33 = vmul.f32 %v126_v26, %v51_v32 }
  0x96   :  { %v56_v36 = vsel %vm55_vm7, %v126_v26, %v52_v33 }
  0x97   :  { %v58_v37 = vmul.f32 %v56_v36, %v16_v2 }
  0x99   :  { %v64_v39 = vmul.f32 %v120_v35, %v58_v37 }
  0x9b   :  { %v65_v40 = vpack.c.bf16 %v64_v39, %v63_v38 }
  0x9d   :  { %116 = vmatmul.msk.bf16.vlgmr.msra.gmra.mxu0 %vm19_vm0, %v65_v40 }
 0x11a   :  { %v94_v41 = vpop.f32.mrf.mxu0 }
 0x11b   :  { %v99_v42 = vpack.c.bf16 %v94_v41, %v94_v41 }
 0x11d   :  { %102 = vst.msk [vmem:[%s175_s3] sm:$0xf] %vm101_vm8, %v99_v42 }
 0x122   :  { %v96_v43 = vpop.f32.mrf.mxu0 }
 0x123   :  { %v100_v44 = vpack.c.bf16 %v96_v43, %v96_v43 }
 0x125   :  { %103 = vst.msk [vmem:[%s175_s3 + $0x4] sm:$0xf] %vm101_vm8, %v100_v44 }

// kernel: transformer_forward.47
= control target key start
LH: loop header
LB: loop body
LE: loop exit
PB: predicated region body
PF: predicated region fallthrough
CT: control target
= control target key end

     0   :  { %vm19_vm0 = vcmask 261120   ;;  %v127_v6 = vmov 32.0   ;;  %vm101_vm8 = vcmask 781312   ;;  %s172_s0 = inlined_call_operand.vmem [shape: f32[16,32], index: 0, kind: input, shape index: {}]   ;;  %s173_s2 = inlined_call_operand.vmem [shape: f32[1,32], index: 2, kind: input, shape index: {}]   ;;  %s174_s1 = inlined_call_operand.vmem [shape: bf16[32,96], index: 1, kind: input, shape index: {}]   ;;  %s175_s3 = inlined_call_operand.vmem [shape: bf16[16,96], index: 3, kind: output, shape index: {}]  }
   0x1   :  { %v15_v0 = vld [vmem:[%s172_s0] sm:$0xff]  ;;  %v16_v2 = vld [vmem:[%s172_s0 + $0x8] sm:$0xff]  ;;  %121 = vrcp.f32 %v127_v6 }
   0x2   :  { %v17_v1 = vmul.f32 %v15_v0, %v15_v0  ;;  %v18_v4 = vmul.f32 %v16_v2, %v16_v2  ;;  %v118_v12 = vld [vmem:[%s174_s1 + $0x8] sm:$0xff]  ;;  %v117_v14 = vld [vmem:[%s174_s1] sm:$0xff] }
   0x3   :  { %91 = vmatpush.bf16.msra.mxu0 %v118_v12  ;;  %v120_v35 = vld [vmem:[%s173_s2] ss:$0 sm:$0xff] }
   0x4   :  { %v20_v3 = vsel %vm19_vm0, %v17_v1, 0.0  ;;  %v23_v5 = vsel %vm19_vm0, %v18_v4, 0.0 }
   0x5   :  { %21 = vadd.xlane.f32.xlu0 %v20_v3 }
   0x7   :  { %v122_v7 = vpop.eup %121  ;;  %92 = vmatpush.bf16.msra.mxu0 %v117_v14 }
   0x8   :  { %v27_v8 = vmul.f32 32.0, %v122_v7  ;;  %vm31_vm1 = vweird.f32 %v122_v7 }
   0xa   :  { %v28_v9 = vsub.f32 1.0, %v27_v8 }
   0xc   :  { %v29_v10 = vmul.f32 %v122_v7, %v28_v9 }
   0xd   :  { %24 = vadd.xlane.f32.xlu0 %v23_v5 }
   0xe   :  { %v30_v11 = vadd.f32 %v122_v7, %v29_v10 }
  0x10   :  { %v32_v13 = vsel %vm31_vm1, %v122_v7, %v30_v11 }
  0x78   :  { %v22_v15 = vpop.xlane.xlu0 %21 }
  0x79   :  { %v33_v16 = vmul.f32 %v32_v13, %v22_v15 }
  0x7b   :  { %v35_v17 = vadd.f32 1e-06, %v33_v16 }
  0x7d   :  { %123 = vrsqrt.f32 %v35_v17  ;;  %vm43_vm3 = vweird.f32 %v35_v17 }
  0x80   :  { %v25_v18 = vpop.xlane.xlu0 %24 }
  0x81   :  { %v34_v19 = vmul.f32 %v32_v13, %v25_v18 }
  0x83   :  { %v124_v20 = vpop.eup %123  ;;  %v36_v21 = vadd.f32 1e-06, %v34_v19 }
  0x84   :  { %v38_v22 = vmul.f32 %v124_v20, %v35_v17  ;;  %vm44_vm2 = vweird.f32 %v124_v20 }
  0x85   :  { %125 = vrsqrt.f32 %v36_v21  ;;  %vm45_vm4 = vmor %vm43_vm3, %vm44_vm2  ;;  %vm53_vm6 = vweird.f32 %v36_v21 }
  0x86   :  { %v39_v23 = vmul.f32 %v124_v20, %v38_v22 }
  0x88   :  { %v40_v24 = vmul.f32 0.5, %v39_v23 }
  0x8a   :  { %v41_v25 = vsub.f32 1.5, %v40_v24 }
  0x8b   :  { %v126_v26 = vpop.eup %125 }
  0x8c   :  { %v48_v27 = vmul.f32 %v126_v26, %v36_v21  ;;  %v42_v28 = vmul.f32 %v124_v20, %v41_v25  ;;  %vm54_vm5 = vweird.f32 %v126_v26 }
  0x8d   :  { %vm55_vm7 = vmor %vm53_vm6, %vm54_vm5 }
  0x8e   :  { %v49_v29 = vmul.f32 %v126_v26, %v48_v27  ;;  %v46_v31 = vsel %vm45_vm4, %v124_v20, %v42_v28 }
  0x8f   :  { %v57_v34 = vmul.f32 %v46_v31, %v15_v0 }
  0x90   :  { %v50_v30 = vmul.f32 0.5, %v49_v29 }
  0x91   :  { %v63_v38 = vmul.f32 %v120_v35, %v57_v34 }
  0x92   :  { %v51_v32 = vsub.f32 1.5, %v50_v30 }
  0x94   :  { %v52_v33 = vmul.f32 %v126_v26, %v51_v32 }
  0x96   :  { %v56_v36 = vsel %vm55_vm7, %v126_v26, %v52_v33 }
  0x97   :  { %v58_v37 = vmul.f32 %v56_v36, %v16_v2 }
  0x99   :  { %v64_v39 = vmul.f32 %v120_v35, %v58_v37 }
  0x9b   :  { %v65_v40 = vpack.c.bf16 %v64_v39, %v63_v38 }
  0x9d   :  { %116 = vmatmul.msk.bf16.vlgmr.msra.gmra.mxu0 %vm19_vm0, %v65_v40 }
 0x11a   :  { %v94_v41 = vpop.f32.mrf.mxu0 }
 0x11b   :  { %v99_v42 = vpack.c.bf16 %v94_v41, %v94_v41 }
 0x11d   :  { %102 = vst.msk [vmem:[%s175_s3] sm:$0xf] %vm101_vm8, %v99_v42 }
 0x122   :  { %v96_v43 = vpop.f32.mrf.mxu0 }
 0x123   :  { %v100_v44 = vpack.c.bf16 %v96_v43, %v96_v43 }
 0x125   :  { %103 = vst.msk [vmem:[%s175_s3 + $0x4] sm:$0xf] %vm101_vm8, %v100_v44 }

// kernel: transformer_forward.45
= control target key start
LH: loop header
LB: loop body
LE: loop exit
PB: predicated region body
PF: predicated region fallthrough
CT: control target
= control target key end

     0   :  { %vm17_vm0 = vcmask 261120   ;;  %v85_v6 = vmov 32.0   ;;  %s133_s0 = inlined_call_operand.vmem [shape: f32[16,32], index: 0, kind: input, shape index: {}]   ;;  %s134_s1 = inlined_call_operand.vmem [shape: f32[1,32], index: 1, kind: input, shape index: {}]   ;;  %s135_s2 = inlined_call_operand.vmem [shape: f32[16,32], index: 2, kind: output, shape index: {0}]   ;;  %s136_s3 = inlined_call_operand.vmem [shape: f32[16,32], index: 3, kind: output, shape index: {1}]  }
   0x1   :  { %v13_v0 = vld [vmem:[%s133_s0] sm:$0xff]  ;;  %v14_v2 = vld [vmem:[%s133_s0 + $0x8] sm:$0xff]  ;;  %79 = vrcp.f32 %v85_v6 }
   0x2   :  { %v15_v1 = vmul.f32 %v13_v0, %v13_v0  ;;  %v16_v4 = vmul.f32 %v14_v2, %v14_v2  ;;  %v78_v27 = vld [vmem:[%s134_s1] ss:$0 sm:$0xff] }
   0x4   :  { %v18_v3 = vsel %vm17_vm0, %v15_v1, 0.0  ;;  %v21_v5 = vsel %vm17_vm0, %v16_v4, 0.0 }
   0x5   :  { %19 = vadd.xlane.f32.xlu0 %v18_v3 }
   0x7   :  { %v80_v7 = vpop.eup %79 }
   0x8   :  { %v25_v8 = vmul.f32 32.0, %v80_v7  ;;  %vm29_vm1 = vweird.f32 %v80_v7 }
   0xa   :  { %v26_v9 = vsub.f32 1.0, %v25_v8 }
   0xc   :  { %v27_v10 = vmul.f32 %v80_v7, %v26_v9 }
   0xd   :  { %22 = vadd.xlane.f32.xlu0 %v21_v5 }
   0xe   :  { %v28_v11 = vadd.f32 %v80_v7, %v27_v10 }
  0x10   :  { %v30_v12 = vsel %vm29_vm1, %v80_v7, %v28_v11 }
  0x78   :  { %v20_v13 = vpop.xlane.xlu0 %19 }
  0x79   :  { %v31_v14 = vmul.f32 %v30_v12, %v20_v13 }
  0x7b   :  { %v33_v15 = vadd.f32 1e-06, %v31_v14 }
  0x7d   :  { %81 = vrsqrt.f32 %v33_v15  ;;  %vm41_vm3 = vweird.f32 %v33_v15 }
  0x80   :  { %v23_v16 = vpop.xlane.xlu0 %22 }
  0x81   :  { %v32_v17 = vmul.f32 %v30_v12, %v23_v16 }
  0x83   :  { %v82_v18 = vpop.eup %81  ;;  %v34_v19 = vadd.f32 1e-06, %v32_v17 }
  0x84   :  { %v36_v20 = vmul.f32 %v82_v18, %v33_v15  ;;  %vm42_vm2 = vweird.f32 %v82_v18 }
  0x85   :  { %83 = vrsqrt.f32 %v34_v19  ;;  %vm43_vm4 = vmor %vm41_vm3, %vm42_vm2  ;;  %vm51_vm6 = vweird.f32 %v34_v19 }
  0x86   :  { %v37_v21 = vmul.f32 %v82_v18, %v36_v20 }
  0x88   :  { %v38_v22 = vmul.f32 0.5, %v37_v21 }
  0x8a   :  { %v39_v23 = vsub.f32 1.5, %v38_v22 }
  0x8b   :  { %v84_v24 = vpop.eup %83 }
  0x8c   :  { %v40_v25 = vmul.f32 %v82_v18, %v39_v23  ;;  %v46_v26 = vmul.f32 %v84_v24, %v34_v19  ;;  %vm52_vm5 = vweird.f32 %v84_v24 }
  0x8d   :  { %vm53_vm7 = vmor %vm51_vm6, %vm52_vm5 }
  0x8e   :  { %v44_v28 = vsel %vm43_vm4, %v82_v18, %v40_v25  ;;  %v47_v29 = vmul.f32 %v84_v24, %v46_v26 }
  0x8f   :  { %v55_v30 = vmul.f32 %v44_v28, %v13_v0 }
  0x90   :  { %v48_v31 = vmul.f32 0.5, %v47_v29 }
  0x91   :  { %v61_v32 = vmul.f32 %v78_v27, %v55_v30 }
  0x92   :  { %v49_v33 = vsub.f32 1.5, %v48_v31 }
  0x93   :  { %63 = vst.msk [vmem:[%s135_s2] sm:$0xff] %vm17_vm0, %v61_v32  ;;  %v65_v34 = vadd.f32 %v61_v32, %v13_v0 }
  0x94   :  { %v50_v35 = vmul.f32 %v84_v24, %v49_v33 }
  0x95   :  { %67 = vst.msk [vmem:[%s136_s3] sm:$0xff] %vm17_vm0, %v65_v34 }
  0x96   :  { %v54_v36 = vsel %vm53_vm7, %v84_v24, %v50_v35 }
  0x97   :  { %v56_v37 = vmul.f32 %v54_v36, %v14_v2 }
  0x99   :  { %v62_v38 = vmul.f32 %v78_v27, %v56_v37 }
  0x9b   :  { %64 = vst.msk [vmem:[%s135_s2 + $0x8] sm:$0xff] %vm17_vm0, %v62_v38  ;;  %v66_v39 = vadd.f32 %v62_v38, %v14_v2 }
  0x9d   :  { %68 = vst.msk [vmem:[%s136_s3 + $0x8] sm:$0xff] %vm17_vm0, %v66_v39 }

// kernel: transformer_forward.48
= control target key start
LH: loop header
LB: loop body
LE: loop exit
PB: predicated region body
PF: predicated region fallthrough
CT: control target
= control target key end

     0   :  { %8 = vsyncpa [#allocation3], 0  ;;  %s984_s12 = smov 0   ;;  %s986_s13 = smov 0   ;;  %s1106_s0 = inlined_call_operand.vmem [shape: f32[4], index: 0, kind: input, shape index: {}]   ;;  %s1107_s1 = inlined_call_operand.vmem [shape: bf16[2,8,64], index: 1, kind: input, shape index: {}]   ;;  %s1108_s2 = inlined_call_operand.vmem [shape: bf16[2,8,96], index: 2, kind: input, shape index: {}]   ;;  %s1109_s3 = inlined_call_operand.vmem [shape: bf16[2,8,32], index: 3, kind: output, shape index: {}]  }
   0x1   :  { %s988_s14 = smov 0  }
   0x2 LB: > { %s782_s15 = sadd.s32 4294967295, %s947_s14   ;;  %s26_s16 = sadd.s32 1, %s943_s13  ;;  %s947_s14 = sphi %s988_s14, %s14_s14   ;;  %s943_s13 = sphi %s986_s13, %s1111_s13   ;;  %s939_s12 = sphi %s984_s12, %s1110_s12  }
   0x3   : > { %p28_p0 = scmp.ge.s32.totalorder %s26_s16, 2  ;;  %p784_p1 = scmp.ge.s32.totalorder %s947_s14, 1 }
   0x4   : > { %p134_p2 = scmp.lt.s32.totalorder %s947_s14, 3  ;;  %p817_p4 = scmp.eq.s32.totalorder %s782_s15, 0 }
   0x5   : > { %s1113_s16 = smov (%p28_p0, %s26_s16), 0  ;;  %s146_s19 = sshll.u32 %s1106_s0, 4  ;;  %s147_s19 = int_to_ptr.vmem [resolvable:$true] %s146_s19 }
   0x6   : > { %p135_p3 = pnand %p784_p1, %p134_p2  ;;  %s949_s20 = smov [#allocation2]  }
   0x8   : > { %p813_p5 = pneg %p135_p3  ;;  %176 = sbr.rel (%p135_p3) target bundleno = 2427 (0x97b), region = 32 }
   0xa   : > { %p814_p6 = pnand %p817_p4, %p813_p5 }
   0xc   : > { %816 = dma.vmem_to_smem (!%p814_p6), %s147_s19, 16, %s949_s20, [#allocation3]  }
   0xd   : > { %934 = dma.done.wait (%p817_p4), [#allocation3], 16  }
   0xe   : > { %936 = vsyncadd (%p817_p4), [#allocation3], 4294967280 }
   0xf   : > { %183 = sfence }
  0x10   : > { %p210_p7 = scmp.lt.s32.totalorder %s939_s12, 1  ;;  %s950_s28 = smov 120   ;;  %vm231_vm0 = vcmask 64512   ;;  %vm325_vm1 = vcmask 1043456   ;;  %vm676_vm2 = vcmask 130048   ;;  %vm678_vm3 = vcmask 195584  }
  0x11   : > { %s951_s29 = smov 104   ;;  %s952_s30 = smov 64   ;;  %vm681_vm4 = vcmask 257024  }
  0x12   : > { %s1115_s12 = smov (!%p210_p7, %s939_s12), 1  ;;  %s304_s4 = sld [smem:[#allocation2]] }
  0x13   : > { %s1006_s21 = sshll.u32 %s1115_s12, 2  ;;  %s953_s5 = smov 112  }
  0x14   : > { %s220_s24 = scalar_lea.vmem %s1108_s2, %s1006_s21  ;;  %s216_s27 = scalar_lea.vmem %s1107_s1, %s1006_s21 }
  0x15   : > { %v230_v0 = vld [vmem:[%s220_s24] sm:$0xf]  ;;  %s954_s6 = smov 96   ;;  %s955_s7 = smov 56  }
  0x16   : > { %v258_v1 = vunpack.c.l.b16 %v230_v0  ;;  %v229_v2 = vld [vmem:[%s216_s27] sm:$0xf]  ;;  %v236_v6 = vsel %vm231_vm0, %v230_v0, 0  ;;  %s956_s8 = smov 88   ;;  %s797_s9 = sld [smem:[#allocation2 + $0x1]] }
  0x17   : > { %v253_v4 = vunpack.c.l.b16 %v229_v2  ;;  %245 = vmatpush.bf16.xpose.msra.mxu0 %v236_v6  ;;  %s957_s10 = smov 80   ;;  %s958_s11 = smov 72  }
  0x18   : > { %v1016_v3 = vpack.c.b16 %v258_v1, %v258_v1  ;;  %v305_v32 = vstv %s304_s4  ;;  %s801_s12 = sld [smem:[#allocation2 + $0x2]]  ;;  %s959_s17 = smov 48  }
  0x19   : > { %v1019_v5 = vpack.c.b16 %v253_v4, %v253_v4  ;;  %s805_s15 = sld [smem:[#allocation2 + $0x3]]  ;;  %s960_s18 = smov 40  }
  0x1a   : > { %260 = vrot.lane.b32.xlu0 %v1016_v3, %s950_s28  ;;  %s961_s19 = smov 8   ;;  %s962_s20 = smov 16  }
  0x1b   : > { %s963_s22 = smov 24   ;;  %s227_s25 = scalar_lea.vmem %s1109_s3, %s1006_s21 }
  0x1e   : > { %792 = vmatmul.msk.bf16.vlgmr.msra.gmra.mxu0 %vm231_vm0, %v229_v2 }
  0x22   : > { %255 = vrot.lane.b32.xlu0 %v1019_v5, %s950_s28 }
  0x8c   : > { %v261_v7 = vpop.permute.xlu0 %260 }
  0x8d   : > { %v266_v8 = vsel %vm231_vm0, %v261_v7, 0 }
  0x8e   : > { %275 = vmatpush.bf16.xpose.msra.mxu1 %v266_v8 }
  0x94   : > { %v256_v9 = vpop.permute.xlu0 %255 }
  0x95   : > { %793 = vmatmul.msk.bf16.vlgmr.msra.gmra.mxu1 %vm231_vm0, %v256_v9 }
  0x9b   : > { %v247_v10 = vpop.f32.mrf.mxu0 }
  0x9c   : > { %v251_v15 = vmul.f32 0.35355338, %v247_v10 }
  0x9e   : > { %v282_v17 = vsel %vm231_vm0, %v251_v15, -inf }
  0xa3   : > { %v249_v11 = vpop.f32.mrf.mxu0 }
 0x112   : > { %v277_v12 = vpop.f32.mrf.mxu1 }
 0x113   : > { %v281_v13 = vmul.f32 0.35355338, %v277_v12 }
 0x115   : > { %v293_v14 = vsel %vm231_vm0, %v281_v13, -inf }
 0x116   : > { %294 = vmax.xlane.f32.xlu1 %v293_v14 }
 0x11a   : > { %v279_v16 = vpop.f32.mrf.mxu1 }
 0x11e   : > { %283 = vmax.xlane.f32.xlu1 %v282_v17 }
 0x137   : > { %368 = vrot.lane.b32.xlu1 %v1016_v3, %s951_s29 }
 0x189   : > { %v295_v18 = vpop.xlane.xlu1 %294 }
 0x18a   : > { %v296_v19 = vsub.f32 %v281_v13, %v295_v18 }
 0x18c   : > { %v297_v20 = vmul.f32 1.442695, %v296_v19  ;;  %v413_v19 = vstv %s797_s9 }
 0x18e   : > { %858 = vpow2.f32 %v297_v20 }
 0x191   : > { %v284_v21 = vpop.xlane.xlu1 %283 }
 0x192   : > { %v285_v22 = vsub.f32 %v251_v15, %v284_v21 }
 0x194   : > { %v859_v23 = vpop.eup %858  ;;  %v286_v24 = vmul.f32 1.442695, %v285_v22 }
 0x195   : > { %v299_v25 = vsel %vm231_vm0, %v859_v23, 0.0 }
 0x196   : > { %860 = vpow2.f32 %v286_v24  ;;  %300 = vadd.xlane.f32.xlu2 %v299_v25 }
 0x19c   : > { %v861_v26 = vpop.eup %860 }
 0x19d   : > { %v288_v27 = vsel %vm231_vm0, %v861_v26, 0.0 }
 0x19e   : > { %289 = vadd.xlane.f32.xlu2 %v288_v27 }
 0x1a9   : > { %v369_v42 = vpop.permute.xlu1 %368 }
 0x1aa   : > { %v374_v44 = vsel %vm231_vm0, %v369_v42, 0 }
 0x1b6   : > { %320 = vrot.lane.b32.xlu2 %v1016_v3, %s952_s30 }
 0x1be   : > { %344 = vrot.lane.b32.xlu2 %v1016_v3, %s953_s5 }
 0x1c6   : > { %366 = vrot.lane.b32.xlu2 %v1019_v5, %s951_s29 }
 0x209   : > { %v301_v28 = vpop.xlane.xlu2 %300 }
 0x20a   : > { %862 = vrcp.f32 %v301_v28 }
 0x210   : > { %v863_v30 = vpop.eup %862 }
 0x211   : > { %v290_v29 = vpop.xlane.xlu2 %289  ;;  %v303_v31 = vmul.f32 %v863_v30, %v859_v23 }
 0x212   : > { %864 = vrcp.f32 %v290_v29 }
 0x213   : > { %v306_v35 = vmul.f32 %v305_v32, %v303_v31 }
 0x218   : > { %v865_v33 = vpop.eup %864 }
 0x219   : > { %v292_v34 = vmul.f32 %v865_v33, %v861_v26  ;;  %v321_v41 = vpop.permute.xlu2 %320 }
 0x21a   : > { %v327_v43 = vsel %vm325_vm1, %v321_v41, 0 }
 0x21b   : > { %v307_v36 = vsub.f32 %v292_v34, %v306_v35  ;;  %336 = vmatpush.bf16.msra.mxu2 %v327_v43 }
 0x21d   : > { %v308_v37 = vsel %vm231_vm0, %v307_v36, -inf }
 0x21e   : > { %309 = vmax.xlane.f32.xlu0 %v308_v37 }
 0x21f   : > { %383 = vmatpush.bf16.xpose.msrb.mxu2 %v374_v44 }
 0x221   : > { %v345_v47 = vpop.permute.xlu2 %344 }
 0x222   : > { %v350_v48 = vsel %vm231_vm0, %v345_v47, 0 }
 0x223   : > { %359 = vmatpush.bf16.xpose.msra.mxu3 %v350_v48 }
 0x229   : > { %v367_v54 = vpop.permute.xlu2 %366 }
 0x291   : > { %v310_v38 = vpop.xlane.xlu0 %309 }
 0x292   : > { %v311_v39 = vsub.f32 %v307_v36, %v310_v38 }
 0x294   : > { %v312_v40 = vmul.f32 1.442695, %v311_v39 }
 0x296   : > { %866 = vpow2.f32 %v312_v40 }
 0x29c   : > { %v867_v45 = vpop.eup %866 }
 0x29d   : > { %v314_v46 = vsel %vm231_vm0, %v867_v45, 0.0 }
 0x29e   : > { %315 = vadd.xlane.f32.xlu1 %v314_v46 }
 0x2b7   : > { %342 = vrot.lane.b32.xlu1 %v1019_v5, %s953_s5 }
 0x311   : > { %v316_v49 = vpop.xlane.xlu1 %315 }
 0x312   : > { %868 = vrcp.f32 %v316_v49 }
 0x318   : > { %v869_v50 = vpop.eup %868 }
 0x319   : > { %v318_v51 = vmul.f32 %v869_v50, %v867_v45 }
 0x31b   : > { %v319_v52 = vpack.c.bf16 %v318_v51, %v318_v51 }
 0x31d   : > { %794 = vmatmul.msk.bf16.vlgmr.msra.gmra.mxu2 %vm231_vm0, %v319_v52 }
 0x329   : > { %v343_v53 = vpop.permute.xlu1 %342 }
 0x32a   : > { %795 = vmatmul.msk.bf16.vlgmr.msra.gmra.mxu3 %vm231_vm0, %v343_v53 }
 0x32d   : > { %796 = vmatmul.msk.bf16.vlgmr.msrb.gmra.mxu2 %vm231_vm0, %v367_v54 }
 0x3a0   : > { %v1043_v55 = vpop.f32.mrf.mxu2 }
 0x3a8   : > { %v340_v56 = vpop.f32.mrf.mxu2 }
 0x3ad   : > { %v361_v57 = vpop.f32.mrf.mxu3 }
 0x3ae   : > { %v365_v58 = vmul.f32 0.35355338, %v361_v57 }
 0x3b0   : > { %v385_v59 = vpop.f32.mrf.mxu2  ;;  %v390_v60 = vsel %vm231_vm0, %v365_v58, -inf }
 0x3b1   : > { %v389_v61 = vmul.f32 0.35355338, %v385_v59  ;;  %391 = vmax.xlane.f32.xlu1 %v390_v60 }
 0x3b3   : > { %v401_v62 = vsel %vm231_vm0, %v389_v61, -inf }
 0x3b4   : > { %402 = vmax.xlane.f32.xlu2 %v401_v62 }
 0x3b5   : > { %v363_v63 = vpop.f32.mrf.mxu3 }
 0x3b8   : > { %v387_v0 = vpop.f32.mrf.mxu2 }
 0x3ca   : > { %449 = vrot.lane.b32.xlu1 %v1019_v5, %s954_s6 }
 0x3cc   : > { %428 = vrot.lane.b32.xlu2 %v1016_v3, %s955_s7 }
 0x3d2   : > { %558 = vrot.lane.b32.xlu1 %v1016_v3, %s957_s10 }
 0x3d4   : > { %473 = vrot.lane.b32.xlu2 %v1019_v5, %s956_s8 }
 0x3dc   : > { %556 = vrot.lane.b32.xlu2 %v1019_v5, %s957_s10 }
 0x424   : > { %v392_v1 = vpop.xlane.xlu1 %391 }
 0x425   : > { %v393_v2 = vsub.f32 %v365_v58, %v392_v1 }
 0x427   : > { %v394_v4 = vmul.f32 1.442695, %v393_v2  ;;  %v403_v8 = vpop.xlane.xlu2 %402 }
 0x428   : > { %v404_v9 = vsub.f32 %v389_v61, %v403_v8 }
 0x429   : > { %870 = vpow2.f32 %v394_v4 }
 0x42a   : > { %v405_v10 = vmul.f32 1.442695, %v404_v9 }
 0x42c   : > { %872 = vpow2.f32 %v405_v10 }
 0x42f   : > { %v871_v6 = vpop.eup %870  ;;  %v429_v27 = vpop.permute.xlu2 %428 }
 0x430   : > { %v396_v7 = vsel %vm231_vm0, %v871_v6, 0.0  ;;  %v434_v32 = vsel %vm325_vm1, %v429_v27, 0 }
 0x431   : > { %397 = vadd.xlane.f32.xlu0 %v396_v7  ;;  %443 = vmatpush.bf16.msrb.mxu0 %v434_v32 }
 0x432   : > { %v873_v11 = vpop.eup %872 }
 0x433   : > { %v407_v12 = vsel %vm231_vm0, %v873_v11, 0.0 }
 0x437   : > { %v474_v28 = vpop.permute.xlu2 %473 }
 0x43c   : > { %v450_v29 = vpop.permute.xlu1 %449 }
 0x43f   : > { %v557_v52 = vpop.permute.xlu2 %556 }
 0x444   : > { %v559_v38 = vpop.permute.xlu1 %558 }
 0x445   : > { %451 = vrot.lane.b32.xlu0 %v1016_v3, %s954_s6  ;;  %v564_v40 = vsel %vm231_vm0, %v559_v38, 0 }
 0x446   : > { %573 = vmatpush.bf16.xpose.msra.mxu0 %v564_v40 }
 0x46f   : > { %408 = vadd.xlane.f32.xlu0 %v407_v12 }
 0x483   : > { %475 = vrot.lane.b32.xlu0 %v1016_v3, %s956_s8 }
 0x4a4   : > { %v398_v13 = vpop.xlane.xlu0 %397 }
 0x4a5   : > { %874 = vrcp.f32 %v398_v13 }
 0x4ab   : > { %v875_v17 = vpop.eup %874 }
 0x4ac   : > { %v400_v21 = vmul.f32 %v875_v17, %v871_v6 }
 0x4b7   : > { %v452_v14 = vpop.permute.xlu0 %451 }
 0x4b8   : > { %v457_v15 = vsel %vm231_vm0, %v452_v14, 0 }
 0x4b9   : > { %466 = vmatpush.bf16.xpose.msrb.mxu1 %v457_v15 }
 0x4c0   : > { %799 = vmatmul.msk.bf16.vlgmr.msrb.gmra.mxu1 %vm231_vm0, %v450_v29 }
 0x4e2   : > { %v409_v16 = vpop.xlane.xlu0 %408 }
 0x4e3   : > { %876 = vrcp.f32 %v409_v16 }
 0x4e9   : > { %v877_v18 = vpop.eup %876 }
 0x4ea   : > { %v411_v20 = vmul.f32 %v877_v18, %v873_v11 }
 0x4ec   : > { %v414_v22 = vmul.f32 %v413_v19, %v411_v20 }
 0x4ee   : > { %v415_v23 = vsub.f32 %v400_v21, %v414_v22 }
 0x4f0   : > { %v416_v24 = vsel %vm231_vm0, %v415_v23, -inf }
 0x4f1   : > { %417 = vmax.xlane.f32.xlu0 %v416_v24 }
 0x4f5   : > { %v476_v25 = vpop.permute.xlu0 %475 }
 0x4f6   : > { %v481_v26 = vsel %vm231_vm0, %v476_v25, 0 }
 0x4f7   : > { %490 = vmatpush.bf16.xpose.msrb.mxu3 %v481_v26  ;;  %v520_v26 = vstv %s801_s12 }
 0x4fe   : > { %800 = vmatmul.msk.bf16.vlgmr.msrb.gmra.mxu3 %vm231_vm0, %v474_v28 }
 0x505   : > { %582 = vrot.lane.b32.xlu0 %v1016_v3, %s958_s11 }
 0x53d   : > { %v468_v42 = vpop.f32.mrf.mxu1 }
 0x53e   : > { %v472_v43 = vmul.f32 0.35355338, %v468_v42 }
 0x540   : > { %v497_v45 = vsel %vm231_vm0, %v472_v43, -inf }
 0x541   : > { %498 = vmax.xlane.f32.xlu2 %v497_v45 }
 0x545   : > { %v470_v47 = vpop.f32.mrf.mxu1 }
 0x564   : > { %v418_v30 = vpop.xlane.xlu0 %417 }
 0x565   : > { %v419_v31 = vsub.f32 %v415_v23, %v418_v30 }
 0x567   : > { %v420_v33 = vmul.f32 1.442695, %v419_v31 }
 0x569   : > { %878 = vpow2.f32 %v420_v33 }
 0x56f   : > { %v879_v34 = vpop.eup %878 }
 0x570   : > { %v422_v35 = vsel %vm231_vm0, %v879_v34, 0.0 }
 0x571   : > { %423 = vadd.xlane.f32.xlu0 %v422_v35 }
 0x577   : > { %v583_v36 = vpop.permute.xlu0 %582 }
 0x578   : > { %v588_v37 = vsel %vm231_vm0, %v583_v36, 0  ;;  %v627_v36 = vstv %s805_s15 }
 0x579   : > { %597 = vmatpush.bf16.xpose.msra.mxu1 %v588_v37 }
 0x581   : > { %v492_v39 = vpop.f32.mrf.mxu3 }
 0x582   : > { %v496_v41 = vmul.f32 0.35355338, %v492_v39 }
 0x584   : > { %v508_v44 = vsel %vm231_vm0, %v496_v41, -inf }
 0x585   : > { %580 = vrot.lane.b32.xlu0 %v1019_v5, %s958_s11  ;;  %509 = vmax.xlane.f32.xlu1 %v508_v44 }
 0x589   : > { %v494_v46 = vpop.f32.mrf.mxu3 }
 0x5b4   : > { %v499_v58 = vpop.xlane.xlu2 %498 }
 0x5b5   : > { %v500_v62 = vsub.f32 %v472_v43, %v499_v58 }
 0x5b7   : > { %v501_v0 = vmul.f32 1.442695, %v500_v62 }
 0x5e4   : > { %v424_v48 = vpop.xlane.xlu0 %423 }
 0x5e5   : > { %880 = vrcp.f32 %v424_v48 }
 0x5eb   : > { %v881_v49 = vpop.eup %880 }
 0x5ec   : > { %v426_v5 = vmul.f32 %v881_v49, %v879_v34 }
 0x5ee   : > { %v427_v50 = vpack.c.bf16 %v426_v5, %v426_v5 }
 0x5f0   : > { %798 = vmatmul.msk.bf16.vlgmr.msrb.gmra.mxu0 %vm231_vm0, %v427_v50 }
 0x5f7   : > { %v581_v51 = vpop.permute.xlu0 %580 }
 0x5f8   : > { %804 = vmatmul.msk.bf16.vlgmr.msra.gmra.mxu1 %vm231_vm0, %v581_v51  ;;  %v510_v53 = vpop.xlane.xlu1 %509 }
 0x5f9   : > { %v511_v56 = vsub.f32 %v496_v41, %v510_v53 }
 0x5fb   : > { %v512_v57 = vmul.f32 1.442695, %v511_v56 }
 0x5fd   : > { %882 = vpow2.f32 %v512_v57 }
 0x5fe   : > { %884 = vpow2.f32 %v501_v0 }
 0x600   : > { %803 = vmatmul.msk.bf16.vlgmr.msra.gmra.mxu0 %vm231_vm0, %v557_v52 }
 0x603   : > { %v883_v1 = vpop.eup %882 }
 0x604   : > { %v514_v7 = vsel %vm231_vm0, %v883_v1, 0.0  ;;  %v885_v9 = vpop.eup %884 }
 0x605   : > { %v503_v11 = vsel %vm231_vm0, %v885_v9, 0.0 }
 0x66d   : > { %v1072_v54 = vpop.f32.mrf.mxu0 }
 0x675   : > { %v447_v59 = vpop.f32.mrf.mxu0  ;;  %v599_v60 = vpop.f32.mrf.mxu1 }
 0x676   : > { %v603_v61 = vmul.f32 0.35355338, %v599_v60 }
 0x678   : > { %v615_v63 = vsel %vm231_vm0, %v603_v61, -inf }
 0x679   : > { %616 = vmax.xlane.f32.xlu0 %v615_v63 }
 0x67d   : > { %v575_v2 = vpop.f32.mrf.mxu0  ;;  %v601_v4 = vpop.f32.mrf.mxu1 }
 0x67e   : > { %v579_v6 = vmul.f32 0.35355338, %v575_v2 }
 0x680   : > { %v604_v8 = vsel %vm231_vm0, %v579_v6, -inf }
 0x681   : > { %515 = vadd.xlane.f32.xlu0 %v514_v7  ;;  %605 = vmax.xlane.f32.xlu1 %v604_v8 }
 0x685   : > { %v577_v10 = vpop.f32.mrf.mxu0 }
 0x689   : > { %504 = vadd.xlane.f32.xlu1 %v503_v11 }
 0x6ec   : > { %v617_v12 = vpop.xlane.xlu0 %616 }
 0x6ed   : > { %v618_v13 = vsub.f32 %v603_v61, %v617_v12 }
 0x6ef   : > { %v619_v14 = vmul.f32 1.442695, %v618_v13 }
 0x6f1   : > { %886 = vpow2.f32 %v619_v14 }
 0x6f4   : > { %v516_v15 = vpop.xlane.xlu0 %515  ;;  %v606_v16 = vpop.xlane.xlu1 %605 }
 0x6f5   : > { %v607_v17 = vsub.f32 %v579_v6, %v606_v16  ;;  %888 = vrcp.f32 %v516_v15 }
 0x6f7   : > { %v887_v18 = vpop.eup %886  ;;  %v608_v19 = vmul.f32 1.442695, %v607_v17 }
 0x6f8   : > { %v621_v20 = vsel %vm231_vm0, %v887_v18, 0.0 }
 0x6f9   : > { %890 = vpow2.f32 %v608_v19  ;;  %622 = vadd.xlane.f32.xlu2 %v621_v20 }
 0x6fb   : > { %v889_v22 = vpop.eup %888 }
 0x6fc   : > { %v505_v21 = vpop.xlane.xlu1 %504  ;;  %v518_v25 = vmul.f32 %v889_v22, %v883_v1 }
 0x6fd   : > { %892 = vrcp.f32 %v505_v21 }
 0x6fe   : > { %v521_v29 = vmul.f32 %v520_v26, %v518_v25 }
 0x6ff   : > { %v891_v23 = vpop.eup %890 }
 0x700   : > { %v610_v24 = vsel %vm231_vm0, %v891_v23, 0.0 }
 0x701   : > { %611 = vadd.xlane.f32.xlu0 %v610_v24 }
 0x703   : > { %v893_v27 = vpop.eup %892 }
 0x704   : > { %v507_v28 = vmul.f32 %v893_v27, %v885_v9 }
 0x706   : > { %v522_v30 = vsub.f32 %v507_v28, %v521_v29 }
 0x708   : > { %v523_v31 = vsel %vm231_vm0, %v522_v30, -inf }
 0x709   : > { %524 = vmax.xlane.f32.xlu2 %v523_v31 }
 0x76c   : > { %v623_v32 = vpop.xlane.xlu2 %622 }
 0x76d   : > { %894 = vrcp.f32 %v623_v32 }
 0x773   : > { %v895_v34 = vpop.eup %894 }
 0x774   : > { %v612_v33 = vpop.xlane.xlu0 %611  ;;  %v625_v35 = vmul.f32 %v895_v34, %v887_v18 }
 0x775   : > { %896 = vrcp.f32 %v612_v33 }
 0x776   : > { %v628_v40 = vmul.f32 %v627_v36, %v625_v35 }
 0x77b   : > { %v897_v37 = vpop.eup %896 }
 0x77c   : > { %v525_v38 = vpop.xlane.xlu2 %524  ;;  %v614_v39 = vmul.f32 %v897_v37, %v891_v23 }
 0x77d   : > { %v526_v41 = vsub.f32 %v522_v30, %v525_v38 }
 0x77e   : > { %v629_v42 = vsub.f32 %v614_v39, %v628_v40 }
 0x77f   : > { %v527_v43 = vmul.f32 1.442695, %v526_v41 }
 0x780   : > { %v630_v44 = vsel %vm231_vm0, %v629_v42, -inf }
 0x781   : > { %898 = vpow2.f32 %v527_v43  ;;  %631 = vmax.xlane.f32.xlu1 %v630_v44 }
 0x787   : > { %v899_v45 = vpop.eup %898 }
 0x788   : > { %v529_v46 = vsel %vm231_vm0, %v899_v45, 0.0 }
 0x789   : > { %530 = vadd.xlane.f32.xlu0 %v529_v46 }
 0x79a   : > { %535 = vrot.lane.b32.xlu1 %v1016_v3, %s959_s17 }
 0x79d   : > { %642 = vrot.lane.b32.xlu0 %v1016_v3, %s960_s18 }
 0x7f4   : > { %v632_v47 = vpop.xlane.xlu1 %631 }
 0x7f5   : > { %v633_v48 = vsub.f32 %v629_v42, %v632_v47 }
 0x7f7   : > { %v634_v49 = vmul.f32 1.442695, %v633_v48 }
 0x7f9   : > { %900 = vpow2.f32 %v634_v49 }
 0x7fc   : > { %v531_v50 = vpop.xlane.xlu0 %530 }
 0x7fd   : > { %902 = vrcp.f32 %v531_v50 }
 0x7ff   : > { %v901_v5 = vpop.eup %900 }
 0x800   : > { %v636_v51 = vsel %vm231_vm0, %v901_v5, 0.0 }
 0x801   : > { %637 = vadd.xlane.f32.xlu2 %v636_v51 }
 0x803   : > { %v903_v52 = vpop.eup %902 }
 0x804   : > { %v533_v53 = vmul.f32 %v903_v52, %v899_v45 }
 0x806   : > { %v534_v58 = vpack.c.bf16 %v533_v53, %v533_v53 }
 0x80c   : > { %v536_v56 = vpop.permute.xlu1 %535 }
 0x80d   : > { %v541_v57 = vsel %vm325_vm1, %v536_v56, 0 }
 0x80e   : > { %550 = vmatpush.bf16.msra.mxu2 %v541_v57 }
 0x80f   : > { %v643_v59 = vpop.permute.xlu0 %642 }
 0x810   : > { %v648_v3 = vsel %vm325_vm1, %v643_v59, 0 }
 0x811   : > { %802 = vmatmul.msk.bf16.vlgmr.msra.gmra.mxu2 %vm231_vm0, %v534_v58  ;;  %657 = vmatpush.bf16.msra.mxu3 %v648_v3 }
 0x819   : > { %664 = vrot.lane.b32.xlu2 %v1072_v54, %s961_s19 }
 0x874   : > { %v638_v60 = vpop.xlane.xlu2 %637 }
 0x875   : > { %904 = vrcp.f32 %v638_v60 }
 0x87b   : > { %v905_v61 = vpop.eup %904 }
 0x87c   : > { %v640_v62 = vmul.f32 %v905_v61, %v901_v5  ;;  %v665_v6 = vpop.permute.xlu2 %664 }
 0x87d   : > { %v675_v54 = vsel %vm231_vm0, %v1043_v55, %v665_v6 }
 0x87e   : > { %v641_v63 = vpack.c.bf16 %v640_v62, %v640_v62 }
 0x880   : > { %806 = vmatmul.msk.bf16.vlgmr.msra.gmra.mxu3 %vm231_vm0, %v641_v63 }
 0x894   : > { %v552_v0 = vpop.f32.mrf.mxu2 }
 0x895   : > { %668 = vrot.lane.b32.xlu0 %v552_v0, %s962_s20 }
 0x89c   : > { %v554_v1 = vpop.f32.mrf.mxu2 }
 0x903   : > { %v659_v2 = vpop.f32.mrf.mxu3 }
 0x904   : > { %672 = vrot.lane.b32.xlu1 %v659_v2, %s963_s22 }
 0x907   : > { %v669_v7 = vpop.permute.xlu0 %668 }
 0x908   : > { %v677_v8 = vsel %vm676_vm2, %v675_v54, %v669_v7 }
 0x90b   : > { %v661_v4 = vpop.f32.mrf.mxu3 }
 0x976   : > { %v673_v9 = vpop.permute.xlu1 %672 }
 0x977   : > { %v679_v10 = vsel %vm678_vm3, %v677_v8, %v673_v9 }
 0x978   : > { %v680_v11 = vpack.c.bf16 %v679_v10, %v679_v10 }
 0x97a   : > { %682 = vst.msk [vmem:[%s227_s25] sm:$0xf] %vm681_vm4, %v680_v11 }
 0x97b PF: > { %s14_s14 = sadd.s32 1, %s947_s14   ;;  %s1110_s12 = smov %s943_s13 }
 0x97c   : > { %p11_p8 = scmp.ge.s32.totalorder %s14_s14, 4   ;;  %s1111_s13 = smov %s1113_s16 }
 0x97e   :  { %13 = sbr.rel (!%p11_p8) target bundleno = 2 (0x2), region = 70 }
 0x983   :  { %708 = vsyncpa [#allocation3], 1 }
 0x984   :  { %710 = vsyncpa [#allocation3 + $0x1], 1 }

// kernel: transformer_forward.51
= control target key start
LH: loop header
LB: loop body
LE: loop exit
PB: predicated region body
PF: predicated region fallthrough
CT: control target
= control target key end

     0   :  { %vm70_vm0 = vcmask 523264   ;;  %vm264_vm9 = vcmask 1043456   ;;  %vm265_vm10 = vcmask 343044   ;;  %s537_s1 = inlined_call_operand.vmem [shape: bf16[64,170], index: 1, kind: input, shape index: {}]   ;;  %s538_s2 = inlined_call_operand.vmem [shape: bf16[64,170], index: 2, kind: input, shape index: {}]   ;;  %s539_s0 = inlined_call_operand.vmem [shape: bf16[16,64], index: 0, kind: input, shape index: {}]   ;;  %s540_s3 = inlined_call_operand.vmem [shape: bf16[16,170], index: 3, kind: output, shape index: {}]  }
   0x1   :  { %v303_v0 = vld [vmem:[%s537_s1 + $0x30] sm:$0xf]  ;;  %v357_v1 = vld [vmem:[%s537_s1 + $0x34] sm:$0xf0]  ;;  %v356_v2 = vld [vmem:[%s537_s1 + $0x34] sm:$0xf] }
   0x2   :  { %v304_v3 = vor.u32 %v357_v1, %v303_v0  ;;  %v305_v4 = vld [vmem:[%s537_s1 + $0x38] sm:$0xf0]  ;;  %v295_v5 = vld [vmem:[%s537_s1 + $0x20] sm:$0xf]  ;;  %v355_v6 = vld [vmem:[%s537_s1 + $0x24] sm:$0xf0] }
   0x3   :  { %v308_v7 = vor.u32 %v356_v2, %v305_v4  ;;  %v354_v8 = vld [vmem:[%s537_s1 + $0x24] sm:$0xf]  ;;  %v297_v9 = vld [vmem:[%s537_s1 + $0x28] sm:$0xf0]  ;;  %v296_v10 = vor.u32 %v355_v6, %v295_v5  ;;  %v287_v12 = vld [vmem:[%s537_s1 + $0x10] sm:$0xf] }
   0x4   :  { %78 = vmatpush.bf16.msra.mxu0 %v304_v3  ;;  %v300_v11 = vor.u32 %v354_v8, %v297_v9  ;;  %v353_v13 = vld [vmem:[%s537_s1 + $0x14] sm:$0xf0]  ;;  %v352_v14 = vld [vmem:[%s537_s1 + $0x14] sm:$0xf]  ;;  %v289_v15 = vld [vmem:[%s537_s1 + $0x18] sm:$0xf0] }
   0x5   :  { %92 = vmatpush.bf16.msra.mxu1 %v308_v7  ;;  %v337_v16 = vld [vmem:[%s538_s2 + $0x30] sm:$0xf]  ;;  %v365_v17 = vld [vmem:[%s538_s2 + $0x34] sm:$0xf0]  ;;  %v364_v18 = vld [vmem:[%s538_s2 + $0x34] sm:$0xf]  ;;  %v288_v20 = vor.u32 %v353_v13, %v287_v12  ;;  %v292_v26 = vor.u32 %v352_v14, %v289_v15 }
   0x6   :  { %v339_v19 = vld [vmem:[%s538_s2 + $0x38] sm:$0xf0]  ;;  %v338_v21 = vor.u32 %v365_v17, %v337_v16  ;;  %v329_v23 = vld [vmem:[%s538_s2 + $0x20] sm:$0xf]  ;;  %v363_v24 = vld [vmem:[%s538_s2 + $0x24] sm:$0xf0] }
   0x7   :  { %v342_v22 = vor.u32 %v364_v18, %v339_v19  ;;  %v362_v25 = vld [vmem:[%s538_s2 + $0x24] sm:$0xf]  ;;  %v279_v27 = vld [vmem:[%s537_s1] sm:$0xf]  ;;  %v351_v28 = vld [vmem:[%s537_s1 + $0x4] sm:$0xf0]  ;;  %v330_v32 = vor.u32 %v363_v24, %v329_v23 }
   0x8   :  { %79 = vmatpush.bf16.msra.mxu0 %v296_v10  ;;  %v331_v29 = vld [vmem:[%s538_s2 + $0x28] sm:$0xf0]  ;;  %v350_v30 = vld [vmem:[%s537_s1 + $0x4] sm:$0xf]  ;;  %154 = vmatpush.bf16.msra.mxu2 %v338_v21  ;;  %v321_v34 = vld [vmem:[%s538_s2 + $0x10] sm:$0xf]  ;;  %v280_v38 = vor.u32 %v351_v28, %v279_v27 }
   0x9   :  { %93 = vmatpush.bf16.msra.mxu1 %v300_v11  ;;  %v281_v31 = vld [vmem:[%s537_s1 + $0x8] sm:$0xf0]  ;;  %168 = vmatpush.bf16.msra.mxu3 %v342_v22  ;;  %v334_v33 = vor.u32 %v362_v25, %v331_v29  ;;  %v361_v35 = vld [vmem:[%s538_s2 + $0x14] sm:$0xf0]  ;;  %v360_v36 = vld [vmem:[%s538_s2 + $0x14] sm:$0xf] }
   0xa   :  { %v323_v37 = vld [vmem:[%s538_s2 + $0x18] sm:$0xf0]  ;;  %v284_v39 = vor.u32 %v350_v30, %v281_v31  ;;  %v349_v40 = vld [vmem:[%s539_s0] sm:$0xff]  ;;  %v322_v41 = vor.u32 %v361_v35, %v321_v34  ;;  %v359_v44 = vld [vmem:[%s538_s2 + $0x4] sm:$0xf0] }
   0xb   :  { %v326_v42 = vor.u32 %v360_v36, %v323_v37  ;;  %v313_v43 = vld [vmem:[%s538_s2] sm:$0xf]  ;;  %v358_v45 = vld [vmem:[%s538_s2 + $0x4] sm:$0xf]  ;;  %v315_v46 = vld [vmem:[%s538_s2 + $0x8] sm:$0xf0] }
   0xc   :  { %80 = vmatpush.bf16.msra.mxu0 %v288_v20  ;;  %155 = vmatpush.bf16.msra.mxu2 %v330_v32  ;;  %v314_v47 = vor.u32 %v359_v44, %v313_v43  ;;  %v318_v48 = vor.u32 %v358_v45, %v315_v46  ;;  %vm519_vm13 = vmor %vm265_vm10, %vm264_vm9 }
   0xd   :  { %94 = vmatpush.bf16.msra.mxu1 %v292_v26  ;;  %169 = vmatpush.bf16.msra.mxu3 %v334_v33 }
  0x10   :  { %81 = vmatpush.bf16.msra.mxu0 %v280_v38  ;;  %156 = vmatpush.bf16.msra.mxu2 %v322_v41 }
  0x11   :  { %95 = vmatpush.bf16.msra.mxu1 %v284_v39  ;;  %170 = vmatpush.bf16.msra.mxu3 %v326_v42 }
  0x13   :  { %309 = vmatmul.msk.bf16.vlgmr.msra.gmra.mxu0 %vm70_vm0, %v349_v40 }
  0x14   :  { %310 = vmatmul.msk.bf16.vlgmr.msra.gmra.mxu1 %vm70_vm0, %v349_v40  ;;  %157 = vmatpush.bf16.msra.mxu2 %v314_v47 }
  0x15   :  { %171 = vmatpush.bf16.msra.mxu3 %v318_v48 }
  0x17   :  { %343 = vmatmul.msk.bf16.vlgmr.msra.gmra.mxu2 %vm70_vm0, %v349_v40 }
  0x18   :  { %344 = vmatmul.msk.bf16.vlgmr.msra.gmra.mxu3 %vm70_vm0, %v349_v40 }
  0x90   :  { %v83_v49 = vpop.f32.mrf.mxu0 }
  0x91   :  { %v345_v50 = vmul.f32 -1.442695, %v83_v49  ;;  %v97_v51 = vpop.f32.mrf.mxu1 }
  0x92   :  { %v346_v52 = vmul.f32 -1.442695, %v97_v51 }
  0x93   :  { %366 = vpow2.f32 %v345_v50 }
  0x94   :  { %368 = vpow2.f32 %v346_v52 }
  0x98   :  { %v501_v53 = vpop.f32.mrf.mxu0 }
  0x99   :  { %v367_v54 = vpop.eup %366  ;;  %v347_v55 = vmul.f32 -1.442695, %v501_v53  ;;  %v504_v56 = vpop.f32.mrf.mxu1 }
  0x9a   :  { %v369_v57 = vpop.eup %368  ;;  %v190_v58 = vadd.f32 1.0, %v367_v54  ;;  %v348_v59 = vmul.f32 -1.442695, %v504_v56  ;;  %v159_v27 = vpop.f32.mrf.mxu2 }
  0x9b   :  { %v191_v60 = vadd.f32 1.0, %v369_v57  ;;  %370 = vpow2.f32 %v347_v55  ;;  %v173_v33 = vpop.f32.mrf.mxu3 }
  0x9c   :  { %372 = vrcp.f32 %v190_v58  ;;  %v203_v6 = vand.u32 2147483647, %v190_v58  ;;  %v205_v7 = vand.u32 2147483648, %v190_v58  ;;  %vm199_vm3 = vweird.f32 %v190_v58 }
  0x9d   :  { %374 = vrcp.f32 %v191_v60  ;;  %v220_v10 = vand.u32 2147483648, %v191_v60  ;;  %v218_v12 = vand.u32 2147483647, %v191_v60  ;;  %vm214_vm5 = vweird.f32 %v191_v60 }
  0x9e   :  { %376 = vpow2.f32 %v348_v59  ;;  %v206_v15 = vor.u32 1.1754944e-38, %v205_v7  ;;  %vm204_vm6 = vcmp.eq.f32.partialorder %v203_v6, 8.507059e+37 }
  0x9f   :  { %v221_v18 = vor.u32 1.1754944e-38, %v220_v10  ;;  %vm219_vm8 = vcmp.eq.f32.partialorder %v218_v12, 8.507059e+37 }
  0xa1   :  { %v371_v61 = vpop.eup %370 }
  0xa2   :  { %v373_v62 = vpop.eup %372  ;;  %v507_v63 = vadd.f32 1.0, %v371_v61  ;;  %v161_v50 = vpop.f32.mrf.mxu2 }
  0xa3   :  { %v375_v0 = vpop.eup %374  ;;  %v195_v1 = vmul.f32 %v373_v62, %v190_v58  ;;  %vm200_vm1 = vweird.f32 %v373_v62  ;;  %v175_v54 = vpop.f32.mrf.mxu3 }
  0xa4   :  { %v377_v2 = vpop.eup %376  ;;  %v210_v3 = vmul.f32 %v375_v0, %v191_v60  ;;  %378 = vrcp.f32 %v507_v63  ;;  %vm215_vm2 = vweird.f32 %v375_v0  ;;  %vm201_vm4 = vmor %vm199_vm3, %vm200_vm1  ;;  %v235_v26 = vand.u32 2147483648, %v507_v63 }
  0xa5   :  { %v196_v4 = vsub.f32 1.0, %v195_v1  ;;  %v510_v5 = vadd.f32 1.0, %v377_v2  ;;  %vm216_vm7 = vmor %vm214_vm5, %vm215_vm2  ;;  %v233_v31 = vand.u32 2147483647, %v507_v63  ;;  %vm229_vm12 = vweird.f32 %v507_v63 }
  0xa6   :  { %v211_v8 = vsub.f32 1.0, %v210_v3  ;;  %v236_v37 = vor.u32 1.1754944e-38, %v235_v26 }
  0xa7   :  { %v197_v9 = vmul.f32 %v373_v62, %v196_v4  ;;  %380 = vrcp.f32 %v510_v5  ;;  %v250_v38 = vand.u32 2147483648, %v510_v5  ;;  %v248_v41 = vand.u32 2147483647, %v510_v5 }
  0xa8   :  { %v212_v11 = vmul.f32 %v375_v0, %v211_v8  ;;  %vm234_vm0 = vcmp.eq.f32.partialorder %v233_v31, 8.507059e+37  ;;  %vm244_vm1 = vweird.f32 %v510_v5 }
  0xa9   :  { %v198_v13 = vadd.f32 %v373_v62, %v197_v9  ;;  %v251_v47 = vor.u32 1.1754944e-38, %v250_v38  ;;  %vm249_vm3 = vcmp.eq.f32.partialorder %v248_v41, 8.507059e+37 }
  0xaa   :  { %v379_v14 = vpop.eup %378  ;;  %v213_v16 = vadd.f32 %v375_v0, %v212_v11 }
  0xab   :  { %v202_v17 = vsel %vm201_vm4, %v373_v62, %v198_v13  ;;  %v225_v19 = vmul.f32 %v379_v14, %v507_v63  ;;  %vm230_vm11 = vweird.f32 %v379_v14 }
  0xac   :  { %v207_v20 = vsel %vm204_vm6, %v206_v15, %v202_v17  ;;  %v217_v21 = vsel %vm216_vm7, %v375_v0, %v213_v16  ;;  %vm231_vm14 = vmor %vm229_vm12, %vm230_vm11 }
  0xad   :  { %v381_v22 = vpop.eup %380  ;;  %v254_v23 = vmul.f32 %v207_v20, %v83_v49  ;;  %v222_v24 = vsel %vm219_vm8, %v221_v18, %v217_v21  ;;  %v226_v25 = vsub.f32 1.0, %v225_v19 }
  0xae   :  { %v255_v28 = vmul.f32 %v222_v24, %v97_v51  ;;  %v240_v29 = vmul.f32 %v381_v22, %v510_v5  ;;  %vm245_vm15 = vweird.f32 %v381_v22 }
  0xaf   :  { %v227_v30 = vmul.f32 %v379_v14, %v226_v25  ;;  %v258_v32 = vmul.f32 %v254_v23, %v159_v27  ;;  %vm246_vm2 = vmor %vm244_vm1, %vm245_vm15 }
  0xb0   :  { %v241_v34 = vsub.f32 1.0, %v240_v29  ;;  %v259_v35 = vmul.f32 %v255_v28, %v173_v33 }
  0xb1   :  { %v228_v36 = vadd.f32 %v379_v14, %v227_v30 }
  0xb2   :  { %v242_v40 = vmul.f32 %v381_v22, %v241_v34  ;;  %v262_v42 = vpack.c.bf16 %v259_v35, %v258_v32 }
  0xb3   :  { %v232_v43 = vsel %vm231_vm14, %v379_v14, %v228_v36 }
  0xb4   :  { %v237_v44 = vsel %vm234_vm0, %v236_v37, %v232_v43  ;;  %v243_v45 = vadd.f32 %v381_v22, %v242_v40  ;;  %267 = vst.msk [vmem:[%s540_s3] sm:$0xff] %vm519_vm13, %v262_v42 }
  0xb5   :  { %v256_v46 = vmul.f32 %v237_v44, %v501_v53 }
  0xb6   :  { %v247_v48 = vsel %vm246_vm2, %v381_v22, %v243_v45 }
  0xb7   :  { %v252_v49 = vsel %vm249_vm3, %v251_v47, %v247_v48  ;;  %v260_v52 = vmul.f32 %v256_v46, %v161_v50 }
  0xb8   :  { %v257_v51 = vmul.f32 %v252_v49, %v504_v56 }
  0xba   :  { %v261_v55 = vmul.f32 %v257_v51, %v175_v54 }
  0xbc   :  { %v263_v57 = vpack.c.bf16 %v261_v55, %v260_v52 }
  0xbe   :  { %268 = vst.msk [vmem:[%s540_s3 + $0x8] sm:$0xff] %vm519_vm13, %v263_v57 }

// kernel: transformer_forward.49
= control target key start
LH: loop header
LB: loop body
LE: loop exit
PB: predicated region body
PF: predicated region fallthrough
CT: control target
= control target key end

     0   :  { %vm24_vm0 = vcmask 261120   ;;  %v135_v7 = vmov 32.0   ;;  %s190_s0 = inlined_call_operand.vmem [shape: bf16[16,32], index: 0, kind: input, shape index: {}]   ;;  %s191_s2 = inlined_call_operand.vmem [shape: f32[1,32], index: 2, kind: input, shape index: {}]   ;;  %s192_s1 = inlined_call_operand.vmem [shape: bf16[32,32], index: 1, kind: input, shape index: {}]   ;;  %s193_s3 = inlined_call_operand.vmem [shape: f32[16,32], index: 3, kind: input, shape index: {}]   ;;  %s194_s4 = inlined_call_operand.vmem [shape: f32[16,32], index: 4, kind: output, shape index: {}]  }
   0x1   :  { %v124_v0 = vld [vmem:[%s190_s0] sm:$0xff]   ;;  %129 = vrcp.f32 %v135_v7  ;;  %v122_v13 = vld [vmem:[%s192_s1 + $0x8] sm:$0xff] }
   0x2   :  { %v125_v1 = vunpack.c.l.bf16 %v124_v0  ;;  %v126_v3 = vunpack.c.h.bf16 %v124_v0  ;;  %98 = vmatpush.bf16.msra.mxu0 %v122_v13  ;;  %v121_v15 = vld [vmem:[%s192_s1] sm:$0xff]  ;;  %v76_v45 = vld [vmem:[%s193_s3 + $0x8] sm:$0xff] }
   0x3   :  { %v128_v36 = vld [vmem:[%s191_s2] ss:$0 sm:$0xff] }
   0x4   :  { %v22_v2 = vmul.f32 %v125_v1, %v125_v1  ;;  %v23_v5 = vmul.f32 %v126_v3, %v126_v3  ;;  %v75_v42 = vld [vmem:[%s193_s3] sm:$0xff] }
   0x6   :  { %v25_v4 = vsel %vm24_vm0, %v22_v2, 0.0  ;;  %v28_v6 = vsel %vm24_vm0, %v23_v5, 0.0  ;;  %99 = vmatpush.bf16.msra.mxu0 %v121_v15 }
   0x7   :  { %26 = vadd.xlane.f32.xlu0 %v25_v4  ;;  %v130_v8 = vpop.eup %129 }
   0x8   :  { %v32_v9 = vmul.f32 32.0, %v130_v8  ;;  %vm36_vm1 = vweird.f32 %v130_v8 }
   0xa   :  { %v33_v10 = vsub.f32 1.0, %v32_v9 }
   0xc   :  { %v34_v11 = vmul.f32 %v130_v8, %v33_v10 }
   0xe   :  { %v35_v12 = vadd.f32 %v130_v8, %v34_v11 }
   0xf   :  { %29 = vadd.xlane.f32.xlu0 %v28_v6 }
  0x10   :  { %v37_v14 = vsel %vm36_vm1, %v130_v8, %v35_v12 }
  0x7a   :  { %v27_v16 = vpop.xlane.xlu0 %26 }
  0x7b   :  { %v38_v17 = vmul.f32 %v37_v14, %v27_v16 }
  0x7d   :  { %v40_v18 = vadd.f32 1e-06, %v38_v17 }
  0x7f   :  { %131 = vrsqrt.f32 %v40_v18  ;;  %vm48_vm3 = vweird.f32 %v40_v18 }
  0x82   :  { %v30_v19 = vpop.xlane.xlu0 %29 }
  0x83   :  { %v39_v20 = vmul.f32 %v37_v14, %v30_v19 }
  0x85   :  { %v132_v21 = vpop.eup %131  ;;  %v41_v22 = vadd.f32 1e-06, %v39_v20 }
  0x86   :  { %v43_v23 = vmul.f32 %v132_v21, %v40_v18  ;;  %vm49_vm2 = vweird.f32 %v132_v21 }
  0x87   :  { %133 = vrsqrt.f32 %v41_v22  ;;  %vm50_vm4 = vmor %vm48_vm3, %vm49_vm2  ;;  %vm58_vm6 = vweird.f32 %v41_v22 }
  0x88   :  { %v44_v24 = vmul.f32 %v132_v21, %v43_v23 }
  0x8a   :  { %v45_v25 = vmul.f32 0.5, %v44_v24 }
  0x8c   :  { %v46_v26 = vsub.f32 1.5, %v45_v25 }
  0x8d   :  { %v134_v27 = vpop.eup %133 }
  0x8e   :  { %v53_v28 = vmul.f32 %v134_v27, %v41_v22  ;;  %v47_v29 = vmul.f32 %v132_v21, %v46_v26  ;;  %vm59_vm5 = vweird.f32 %v134_v27 }
  0x8f   :  { %vm60_vm7 = vmor %vm58_vm6, %vm59_vm5 }
  0x90   :  { %v54_v30 = vmul.f32 %v134_v27, %v53_v28  ;;  %v51_v32 = vsel %vm50_vm4, %v132_v21, %v47_v29 }
  0x91   :  { %v62_v35 = vmul.f32 %v125_v1, %v51_v32 }
  0x92   :  { %v55_v31 = vmul.f32 0.5, %v54_v30 }
  0x93   :  { %v68_v39 = vmul.f32 %v128_v36, %v62_v35 }
  0x94   :  { %v56_v33 = vsub.f32 1.5, %v55_v31 }
  0x96   :  { %v57_v34 = vmul.f32 %v134_v27, %v56_v33 }
  0x98   :  { %v61_v37 = vsel %vm60_vm7, %v134_v27, %v57_v34 }
  0x99   :  { %v63_v38 = vmul.f32 %v126_v3, %v61_v37 }
  0x9b   :  { %v69_v40 = vmul.f32 %v128_v36, %v63_v38 }
  0x9d   :  { %v70_v41 = vpack.c.bf16 %v69_v40, %v68_v39 }
  0x9f   :  { %120 = vmatmul.msk.bf16.vlgmr.msra.gmra.mxu0 %vm24_vm0, %v70_v41 }
 0x11c   :  { %v101_v43 = vpop.f32.mrf.mxu0 }
 0x11d   :  { %v102_v44 = vadd.f32 %v101_v43, %v75_v42 }
 0x11f   :  { %106 = vst.msk [vmem:[%s194_s4] sm:$0xff] %vm24_vm0, %v102_v44 }
 0x124   :  { %v103_v46 = vpop.f32.mrf.mxu0 }
 0x125   :  { %v104_v47 = vadd.f32 %v103_v46, %v76_v45 }
 0x127   :  { %107 = vst.msk [vmem:[%s194_s4 + $0x8] sm:$0xff] %vm24_vm0, %v104_v47 }

// kernel: transformer_forward.50
= control target key start
LH: loop header
LB: loop body
LE: loop exit
PB: predicated region body
PF: predicated region fallthrough
CT: control target
= control target key end

     0   :  { %vm22_vm0 = vcmask 261120   ;;  %v135_v6 = vmov 32.0   ;;  %vm108_vm8 = vcmask 519168   ;;  %s188_s0 = inlined_call_operand.vmem [shape: f32[16,32], index: 0, kind: input, shape index: {}]   ;;  %s189_s2 = inlined_call_operand.vmem [shape: f32[1,32], index: 2, kind: input, shape index: {}]   ;;  %s190_s3 = inlined_call_operand.vmem [shape: f32[1,64], index: 3, kind: input, shape index: {}]   ;;  %s191_s1 = inlined_call_operand.vmem [shape: bf16[32,64], index: 1, kind: input, shape index: {}]   ;;  %s192_s4 = inlined_call_operand.vmem [shape: bf16[16,64], index: 4, kind: output, shape index: {}]  }
   0x1   :  { %v18_v0 = vld [vmem:[%s188_s0] sm:$0xff]  ;;  %v19_v2 = vld [vmem:[%s188_s0 + $0x8] sm:$0xff]  ;;  %129 = vrcp.f32 %v135_v6 }
   0x2   :  { %v20_v1 = vmul.f32 %v18_v0, %v18_v0  ;;  %v21_v4 = vmul.f32 %v19_v2, %v19_v2  ;;  %v125_v12 = vld [vmem:[%s191_s1 + $0x8] sm:$0xff]  ;;  %v124_v14 = vld [vmem:[%s191_s1] sm:$0xff] }
   0x3   :  { %98 = vmatpush.bf16.msra.mxu0 %v125_v12  ;;  %v127_v35 = vld [vmem:[%s189_s2] ss:$0 sm:$0xff] }
   0x4   :  { %v23_v3 = vsel %vm22_vm0, %v20_v1, 0.0  ;;  %v26_v5 = vsel %vm22_vm0, %v21_v4, 0.0  ;;  %v128_v41 = vld [vmem:[%s190_s3] ss:$0 sm:$0xff] }
   0x5   :  { %24 = vadd.xlane.f32.xlu0 %v23_v3 }
   0x7   :  { %v130_v7 = vpop.eup %129  ;;  %99 = vmatpush.bf16.msra.mxu0 %v124_v14 }
   0x8   :  { %v30_v8 = vmul.f32 32.0, %v130_v7  ;;  %vm34_vm1 = vweird.f32 %v130_v7 }
   0xa   :  { %v31_v9 = vsub.f32 1.0, %v30_v8 }
   0xc   :  { %v32_v10 = vmul.f32 %v130_v7, %v31_v9 }
   0xd   :  { %27 = vadd.xlane.f32.xlu0 %v26_v5 }
   0xe   :  { %v33_v11 = vadd.f32 %v130_v7, %v32_v10 }
  0x10   :  { %v35_v13 = vsel %vm34_vm1, %v130_v7, %v33_v11 }
  0x78   :  { %v25_v15 = vpop.xlane.xlu0 %24 }
  0x79   :  { %v36_v16 = vmul.f32 %v35_v13, %v25_v15 }
  0x7b   :  { %v38_v17 = vadd.f32 1e-06, %v36_v16 }
  0x7d   :  { %131 = vrsqrt.f32 %v38_v17  ;;  %vm46_vm3 = vweird.f32 %v38_v17 }
  0x80   :  { %v28_v18 = vpop.xlane.xlu0 %27 }
  0x81   :  { %v37_v19 = vmul.f32 %v35_v13, %v28_v18 }
  0x83   :  { %v132_v20 = vpop.eup %131  ;;  %v39_v21 = vadd.f32 1e-06, %v37_v19 }
  0x84   :  { %v41_v22 = vmul.f32 %v132_v20, %v38_v17  ;;  %vm47_vm2 = vweird.f32 %v132_v20 }
  0x85   :  { %133 = vrsqrt.f32 %v39_v21  ;;  %vm48_vm4 = vmor %vm46_vm3, %vm47_vm2  ;;  %vm56_vm6 = vweird.f32 %v39_v21 }
  0x86   :  { %v42_v23 = vmul.f32 %v132_v20, %v41_v22 }
  0x88   :  { %v43_v24 = vmul.f32 0.5, %v42_v23 }
  0x8a   :  { %v44_v25 = vsub.f32 1.5, %v43_v24 }
  0x8b   :  { %v134_v26 = vpop.eup %133 }
  0x8c   :  { %v51_v27 = vmul.f32 %v134_v26, %v39_v21  ;;  %v45_v28 = vmul.f32 %v132_v20, %v44_v25  ;;  %vm57_vm5 = vweird.f32 %v134_v26 }
  0x8d   :  { %vm58_vm7 = vmor %vm56_vm6, %vm57_vm5 }
  0x8e   :  { %v52_v29 = vmul.f32 %v134_v26, %v51_v27  ;;  %v49_v31 = vsel %vm48_vm4, %v132_v20, %v45_v28 }
  0x8f   :  { %v60_v34 = vmul.f32 %v49_v31, %v18_v0 }
  0x90   :  { %v53_v30 = vmul.f32 0.5, %v52_v29 }
  0x91   :  { %v66_v38 = vmul.f32 %v127_v35, %v60_v34 }
  0x92   :  { %v54_v32 = vsub.f32 1.5, %v53_v30 }
  0x94   :  { %v55_v33 = vmul.f32 %v134_v26, %v54_v32 }
  0x96   :  { %v59_v36 = vsel %vm58_vm7, %v134_v26, %v55_v33 }
  0x97   :  { %v61_v37 = vmul.f32 %v59_v36, %v19_v2 }
  0x99   :  { %v67_v39 = vmul.f32 %v127_v35, %v61_v37 }
  0x9b   :  { %v68_v40 = vpack.c.bf16 %v67_v39, %v66_v38 }
  0x9d   :  { %123 = vmatmul.msk.bf16.vlgmr.msra.gmra.mxu0 %vm22_vm0, %v68_v40 }
 0x11a   :  { %v101_v42 = vpop.f32.mrf.mxu0 }
 0x11b   :  { %v102_v43 = vadd.f32 %v128_v41, %v101_v42 }
 0x11d   :  { %v106_v44 = vpack.c.bf16 %v102_v43, %v102_v43 }
 0x11f   :  { %109 = vst.msk [vmem:[%s192_s4] sm:$0xf] %vm108_vm8, %v106_v44 }
 0x122   :  { %v103_v45 = vpop.f32.mrf.mxu0 }
 0x123   :  { %v104_v46 = vadd.f32 %v128_v41, %v103_v45 }
 0x125   :  { %v107_v47 = vpack.c.bf16 %v104_v46, %v104_v46 }
 0x127   :  { %110 = vst.msk [vmem:[%s192_s4 + $0x4] sm:$0xf] %vm108_vm8, %v107_v47 }

// kernel: transformer_forward.52
= control target key start
LH: loop header
LB: loop body
LE: loop exit
PB: predicated region body
PF: predicated region fallthrough
CT: control target
= control target key end

     0   :  { %vm114_vm0 = vcmask 1044480   ;;  %vm110_vm1 = vcmask 343040   ;;  %vm148_vm2 = vcmask 519168   ;;  %s290_s1 = inlined_call_operand.vmem [shape: bf16[170,64], index: 1, kind: input, shape index: {}]   ;;  %s291_s0 = inlined_call_operand.vmem [shape: bf16[16,170], index: 0, kind: input, shape index: {}]   ;;  %s292_s2 = inlined_call_operand.vmem [shape: bf16[16,64], index: 2, kind: output, shape index: {}]  }
   0x1   :  { %v217_v0 = vld [vmem:[%s290_s1 + $0x38] sm:$0xff]  ;;  %v205_v1 = vld [vmem:[%s290_s1 + $0x50] sm:$0xf]  ;;  %v220_v2 = vld [vmem:[%s290_s1 + $0x50] sm:$0x10] }
   0x2   :  { %118 = vmatpush.bf16.msra.mxu0 %v217_v0  ;;  %v216_v3 = vld [vmem:[%s290_s1 + $0x30] sm:$0xff]  ;;  %v206_v4 = vor.u32 %v220_v2, %v205_v1  ;;  %v219_v6 = vld [vmem:[%s290_s1 + $0x48] sm:$0xff]  ;;  %v218_v8 = vld [vmem:[%s290_s1 + $0x40] sm:$0xff] }
   0x3   :  { %v215_v7 = vld [vmem:[%s290_s1 + $0x28] sm:$0xff]  ;;  %v208_v9 = vld [vmem:[%s291_s0 + $0x4] sm:$0xf]  ;;  %v213_v13 = vld [vmem:[%s290_s1 + $0x18] sm:$0xff] }
   0x4   :  { %v116_v5 = vsel %vm114_vm0, %v206_v4, 0  ;;  %v159_v10 = vld [vmem:[%s291_s0 + $0x8] sm:$0xf0]  ;;  %v214_v11 = vld [vmem:[%s290_s1 + $0x20] sm:$0xff]  ;;  %v212_v14 = vld [vmem:[%s290_s1 + $0x10] sm:$0xff] }
   0x5   :  { %137 = vmatpush.bf16.msra.mxu1 %v116_v5  ;;  %v162_v12 = vor.u32 %v208_v9, %v159_v10  ;;  %v211_v15 = vld [vmem:[%s290_s1 + $0x8] sm:$0xff]  ;;  %v210_v16 = vld [vmem:[%s290_s1] sm:$0xff] }
   0x6   :  { %119 = vmatpush.bf16.msra.mxu0 %v216_v3  ;;  %v157_v17 = vld [vmem:[%s291_s0] sm:$0xf]  ;;  %v209_v18 = vld [vmem:[%s291_s0 + $0x4] sm:$0xf0] }
   0x7   :  { %v158_v19 = vor.u32 %v209_v18, %v157_v17 }
   0x9   :  { %138 = vmatpush.bf16.msra.mxu1 %v219_v6 }
   0xa   :  { %120 = vmatpush.bf16.msra.mxu0 %v215_v7 }
   0xd   :  { %139 = vmatpush.bf16.msra.mxu1 %v218_v8 }
   0xe   :  { %121 = vmatpush.bf16.msra.mxu0 %v214_v11 }
  0x10   :  { %207 = vmatmul.msk.bf16.vlgmr.msra.gmra.mxu1 %vm110_vm1, %v162_v12 }
  0x12   :  { %122 = vmatpush.bf16.msra.mxu0 %v213_v13 }
  0x16   :  { %123 = vmatpush.bf16.msra.mxu0 %v212_v14 }
  0x1a   :  { %124 = vmatpush.bf16.msra.mxu0 %v211_v15 }
  0x1e   :  { %125 = vmatpush.bf16.msra.mxu0 %v210_v16 }
  0x21   :  { %126 = vmatmul.bf16.vlgmr.msra.gmra.mxu0 %v158_v19 }
  0x8d   :  { %v141_v20 = vpop.f32.mrf.mxu1 }
  0x95   :  { %v143_v24 = vpop.f32.mrf.mxu1 }
  0x9e   :  { %v127_v21 = vpop.f32.mrf.mxu0 }
  0x9f   :  { %v142_v22 = vadd.f32 %v141_v20, %v127_v21 }
  0xa1   :  { %v146_v23 = vpack.c.bf16 %v142_v22, %v142_v22 }
  0xa3   :  { %149 = vst.msk [vmem:[%s292_s2] sm:$0xf] %vm148_vm2, %v146_v23 }
  0xa6   :  { %v129_v25 = vpop.f32.mrf.mxu0 }
  0xa7   :  { %v144_v26 = vadd.f32 %v143_v24, %v129_v25 }
  0xa9   :  { %v147_v27 = vpack.c.bf16 %v144_v26, %v144_v26 }
  0xab   :  { %150 = vst.msk [vmem:[%s292_s2 + $0x4] sm:$0xf] %vm148_vm2, %v147_v27 }

// kernel: transformer_forward.69
= control target key start
LH: loop header
LB: loop body
LE: loop exit
PB: predicated region body
PF: predicated region fallthrough
CT: control target
= control target key end

     0   :  { %vm31_vm0 = vcmask 261120   ;;  %vm51_vm1 = vcmask 781312   ;;  %s102_s1 = inlined_call_operand.vmem [shape: bf16[32,96], index: 1, kind: input, shape index: {}]   ;;  %s103_s0 = inlined_call_operand.vmem [shape: f32[16,32], index: 0, kind: input, shape index: {}]   ;;  %s104_s2 = inlined_call_operand.vmem [shape: bf16[16,96], index: 2, kind: output, shape index: {}]  }
   0x1   :  { %v68_v0 = vld [vmem:[%s102_s1 + $0x8] sm:$0xff]  ;;  %v67_v1 = vld [vmem:[%s102_s1] sm:$0xff] }
   0x2   :  { %41 = vmatpush.bf16.msra.mxu0 %v68_v0  ;;  %v12_v2 = vld [vmem:[%s103_s0] sm:$0xff]  ;;  %v13_v3 = vld [vmem:[%s103_s0 + $0x8] sm:$0xff] }
   0x3   :  { %v14_v4 = vpack.c.bf16 %v13_v3, %v12_v2 }
   0x6   :  { %42 = vmatpush.bf16.msra.mxu0 %v67_v1 }
   0x9   :  { %66 = vmatmul.msk.bf16.vlgmr.msra.gmra.mxu0 %vm31_vm0, %v14_v4 }
  0x86   :  { %v44_v5 = vpop.f32.mrf.mxu0 }
  0x87   :  { %v49_v6 = vpack.c.bf16 %v44_v5, %v44_v5 }
  0x89   :  { %52 = vst.msk [vmem:[%s104_s2] sm:$0xf] %vm51_vm1, %v49_v6 }
  0x8e   :  { %v46_v7 = vpop.f32.mrf.mxu0 }
  0x8f   :  { %v50_v8 = vpack.c.bf16 %v46_v7, %v46_v7 }
  0x91   :  { %53 = vst.msk [vmem:[%s104_s2 + $0x4] sm:$0xf] %vm51_vm1, %v50_v8 }

// kernel: transformer_forward.53
= control target key start
LH: loop header
LB: loop body
LE: loop exit
PB: predicated region body
PF: predicated region fallthrough
CT: control target
= control target key end

     0   :  { %vm61_vm0 = vcmask 523264   ;;  %vm83_vm1 = vcmask 261120   ;;  %s172_s1 = inlined_call_operand.vmem [shape: bf16[64,32], index: 1, kind: input, shape index: {}]   ;;  %s173_s2 = inlined_call_operand.vmem [shape: f32[1,32], index: 2, kind: input, shape index: {}]   ;;  %s174_s0 = inlined_call_operand.vmem [shape: bf16[16,64], index: 0, kind: input, shape index: {}]   ;;  %s175_s3 = inlined_call_operand.vmem [shape: f32[16,32], index: 3, kind: input, shape index: {}]   ;;  %s176_s4 = inlined_call_operand.vmem [shape: f32[16,32], index: 4, kind: output, shape index: {}]  }
   0x1   :  { %v115_v0 = vld [vmem:[%s172_s1 + $0x18] sm:$0xff]  ;;  %v114_v1 = vld [vmem:[%s172_s1 + $0x10] sm:$0xff]  ;;  %v113_v2 = vld [vmem:[%s172_s1 + $0x8] sm:$0xff] }
   0x2   :  { %69 = vmatpush.bf16.msra.mxu0 %v115_v0  ;;  %v112_v3 = vld [vmem:[%s172_s1] sm:$0xff]  ;;  %v80_v11 = vld [vmem:[%s175_s3 + $0x8] sm:$0xff] }
   0x3   :  { %v111_v4 = vld [vmem:[%s174_s0] sm:$0xff] }
   0x4   :  { %v116_v5 = vld [vmem:[%s173_s2] ss:$0 sm:$0xff] }
   0x5   :  { %v79_v7 = vld [vmem:[%s175_s3] sm:$0xff] }
   0x6   :  { %70 = vmatpush.bf16.msra.mxu0 %v114_v1 }
   0xa   :  { %71 = vmatpush.bf16.msra.mxu0 %v113_v2 }
   0xe   :  { %72 = vmatpush.bf16.msra.mxu0 %v112_v3 }
  0x11   :  { %110 = vmatmul.msk.bf16.vlgmr.msra.gmra.mxu0 %vm61_vm0, %v111_v4 }
  0x8e   :  { %v74_v6 = vpop.f32.mrf.mxu0 }
  0x8f   :  { %v75_v8 = vadd.f32 %v116_v5, %v74_v6 }
  0x91   :  { %v81_v9 = vadd.f32 %v79_v7, %v75_v8 }
  0x93   :  { %84 = vst.msk [vmem:[%s176_s4] sm:$0xff] %vm83_vm1, %v81_v9 }
  0x96   :  { %v76_v10 = vpop.f32.mrf.mxu0 }
  0x97   :  { %v77_v12 = vadd.f32 %v116_v5, %v76_v10 }
  0x99   :  { %v82_v13 = vadd.f32 %v80_v11, %v77_v12 }
  0x9b   :  { %85 = vst.msk [vmem:[%s176_s4 + $0x8] sm:$0xff] %vm83_vm1, %v82_v13 }

// kernel: transformer_forward.78
= control target key start
LH: loop header
LB: loop body
LE: loop exit
PB: predicated region body
PF: predicated region fallthrough
CT: control target
= control target key end

     0   :  { %8 = vsyncpa [#allocation3], 0  ;;  %s173_s15 = smov [#allocation2]   ;;  %s174_s17 = smov 64   ;;  %s218_s0 = inlined_call_operand.vmem [shape: f32[16,32], index: 0, kind: input, shape index: {}]   ;;  %s219_s1 = inlined_call_operand.hbm [shape: bf16[32,96], index: 1, kind: input, shape index: {}]   ;;  %s220_s2 = inlined_call_operand.vmem [shape: f32[1,32], index: 2, kind: input, shape index: {}]   ;;  %s221_s3 = inlined_call_operand.vmem [shape: bf16[16,96], index: 3, kind: output, shape index: {}]  }
   0x1   :  { %s15_s14 = sshll.u32 %s219_s1, 4  ;;  %s17_s16 = sshll.u32 %s173_s15, 4  ;;  %s16_s14 = int_to_ptr.hbm [resolvable:$true] %s15_s14  ;;  %s18_s16 = int_to_ptr.vmem [resolvable:$true] %s17_s16 }
   0x2   :  { %s175_s18 = smov 4  }
   0x3   :  { %23 = dma.hbm_to_vmem [thread:$0]  %s16_s14, 256, %s18_s16, [#allocation3], %s174_s17, %s174_s17, %s175_s18  }
   0x4   :  { %171 = dma.done.wait [#allocation3], 256  }
   0x5   :  { %172 = vsyncadd [#allocation3], 4294967040  ;;  %v31_v0 = vld [vmem:[%s218_s0] sm:$0xff]  ;;  %vm35_vm0 = vcmask 261120   ;;  %v32_v2 = vld [vmem:[%s218_s0 + $0x8] sm:$0xff]  ;;  %v176_v6 = vmov 32.0  }
   0x6   :  { %v33_v1 = vmul.f32 %v31_v0, %v31_v0  ;;  %v34_v4 = vmul.f32 %v32_v2, %v32_v2  ;;  %141 = vrcp.f32 %v176_v6  ;;  %v135_v12 = vld [vmem:[#allocation2 + $0x8] sm:$0xff]  ;;  %v134_v14 = vld [vmem:[#allocation2] sm:$0xff]  ;;  %vm117_vm8 = vcmask 781312  }
   0x7   :  { %107 = vmatpush.bf16.msra.mxu0 %v135_v12  ;;  %v140_v35 = vld [vmem:[%s220_s2] ss:$0 sm:$0xff] }
   0x8   :  { %v36_v3 = vsel %vm35_vm0, %v33_v1, 0.0  ;;  %v39_v5 = vsel %vm35_vm0, %v34_v4, 0.0 }
   0x9   :  { %37 = vadd.xlane.f32.xlu0 %v36_v3 }
   0xb   :  { %108 = vmatpush.bf16.msra.mxu0 %v134_v14 }
   0xc   :  { %v142_v7 = vpop.eup %141 }
   0xd   :  { %v43_v8 = vmul.f32 32.0, %v142_v7  ;;  %vm47_vm1 = vweird.f32 %v142_v7 }
   0xf   :  { %v44_v9 = vsub.f32 1.0, %v43_v8 }
  0x11   :  { %40 = vadd.xlane.f32.xlu0 %v39_v5  ;;  %v45_v10 = vmul.f32 %v142_v7, %v44_v9 }
  0x13   :  { %v46_v11 = vadd.f32 %v142_v7, %v45_v10 }
  0x15   :  { %v48_v13 = vsel %vm47_vm1, %v142_v7, %v46_v11 }
  0x7c   :  { %v38_v15 = vpop.xlane.xlu0 %37 }
  0x7d   :  { %v49_v16 = vmul.f32 %v48_v13, %v38_v15 }
  0x7f   :  { %v51_v17 = vadd.f32 1e-06, %v49_v16 }
  0x81   :  { %143 = vrsqrt.f32 %v51_v17  ;;  %vm59_vm3 = vweird.f32 %v51_v17 }
  0x84   :  { %v41_v18 = vpop.xlane.xlu0 %40 }
  0x85   :  { %v50_v19 = vmul.f32 %v48_v13, %v41_v18 }
  0x87   :  { %v144_v20 = vpop.eup %143  ;;  %v52_v21 = vadd.f32 1e-06, %v50_v19 }
  0x88   :  { %v54_v22 = vmul.f32 %v144_v20, %v51_v17  ;;  %vm60_vm2 = vweird.f32 %v144_v20 }
  0x89   :  { %145 = vrsqrt.f32 %v52_v21  ;;  %vm61_vm4 = vmor %vm59_vm3, %vm60_vm2  ;;  %vm69_vm6 = vweird.f32 %v52_v21 }
  0x8a   :  { %v55_v23 = vmul.f32 %v144_v20, %v54_v22 }
  0x8c   :  { %v56_v24 = vmul.f32 0.5, %v55_v23 }
  0x8e   :  { %v57_v25 = vsub.f32 1.5, %v56_v24 }
  0x8f   :  { %v146_v26 = vpop.eup %145 }
  0x90   :  { %v64_v27 = vmul.f32 %v146_v26, %v52_v21  ;;  %v58_v28 = vmul.f32 %v144_v20, %v57_v25  ;;  %vm70_vm5 = vweird.f32 %v146_v26 }
  0x91   :  { %vm71_vm7 = vmor %vm69_vm6, %vm70_vm5 }
  0x92   :  { %v65_v29 = vmul.f32 %v146_v26, %v64_v27  ;;  %v62_v31 = vsel %vm61_vm4, %v144_v20, %v58_v28 }
  0x93   :  { %v73_v34 = vmul.f32 %v62_v31, %v31_v0 }
  0x94   :  { %v66_v30 = vmul.f32 0.5, %v65_v29 }
  0x95   :  { %v79_v38 = vmul.f32 %v140_v35, %v73_v34 }
  0x96   :  { %v67_v32 = vsub.f32 1.5, %v66_v30 }
  0x98   :  { %v68_v33 = vmul.f32 %v146_v26, %v67_v32 }
  0x9a   :  { %v72_v36 = vsel %vm71_vm7, %v146_v26, %v68_v33 }
  0x9b   :  { %v74_v37 = vmul.f32 %v72_v36, %v32_v2 }
  0x9d   :  { %v80_v39 = vmul.f32 %v140_v35, %v74_v37 }
  0x9f   :  { %v81_v40 = vpack.c.bf16 %v80_v39, %v79_v38 }
  0xa1   :  { %133 = vmatmul.msk.bf16.vlgmr.msra.gmra.mxu0 %vm35_vm0, %v81_v40 }
 0x11e   :  { %v110_v41 = vpop.f32.mrf.mxu0 }
 0x11f   :  { %v115_v42 = vpack.c.bf16 %v110_v41, %v110_v41 }
 0x121   :  { %118 = vst.msk [vmem:[%s221_s3] sm:$0xf] %vm117_vm8, %v115_v42 }
 0x126   :  { %v112_v43 = vpop.f32.mrf.mxu0 }
 0x127   :  { %v116_v44 = vpack.c.bf16 %v112_v43, %v112_v43 }
 0x129   :  { %119 = vst.msk [vmem:[%s221_s3 + $0x4] sm:$0xf] %vm117_vm8, %v116_v44 }
 0x12a   :  { %124 = vsyncpa [#allocation3], 1 }

// kernel: transformer_forward.77
= control target key start
LH: loop header
LB: loop body
LE: loop exit
PB: predicated region body
PF: predicated region fallthrough
CT: control target
= control target key end

     0   :  { %8 = vsyncpa [#allocation3], 0  ;;  %s173_s15 = smov [#allocation2]   ;;  %s174_s17 = smov 64   ;;  %s218_s0 = inlined_call_operand.vmem [shape: f32[16,32], index: 0, kind: input, shape index: {}]   ;;  %s219_s1 = inlined_call_operand.hbm [shape: bf16[32,64], index: 1, kind: input, shape index: {}]   ;;  %s220_s2 = inlined_call_operand.vmem [shape: f32[1,32], index: 2, kind: input, shape index: {}]   ;;  %s221_s3 = inlined_call_operand.vmem [shape: bf16[16,64], index: 3, kind: output, shape index: {}]  }
   0x1   :  { %s15_s14 = sshll.u32 %s219_s1, 4  ;;  %s17_s16 = sshll.u32 %s173_s15, 4  ;;  %s16_s14 = int_to_ptr.hbm [resolvable:$true] %s15_s14  ;;  %s18_s16 = int_to_ptr.vmem [resolvable:$true] %s17_s16 }
   0x2   :  { %s175_s18 = smov 4  }
   0x3   :  { %23 = dma.hbm_to_vmem [thread:$0]  %s16_s14, 256, %s18_s16, [#allocation3], %s174_s17, %s174_s17, %s175_s18  }
   0x4   :  { %171 = dma.done.wait [#allocation3], 256  }
   0x5   :  { %172 = vsyncadd [#allocation3], 4294967040  ;;  %v31_v0 = vld [vmem:[%s218_s0] sm:$0xff]  ;;  %vm35_vm0 = vcmask 261120   ;;  %v32_v2 = vld [vmem:[%s218_s0 + $0x8] sm:$0xff]  ;;  %v176_v6 = vmov 32.0  }
   0x6   :  { %v33_v1 = vmul.f32 %v31_v0, %v31_v0  ;;  %v34_v4 = vmul.f32 %v32_v2, %v32_v2  ;;  %141 = vrcp.f32 %v176_v6  ;;  %v135_v12 = vld [vmem:[#allocation2 + $0x8] sm:$0xff]  ;;  %v134_v14 = vld [vmem:[#allocation2] sm:$0xff]  ;;  %vm117_vm8 = vcmask 519168  }
   0x7   :  { %107 = vmatpush.bf16.msra.mxu0 %v135_v12  ;;  %v140_v35 = vld [vmem:[%s220_s2] ss:$0 sm:$0xff] }
   0x8   :  { %v36_v3 = vsel %vm35_vm0, %v33_v1, 0.0  ;;  %v39_v5 = vsel %vm35_vm0, %v34_v4, 0.0 }
   0x9   :  { %37 = vadd.xlane.f32.xlu0 %v36_v3 }
   0xb   :  { %108 = vmatpush.bf16.msra.mxu0 %v134_v14 }
   0xc   :  { %v142_v7 = vpop.eup %141 }
   0xd   :  { %v43_v8 = vmul.f32 32.0, %v142_v7  ;;  %vm47_vm1 = vweird.f32 %v142_v7 }
   0xf   :  { %v44_v9 = vsub.f32 1.0, %v43_v8 }
  0x11   :  { %40 = vadd.xlane.f32.xlu0 %v39_v5  ;;  %v45_v10 = vmul.f32 %v142_v7, %v44_v9 }
  0x13   :  { %v46_v11 = vadd.f32 %v142_v7, %v45_v10 }
  0x15   :  { %v48_v13 = vsel %vm47_vm1, %v142_v7, %v46_v11 }
  0x7c   :  { %v38_v15 = vpop.xlane.xlu0 %37 }
  0x7d   :  { %v49_v16 = vmul.f32 %v48_v13, %v38_v15 }
  0x7f   :  { %v51_v17 = vadd.f32 1e-06, %v49_v16 }
  0x81   :  { %143 = vrsqrt.f32 %v51_v17  ;;  %vm59_vm3 = vweird.f32 %v51_v17 }
  0x84   :  { %v41_v18 = vpop.xlane.xlu0 %40 }
  0x85   :  { %v50_v19 = vmul.f32 %v48_v13, %v41_v18 }
  0x87   :  { %v144_v20 = vpop.eup %143  ;;  %v52_v21 = vadd.f32 1e-06, %v50_v19 }
  0x88   :  { %v54_v22 = vmul.f32 %v144_v20, %v51_v17  ;;  %vm60_vm2 = vweird.f32 %v144_v20 }
  0x89   :  { %145 = vrsqrt.f32 %v52_v21  ;;  %vm61_vm4 = vmor %vm59_vm3, %vm60_vm2  ;;  %vm69_vm6 = vweird.f32 %v52_v21 }
  0x8a   :  { %v55_v23 = vmul.f32 %v144_v20, %v54_v22 }
  0x8c   :  { %v56_v24 = vmul.f32 0.5, %v55_v23 }
  0x8e   :  { %v57_v25 = vsub.f32 1.5, %v56_v24 }
  0x8f   :  { %v146_v26 = vpop.eup %145 }
  0x90   :  { %v64_v27 = vmul.f32 %v146_v26, %v52_v21  ;;  %v58_v28 = vmul.f32 %v144_v20, %v57_v25  ;;  %vm70_vm5 = vweird.f32 %v146_v26 }
  0x91   :  { %vm71_vm7 = vmor %vm69_vm6, %vm70_vm5 }
  0x92   :  { %v65_v29 = vmul.f32 %v146_v26, %v64_v27  ;;  %v62_v31 = vsel %vm61_vm4, %v144_v20, %v58_v28 }
  0x93   :  { %v73_v34 = vmul.f32 %v62_v31, %v31_v0 }
  0x94   :  { %v66_v30 = vmul.f32 0.5, %v65_v29 }
  0x95   :  { %v79_v38 = vmul.f32 %v140_v35, %v73_v34 }
  0x96   :  { %v67_v32 = vsub.f32 1.5, %v66_v30 }
  0x98   :  { %v68_v33 = vmul.f32 %v146_v26, %v67_v32 }
  0x9a   :  { %v72_v36 = vsel %vm71_vm7, %v146_v26, %v68_v33 }
  0x9b   :  { %v74_v37 = vmul.f32 %v72_v36, %v32_v2 }
  0x9d   :  { %v80_v39 = vmul.f32 %v140_v35, %v74_v37 }
  0x9f   :  { %v81_v40 = vpack.c.bf16 %v80_v39, %v79_v38 }
  0xa1   :  { %133 = vmatmul.msk.bf16.vlgmr.msra.gmra.mxu0 %vm35_vm0, %v81_v40 }
 0x11e   :  { %v110_v41 = vpop.f32.mrf.mxu0 }
 0x11f   :  { %v115_v42 = vpack.c.bf16 %v110_v41, %v110_v41 }
 0x121   :  { %118 = vst.msk [vmem:[%s221_s3] sm:$0xf] %vm117_vm8, %v115_v42 }
 0x126   :  { %v112_v43 = vpop.f32.mrf.mxu0 }
 0x127   :  { %v116_v44 = vpack.c.bf16 %v112_v43, %v112_v43 }
 0x129   :  { %119 = vst.msk [vmem:[%s221_s3 + $0x4] sm:$0xf] %vm117_vm8, %v116_v44 }
 0x12a   :  { %124 = vsyncpa [#allocation3], 1 }

// kernel: transformer_forward.82
= control target key start
LH: loop header
LB: loop body
LE: loop exit
PB: predicated region body
PF: predicated region fallthrough
CT: control target
= control target key end

     0   :  { %7 = vsyncpa [#allocation3], 0  ;;  %s115_s12 = smov [#allocation2]   ;;  %s116_s14 = smov 64   ;;  %s148_s0 = inlined_call_operand.vmem [shape: f32[16,32], index: 0, kind: input, shape index: {}]   ;;  %s149_s1 = inlined_call_operand.hbm [shape: bf16[32,96], index: 1, kind: input, shape index: {}]   ;;  %s150_s2 = inlined_call_operand.vmem [shape: bf16[16,96], index: 2, kind: output, shape index: {}]  }
   0x1   :  { %s14_s11 = sshll.u32 %s149_s1, 4  ;;  %s16_s13 = sshll.u32 %s115_s12, 4  ;;  %s15_s11 = int_to_ptr.hbm [resolvable:$true] %s14_s11  ;;  %s17_s13 = int_to_ptr.vmem [resolvable:$true] %s16_s13 }
   0x2   :  { %s117_s15 = smov 4  }
   0x3   :  { %22 = dma.hbm_to_vmem [thread:$0]  %s15_s11, 256, %s17_s13, [#allocation3], %s116_s14, %s116_s14, %s117_s15  }
   0x4   :  { %113 = dma.done.wait [#allocation3], 256  }
   0x5   :  { %114 = vsyncadd [#allocation3], 4294967040  ;;  %v85_v0 = vld [vmem:[#allocation2 + $0x8] sm:$0xff]  ;;  %v84_v1 = vld [vmem:[#allocation2] sm:$0xff]  ;;  %vm47_vm0 = vcmask 261120   ;;  %vm67_vm1 = vcmask 781312  }
   0x6   :  { %57 = vmatpush.bf16.msra.mxu0 %v85_v0  ;;  %v28_v2 = vld [vmem:[%s148_s0] sm:$0xff]  ;;  %v29_v3 = vld [vmem:[%s148_s0 + $0x8] sm:$0xff] }
   0x7   :  { %v30_v4 = vpack.c.bf16 %v29_v3, %v28_v2 }
   0xa   :  { %58 = vmatpush.bf16.msra.mxu0 %v84_v1 }
   0xd   :  { %83 = vmatmul.msk.bf16.vlgmr.msra.gmra.mxu0 %vm47_vm0, %v30_v4 }
  0x8a   :  { %v60_v5 = vpop.f32.mrf.mxu0 }
  0x8b   :  { %v65_v6 = vpack.c.bf16 %v60_v5, %v60_v5 }
  0x8d   :  { %68 = vst.msk [vmem:[%s150_s2] sm:$0xf] %vm67_vm1, %v65_v6 }
  0x92   :  { %v62_v7 = vpop.f32.mrf.mxu0 }
  0x93   :  { %v66_v8 = vpack.c.bf16 %v62_v7, %v62_v7 }
  0x95   :  { %69 = vst.msk [vmem:[%s150_s2 + $0x4] sm:$0xf] %vm67_vm1, %v66_v8 }
  0x96   :  { %74 = vsyncpa [#allocation3], 1 }

// kernel: transformer_forward.66
= control target key start
LH: loop header
LB: loop body
LE: loop exit
PB: predicated region body
PF: predicated region fallthrough
CT: control target
= control target key end

     0   :  { %8 = vsyncpa [#allocation3], 0  ;;  %s996_s12 = smov 0   ;;  %s998_s13 = smov 0   ;;  %s1136_s0 = inlined_call_operand.vmem [shape: f32[4], index: 0, kind: input, shape index: {}]   ;;  %s1137_s1 = inlined_call_operand.vmem [shape: bf16[2,8,64], index: 1, kind: input, shape index: {}]   ;;  %s1138_s2 = inlined_call_operand.vmem [shape: bf16[2,8,96], index: 2, kind: input, shape index: {}]   ;;  %s1139_s3 = inlined_call_operand.vmem [shape: bf16[2,8,32], index: 3, kind: output, shape index: {}]  }
   0x1   :  { %s1000_s14 = smov 0  }
   0x2 LB: > { %s794_s15 = sadd.s32 4294967295, %s959_s14   ;;  %s26_s16 = sadd.s32 1, %s955_s13  ;;  %s959_s14 = sphi %s1000_s14, %s14_s14   ;;  %s955_s13 = sphi %s998_s13, %s1141_s13   ;;  %s951_s12 = sphi %s996_s12, %s1140_s12  }
   0x3   : > { %p28_p0 = scmp.ge.s32.totalorder %s26_s16, 2  ;;  %p796_p1 = scmp.ge.s32.totalorder %s959_s14, 1 }
   0x4   : > { %p134_p2 = scmp.lt.s32.totalorder %s959_s14, 3  ;;  %p829_p4 = scmp.eq.s32.totalorder %s794_s15, 0 }
   0x5   : > { %s1143_s16 = smov (%p28_p0, %s26_s16), 0  ;;  %s146_s19 = sshll.u32 %s1136_s0, 4  ;;  %s147_s19 = int_to_ptr.vmem [resolvable:$true] %s146_s19 }
   0x6   : > { %p135_p3 = pnand %p796_p1, %p134_p2  ;;  %s961_s20 = smov [#allocation2]  }
   0x8   : > { %p825_p5 = pneg %p135_p3  ;;  %176 = sbr.rel (%p135_p3) target bundleno = 2430 (0x97e), region = 32 }
   0xa   : > { %p826_p6 = pnand %p829_p4, %p825_p5 }
   0xc   : > { %828 = dma.vmem_to_smem (!%p826_p6), %s147_s19, 16, %s961_s20, [#allocation3]  }
   0xd   : > { %946 = dma.done.wait (%p829_p4), [#allocation3], 16  }
   0xe   : > { %948 = vsyncadd (%p829_p4), [#allocation3], 4294967280 }
   0xf   : > { %183 = sfence }
  0x10   : > { %p210_p7 = scmp.lt.s32.totalorder %s951_s12, 1  ;;  %s962_s28 = smov 120   ;;  %vm238_vm0 = vcmask 64512   ;;  %v229_v31 = vlaneseq  ;;  %vm334_vm2 = vcmask 1043456   ;;  %vm688_vm3 = vcmask 130048  }
  0x11   : > { %s963_s29 = smov 104   ;;  %s964_s30 = smov 64   ;;  %vm690_vm4 = vcmask 195584   ;;  %vm693_vm5 = vcmask 257024  }
  0x12   : > { %s1145_s12 = smov (!%p210_p7, %s951_s12), 1  ;;  %s311_s4 = sld [smem:[#allocation2]]  ;;  %v1044_v33 = vshrl.u32 %v229_v31, 7  ;;  %v1046_v34 = vand.u32 127, %v229_v31 }
  0x13   : > { %s1018_s21 = sshll.u32 %s1145_s12, 2  ;;  %s965_s5 = smov 112  }
  0x14   : > { %s220_s24 = scalar_lea.vmem %s1138_s2, %s1018_s21  ;;  %s216_s27 = scalar_lea.vmem %s1137_s1, %s1018_s21  ;;  %vm315_vm1 = vcmp.gt.s32.totalorder %v1046_v34, %v1044_v33 }
  0x15   : > { %v237_v0 = vld [vmem:[%s220_s24] sm:$0xf]  ;;  %s966_s6 = smov 96   ;;  %s967_s7 = smov 56  }
  0x16   : > { %v265_v1 = vunpack.c.l.b16 %v237_v0  ;;  %v236_v2 = vld [vmem:[%s216_s27] sm:$0xf]  ;;  %v243_v6 = vsel %vm238_vm0, %v237_v0, 0  ;;  %s968_s8 = smov 88   ;;  %s809_s9 = sld [smem:[#allocation2 + $0x1]] }
  0x17   : > { %v260_v4 = vunpack.c.l.b16 %v236_v2  ;;  %252 = vmatpush.bf16.xpose.msra.mxu0 %v243_v6  ;;  %s969_s10 = smov 80   ;;  %s970_s11 = smov 72  }
  0x18   : > { %v1028_v3 = vpack.c.b16 %v265_v1, %v265_v1  ;;  %v312_v35 = vstv %s311_s4  ;;  %s813_s12 = sld [smem:[#allocation2 + $0x2]]  ;;  %s971_s17 = smov 48  }
  0x19   : > { %v1031_v5 = vpack.c.b16 %v260_v4, %v260_v4  ;;  %s817_s15 = sld [smem:[#allocation2 + $0x3]]  ;;  %s972_s18 = smov 40  }
  0x1a   : > { %267 = vrot.lane.b32.xlu0 %v1028_v3, %s962_s28  ;;  %s973_s19 = smov 8   ;;  %s974_s20 = smov 16  }
  0x1b   : > { %s975_s22 = smov 24   ;;  %s227_s25 = scalar_lea.vmem %s1139_s3, %s1018_s21 }
  0x1e   : > { %804 = vmatmul.msk.bf16.vlgmr.msra.gmra.mxu0 %vm238_vm0, %v236_v2 }
  0x22   : > { %262 = vrot.lane.b32.xlu0 %v1031_v5, %s962_s28 }
  0x8c   : > { %v268_v7 = vpop.permute.xlu0 %267 }
  0x8d   : > { %v273_v8 = vsel %vm238_vm0, %v268_v7, 0 }
  0x8e   : > { %282 = vmatpush.bf16.xpose.msra.mxu1 %v273_v8 }
  0x94   : > { %v263_v9 = vpop.permute.xlu0 %262 }
  0x95   : > { %805 = vmatmul.msk.bf16.vlgmr.msra.gmra.mxu1 %vm238_vm0, %v263_v9 }
  0x9b   : > { %v254_v10 = vpop.f32.mrf.mxu0 }
  0x9c   : > { %v258_v15 = vmul.f32 0.35355338, %v254_v10 }
  0x9e   : > { %v289_v17 = vsel %vm238_vm0, %v258_v15, -inf }
  0xa3   : > { %v256_v11 = vpop.f32.mrf.mxu0 }
 0x112   : > { %v284_v12 = vpop.f32.mrf.mxu1 }
 0x113   : > { %v288_v13 = vmul.f32 0.35355338, %v284_v12 }
 0x115   : > { %v300_v14 = vsel %vm238_vm0, %v288_v13, -inf }
 0x116   : > { %301 = vmax.xlane.f32.xlu1 %v300_v14 }
 0x11a   : > { %v286_v16 = vpop.f32.mrf.mxu1 }
 0x11e   : > { %290 = vmax.xlane.f32.xlu1 %v289_v17 }
 0x137   : > { %377 = vrot.lane.b32.xlu1 %v1028_v3, %s963_s29 }
 0x189   : > { %v302_v18 = vpop.xlane.xlu1 %301 }
 0x18a   : > { %v303_v19 = vsub.f32 %v288_v13, %v302_v18 }
 0x18c   : > { %v304_v20 = vmul.f32 1.442695, %v303_v19 }
 0x18e   : > { %870 = vpow2.f32 %v304_v20 }
 0x191   : > { %v291_v21 = vpop.xlane.xlu1 %290 }
 0x192   : > { %v292_v22 = vsub.f32 %v258_v15, %v291_v21 }
 0x194   : > { %v871_v23 = vpop.eup %870  ;;  %v293_v24 = vmul.f32 1.442695, %v292_v22 }
 0x195   : > { %v306_v25 = vsel %vm238_vm0, %v871_v23, 0.0 }
 0x196   : > { %872 = vpow2.f32 %v293_v24  ;;  %307 = vadd.xlane.f32.xlu2 %v306_v25 }
 0x19c   : > { %v873_v26 = vpop.eup %872 }
 0x19d   : > { %v295_v27 = vsel %vm238_vm0, %v873_v26, 0.0 }
 0x19e   : > { %296 = vadd.xlane.f32.xlu2 %v295_v27 }
 0x1a9   : > { %v378_v46 = vpop.permute.xlu1 %377 }
 0x1aa   : > { %v383_v48 = vsel %vm238_vm0, %v378_v46, 0 }
 0x1b6   : > { %329 = vrot.lane.b32.xlu2 %v1028_v3, %s964_s30 }
 0x1be   : > { %353 = vrot.lane.b32.xlu2 %v1028_v3, %s965_s5 }
 0x1c6   : > { %375 = vrot.lane.b32.xlu2 %v1031_v5, %s963_s29 }
 0x209   : > { %v308_v28 = vpop.xlane.xlu2 %307 }
 0x20a   : > { %874 = vrcp.f32 %v308_v28 }
 0x210   : > { %v875_v30 = vpop.eup %874 }
 0x211   : > { %v297_v29 = vpop.xlane.xlu2 %296  ;;  %v310_v32 = vmul.f32 %v875_v30, %v871_v23  ;;  %v422_v23 = vstv %s809_s9 }
 0x212   : > { %876 = vrcp.f32 %v297_v29 }
 0x213   : > { %v313_v38 = vmul.f32 %v312_v35, %v310_v32 }
 0x218   : > { %v877_v36 = vpop.eup %876 }
 0x219   : > { %v299_v37 = vmul.f32 %v877_v36, %v873_v26  ;;  %v330_v45 = vpop.permute.xlu2 %329 }
 0x21a   : > { %v336_v47 = vsel %vm334_vm2, %v330_v45, 0 }
 0x21b   : > { %v314_v39 = vsub.f32 %v299_v37, %v313_v38  ;;  %345 = vmatpush.bf16.msra.mxu2 %v336_v47 }
 0x21d   : > { %v316_v40 = vsel %vm315_vm1, -inf, %v314_v39 }
 0x21e   : > { %v317_v41 = vsel %vm238_vm0, %v316_v40, -inf }
 0x21f   : > { %318 = vmax.xlane.f32.xlu0 %v317_v41  ;;  %392 = vmatpush.bf16.xpose.msrb.mxu2 %v383_v48 }
 0x221   : > { %v354_v51 = vpop.permute.xlu2 %353 }
 0x222   : > { %v359_v52 = vsel %vm238_vm0, %v354_v51, 0 }
 0x223   : > { %368 = vmatpush.bf16.xpose.msra.mxu3 %v359_v52 }
 0x229   : > { %v376_v58 = vpop.permute.xlu2 %375 }
 0x292   : > { %v319_v42 = vpop.xlane.xlu0 %318 }
 0x293   : > { %v320_v43 = vsub.f32 %v316_v40, %v319_v42 }
 0x295   : > { %v321_v44 = vmul.f32 1.442695, %v320_v43 }
 0x297   : > { %878 = vpow2.f32 %v321_v44 }
 0x29d   : > { %v879_v49 = vpop.eup %878 }
 0x29e   : > { %v323_v50 = vsel %vm238_vm0, %v879_v49, 0.0 }
 0x29f   : > { %324 = vadd.xlane.f32.xlu1 %v323_v50 }
 0x2b8   : > { %351 = vrot.lane.b32.xlu1 %v1031_v5, %s965_s5 }
 0x312   : > { %v325_v53 = vpop.xlane.xlu1 %324 }
 0x313   : > { %880 = vrcp.f32 %v325_v53 }
 0x319   : > { %v881_v54 = vpop.eup %880 }
 0x31a   : > { %v327_v55 = vmul.f32 %v881_v54, %v879_v49 }
 0x31c   : > { %v328_v56 = vpack.c.bf16 %v327_v55, %v327_v55 }
 0x31e   : > { %806 = vmatmul.msk.bf16.vlgmr.msra.gmra.mxu2 %vm238_vm0, %v328_v56 }
 0x32a   : > { %v352_v57 = vpop.permute.xlu1 %351 }
 0x32b   : > { %807 = vmatmul.msk.bf16.vlgmr.msra.gmra.mxu3 %vm238_vm0, %v352_v57 }
 0x32e   : > { %808 = vmatmul.msk.bf16.vlgmr.msrb.gmra.mxu2 %vm238_vm0, %v376_v58 }
 0x3a1   : > { %v1064_v59 = vpop.f32.mrf.mxu2 }
 0x3a9   : > { %v349_v60 = vpop.f32.mrf.mxu2 }
 0x3ae   : > { %v370_v61 = vpop.f32.mrf.mxu3 }
 0x3af   : > { %v374_v62 = vmul.f32 0.35355338, %v370_v61 }
 0x3b1   : > { %v394_v63 = vpop.f32.mrf.mxu2  ;;  %v399_v0 = vsel %vm238_vm0, %v374_v62, -inf }
 0x3b2   : > { %v398_v1 = vmul.f32 0.35355338, %v394_v63  ;;  %400 = vmax.xlane.f32.xlu1 %v399_v0 }
 0x3b4   : > { %v410_v2 = vsel %vm238_vm0, %v398_v1, -inf }
 0x3b5   : > { %411 = vmax.xlane.f32.xlu2 %v410_v2 }
 0x3b6   : > { %v372_v4 = vpop.f32.mrf.mxu3 }
 0x3b9   : > { %v396_v6 = vpop.f32.mrf.mxu2 }
 0x3cb   : > { %459 = vrot.lane.b32.xlu1 %v1031_v5, %s966_s6 }
 0x3cd   : > { %438 = vrot.lane.b32.xlu2 %v1028_v3, %s967_s7 }
 0x3d3   : > { %569 = vrot.lane.b32.xlu1 %v1028_v3, %s969_s10 }
 0x3d5   : > { %483 = vrot.lane.b32.xlu2 %v1031_v5, %s968_s8 }
 0x3dd   : > { %567 = vrot.lane.b32.xlu2 %v1031_v5, %s969_s10 }
 0x425   : > { %v401_v7 = vpop.xlane.xlu1 %400 }
 0x426   : > { %v402_v8 = vsub.f32 %v374_v62, %v401_v7 }
 0x428   : > { %v403_v9 = vmul.f32 1.442695, %v402_v8  ;;  %v412_v12 = vpop.xlane.xlu2 %411 }
 0x429   : > { %v413_v13 = vsub.f32 %v398_v1, %v412_v12 }
 0x42a   : > { %882 = vpow2.f32 %v403_v9 }
 0x42b   : > { %v414_v14 = vmul.f32 1.442695, %v413_v13 }
 0x42d   : > { %884 = vpow2.f32 %v414_v14 }
 0x430   : > { %v883_v10 = vpop.eup %882  ;;  %v439_v32 = vpop.permute.xlu2 %438 }
 0x431   : > { %v405_v11 = vsel %vm238_vm0, %v883_v10, 0.0  ;;  %v444_v39 = vsel %vm334_vm2, %v439_v32, 0 }
 0x432   : > { %406 = vadd.xlane.f32.xlu0 %v405_v11  ;;  %453 = vmatpush.bf16.msrb.mxu0 %v444_v39 }
 0x433   : > { %v885_v15 = vpop.eup %884 }
 0x434   : > { %v416_v16 = vsel %vm238_vm0, %v885_v15, 0.0 }
 0x438   : > { %v484_v35 = vpop.permute.xlu2 %483 }
 0x43d   : > { %v460_v36 = vpop.permute.xlu1 %459 }
 0x440   : > { %v568_v60 = vpop.permute.xlu2 %567 }
 0x445   : > { %v570_v45 = vpop.permute.xlu1 %569 }
 0x446   : > { %461 = vrot.lane.b32.xlu0 %v1028_v3, %s966_s6  ;;  %v575_v47 = vsel %vm238_vm0, %v570_v45, 0 }
 0x447   : > { %584 = vmatpush.bf16.xpose.msra.mxu0 %v575_v47 }
 0x470   : > { %417 = vadd.xlane.f32.xlu0 %v416_v16 }
 0x484   : > { %485 = vrot.lane.b32.xlu0 %v1028_v3, %s968_s8 }
 0x4a5   : > { %v407_v17 = vpop.xlane.xlu0 %406 }
 0x4a6   : > { %886 = vrcp.f32 %v407_v17 }
 0x4ac   : > { %v887_v21 = vpop.eup %886 }
 0x4ad   : > { %v409_v25 = vmul.f32 %v887_v21, %v883_v10 }
 0x4b8   : > { %v462_v18 = vpop.permute.xlu0 %461 }
 0x4b9   : > { %v467_v19 = vsel %vm238_vm0, %v462_v18, 0 }
 0x4ba   : > { %476 = vmatpush.bf16.xpose.msrb.mxu1 %v467_v19 }
 0x4c1   : > { %811 = vmatmul.msk.bf16.vlgmr.msrb.gmra.mxu1 %vm238_vm0, %v460_v36 }
 0x4e3   : > { %v418_v20 = vpop.xlane.xlu0 %417 }
 0x4e4   : > { %888 = vrcp.f32 %v418_v20 }
 0x4ea   : > { %v889_v22 = vpop.eup %888 }
 0x4eb   : > { %v420_v24 = vmul.f32 %v889_v22, %v885_v15 }
 0x4ed   : > { %v423_v26 = vmul.f32 %v422_v23, %v420_v24 }
 0x4ef   : > { %v424_v27 = vsub.f32 %v409_v25, %v423_v26 }
 0x4f1   : > { %v425_v28 = vsel %vm315_vm1, -inf, %v424_v27 }
 0x4f2   : > { %v426_v29 = vsel %vm238_vm0, %v425_v28, -inf }
 0x4f3   : > { %427 = vmax.xlane.f32.xlu0 %v426_v29 }
 0x4f6   : > { %v486_v30 = vpop.permute.xlu0 %485 }
 0x4f7   : > { %v491_v31 = vsel %vm238_vm0, %v486_v30, 0 }
 0x4f8   : > { %500 = vmatpush.bf16.xpose.msrb.mxu3 %v491_v31 }
 0x4ff   : > { %812 = vmatmul.msk.bf16.vlgmr.msrb.gmra.mxu3 %vm238_vm0, %v484_v35  ;;  %v530_v35 = vstv %s813_s12 }
 0x507   : > { %593 = vrot.lane.b32.xlu0 %v1028_v3, %s970_s11 }
 0x53e   : > { %v478_v49 = vpop.f32.mrf.mxu1 }
 0x53f   : > { %v482_v50 = vmul.f32 0.35355338, %v478_v49 }
 0x541   : > { %v507_v52 = vsel %vm238_vm0, %v482_v50, -inf }
 0x542   : > { %508 = vmax.xlane.f32.xlu2 %v507_v52 }
 0x546   : > { %v480_v54 = vpop.f32.mrf.mxu1 }
 0x566   : > { %v428_v37 = vpop.xlane.xlu0 %427 }
 0x567   : > { %v429_v38 = vsub.f32 %v425_v28, %v428_v37 }
 0x569   : > { %v430_v40 = vmul.f32 1.442695, %v429_v38 }
 0x56b   : > { %890 = vpow2.f32 %v430_v40 }
 0x571   : > { %v891_v41 = vpop.eup %890 }
 0x572   : > { %v432_v42 = vsel %vm238_vm0, %v891_v41, 0.0 }
 0x573   : > { %433 = vadd.xlane.f32.xlu0 %v432_v42 }
 0x579   : > { %v594_v43 = vpop.permute.xlu0 %593 }
 0x57a   : > { %v599_v44 = vsel %vm238_vm0, %v594_v43, 0 }
 0x57b   : > { %608 = vmatpush.bf16.xpose.msra.mxu1 %v599_v44 }
 0x582   : > { %v502_v46 = vpop.f32.mrf.mxu3 }
 0x583   : > { %v506_v48 = vmul.f32 0.35355338, %v502_v46  ;;  %v638_v46 = vstv %s817_s15 }
 0x585   : > { %v518_v51 = vsel %vm238_vm0, %v506_v48, -inf }
 0x586   : > { %519 = vmax.xlane.f32.xlu1 %v518_v51 }
 0x587   : > { %591 = vrot.lane.b32.xlu0 %v1031_v5, %s970_s11 }
 0x58a   : > { %v504_v53 = vpop.f32.mrf.mxu3 }
 0x5b5   : > { %v509_v1 = vpop.xlane.xlu2 %508 }
 0x5b6   : > { %v510_v7 = vsub.f32 %v482_v50, %v509_v1 }
 0x5b8   : > { %v511_v9 = vmul.f32 1.442695, %v510_v7 }
 0x5e6   : > { %v434_v55 = vpop.xlane.xlu0 %433 }
 0x5e7   : > { %892 = vrcp.f32 %v434_v55 }
 0x5ed   : > { %v893_v56 = vpop.eup %892 }
 0x5ee   : > { %v436_v5 = vmul.f32 %v893_v56, %v891_v41 }
 0x5f0   : > { %v437_v57 = vpack.c.bf16 %v436_v5, %v436_v5 }
 0x5f2   : > { %810 = vmatmul.msk.bf16.vlgmr.msrb.gmra.mxu0 %vm238_vm0, %v437_v57 }
 0x5f9   : > { %v592_v58 = vpop.permute.xlu0 %591  ;;  %v520_v61 = vpop.xlane.xlu1 %519 }
 0x5fa   : > { %816 = vmatmul.msk.bf16.vlgmr.msra.gmra.mxu1 %vm238_vm0, %v592_v58  ;;  %v521_v63 = vsub.f32 %v506_v48, %v520_v61 }
 0x5fc   : > { %v522_v0 = vmul.f32 1.442695, %v521_v63 }
 0x5fe   : > { %894 = vpow2.f32 %v522_v0 }
 0x5ff   : > { %896 = vpow2.f32 %v511_v9 }
 0x602   : > { %815 = vmatmul.msk.bf16.vlgmr.msra.gmra.mxu0 %vm238_vm0, %v568_v60 }
 0x604   : > { %v895_v10 = vpop.eup %894 }
 0x605   : > { %v524_v14 = vsel %vm238_vm0, %v895_v10, 0.0  ;;  %v897_v16 = vpop.eup %896 }
 0x606   : > { %v513_v18 = vsel %vm238_vm0, %v897_v16, 0.0 }
 0x66f   : > { %v1096_v62 = vpop.f32.mrf.mxu0 }
 0x677   : > { %v457_v2 = vpop.f32.mrf.mxu0  ;;  %v610_v4 = vpop.f32.mrf.mxu1 }
 0x678   : > { %v614_v6 = vmul.f32 0.35355338, %v610_v4 }
 0x67a   : > { %v626_v8 = vsel %vm238_vm0, %v614_v6, -inf }
 0x67b   : > { %627 = vmax.xlane.f32.xlu0 %v626_v8 }
 0x67f   : > { %v586_v11 = vpop.f32.mrf.mxu0  ;;  %v612_v12 = vpop.f32.mrf.mxu1 }
 0x680   : > { %v590_v13 = vmul.f32 0.35355338, %v586_v11 }
 0x682   : > { %v615_v15 = vsel %vm238_vm0, %v590_v13, -inf }
 0x683   : > { %525 = vadd.xlane.f32.xlu0 %v524_v14  ;;  %616 = vmax.xlane.f32.xlu1 %v615_v15 }
 0x687   : > { %v588_v17 = vpop.f32.mrf.mxu0 }
 0x68b   : > { %514 = vadd.xlane.f32.xlu1 %v513_v18 }
 0x6ee   : > { %v628_v19 = vpop.xlane.xlu0 %627 }
 0x6ef   : > { %v629_v20 = vsub.f32 %v614_v6, %v628_v19 }
 0x6f1   : > { %v630_v21 = vmul.f32 1.442695, %v629_v20 }
 0x6f3   : > { %898 = vpow2.f32 %v630_v21 }
 0x6f6   : > { %v526_v22 = vpop.xlane.xlu0 %525  ;;  %v617_v23 = vpop.xlane.xlu1 %616 }
 0x6f7   : > { %v618_v24 = vsub.f32 %v590_v13, %v617_v23  ;;  %900 = vrcp.f32 %v526_v22 }
 0x6f9   : > { %v899_v25 = vpop.eup %898  ;;  %v619_v26 = vmul.f32 1.442695, %v618_v24 }
 0x6fa   : > { %v632_v27 = vsel %vm238_vm0, %v899_v25, 0.0 }
 0x6fb   : > { %902 = vpow2.f32 %v619_v26  ;;  %633 = vadd.xlane.f32.xlu2 %v632_v27 }
 0x6fd   : > { %v901_v29 = vpop.eup %900 }
 0x6fe   : > { %v515_v28 = vpop.xlane.xlu1 %514  ;;  %v528_v32 = vmul.f32 %v901_v29, %v895_v10 }
 0x6ff   : > { %904 = vrcp.f32 %v515_v28 }
 0x700   : > { %v531_v38 = vmul.f32 %v530_v35, %v528_v32 }
 0x701   : > { %v903_v30 = vpop.eup %902 }
 0x702   : > { %v621_v31 = vsel %vm238_vm0, %v903_v30, 0.0 }
 0x703   : > { %622 = vadd.xlane.f32.xlu0 %v621_v31 }
 0x705   : > { %v905_v36 = vpop.eup %904 }
 0x706   : > { %v517_v37 = vmul.f32 %v905_v36, %v897_v16 }
 0x708   : > { %v532_v39 = vsub.f32 %v517_v37, %v531_v38 }
 0x70a   : > { %v533_v40 = vsel %vm315_vm1, -inf, %v532_v39 }
 0x70b   : > { %v534_v41 = vsel %vm238_vm0, %v533_v40, -inf }
 0x70c   : > { %535 = vmax.xlane.f32.xlu2 %v534_v41 }
 0x76e   : > { %v634_v42 = vpop.xlane.xlu2 %633 }
 0x76f   : > { %906 = vrcp.f32 %v634_v42 }
 0x775   : > { %v907_v44 = vpop.eup %906 }
 0x776   : > { %v623_v43 = vpop.xlane.xlu0 %622  ;;  %v636_v45 = vmul.f32 %v907_v44, %v899_v25 }
 0x777   : > { %908 = vrcp.f32 %v623_v43 }
 0x778   : > { %v639_v49 = vmul.f32 %v638_v46, %v636_v45 }
 0x77d   : > { %v909_v47 = vpop.eup %908 }
 0x77e   : > { %v625_v48 = vmul.f32 %v909_v47, %v903_v30 }
 0x77f   : > { %v536_v50 = vpop.xlane.xlu2 %535 }
 0x780   : > { %v537_v51 = vsub.f32 %v533_v40, %v536_v50  ;;  %v640_v52 = vsub.f32 %v625_v48, %v639_v49 }
 0x782   : > { %v538_v53 = vmul.f32 1.442695, %v537_v51  ;;  %v641_v54 = vsel %vm315_vm1, -inf, %v640_v52 }
 0x783   : > { %v642_v55 = vsel %vm238_vm0, %v641_v54, -inf }
 0x784   : > { %910 = vpow2.f32 %v538_v53  ;;  %643 = vmax.xlane.f32.xlu1 %v642_v55 }
 0x78a   : > { %v911_v56 = vpop.eup %910 }
 0x78b   : > { %v540_v5 = vsel %vm238_vm0, %v911_v56, 0.0 }
 0x78c   : > { %541 = vadd.xlane.f32.xlu0 %v540_v5 }
 0x79d   : > { %546 = vrot.lane.b32.xlu1 %v1028_v3, %s971_s17 }
 0x7a0   : > { %654 = vrot.lane.b32.xlu0 %v1028_v3, %s972_s18 }
 0x7f7   : > { %v644_v57 = vpop.xlane.xlu1 %643 }
 0x7f8   : > { %v645_v58 = vsub.f32 %v641_v54, %v644_v57 }
 0x7fa   : > { %v646_v60 = vmul.f32 1.442695, %v645_v58 }
 0x7fc   : > { %912 = vpow2.f32 %v646_v60 }
 0x7ff   : > { %v542_v34 = vpop.xlane.xlu0 %541 }
 0x800   : > { %914 = vrcp.f32 %v542_v34 }
 0x802   : > { %v913_v33 = vpop.eup %912 }
 0x803   : > { %v648_v61 = vsel %vm238_vm0, %v913_v33, 0.0 }
 0x804   : > { %649 = vadd.xlane.f32.xlu2 %v648_v61 }
 0x806   : > { %v915_v63 = vpop.eup %914 }
 0x807   : > { %v544_v0 = vmul.f32 %v915_v63, %v911_v56 }
 0x809   : > { %v545_v4 = vpack.c.bf16 %v544_v0, %v544_v0 }
 0x80f   : > { %v547_v1 = vpop.permute.xlu1 %546 }
 0x810   : > { %v552_v2 = vsel %vm334_vm2, %v547_v1, 0 }
 0x811   : > { %561 = vmatpush.bf16.msra.mxu2 %v552_v2 }
 0x812   : > { %v655_v6 = vpop.permute.xlu0 %654 }
 0x813   : > { %v660_v3 = vsel %vm334_vm2, %v655_v6, 0 }
 0x814   : > { %814 = vmatmul.msk.bf16.vlgmr.msra.gmra.mxu2 %vm238_vm0, %v545_v4  ;;  %669 = vmatpush.bf16.msra.mxu3 %v660_v3 }
 0x81c   : > { %676 = vrot.lane.b32.xlu2 %v1096_v62, %s973_s19 }
 0x877   : > { %v650_v7 = vpop.xlane.xlu2 %649 }
 0x878   : > { %916 = vrcp.f32 %v650_v7 }
 0x87e   : > { %v917_v8 = vpop.eup %916 }
 0x87f   : > { %v652_v9 = vmul.f32 %v917_v8, %v913_v33  ;;  %v677_v15 = vpop.permute.xlu2 %676 }
 0x880   : > { %v687_v62 = vsel %vm238_vm0, %v1064_v59, %v677_v15 }
 0x881   : > { %v653_v10 = vpack.c.bf16 %v652_v9, %v652_v9 }
 0x883   : > { %818 = vmatmul.msk.bf16.vlgmr.msra.gmra.mxu3 %vm238_vm0, %v653_v10 }
 0x897   : > { %v563_v11 = vpop.f32.mrf.mxu2 }
 0x898   : > { %680 = vrot.lane.b32.xlu0 %v563_v11, %s974_s20 }
 0x89f   : > { %v565_v12 = vpop.f32.mrf.mxu2 }
 0x906   : > { %v671_v13 = vpop.f32.mrf.mxu3 }
 0x907   : > { %684 = vrot.lane.b32.xlu1 %v671_v13, %s975_s22 }
 0x90a   : > { %v681_v16 = vpop.permute.xlu0 %680 }
 0x90b   : > { %v689_v17 = vsel %vm688_vm3, %v687_v62, %v681_v16 }
 0x90e   : > { %v673_v14 = vpop.f32.mrf.mxu3 }
 0x979   : > { %v685_v18 = vpop.permute.xlu1 %684 }
 0x97a   : > { %v691_v19 = vsel %vm690_vm4, %v689_v17, %v685_v18 }
 0x97b   : > { %v692_v20 = vpack.c.bf16 %v691_v19, %v691_v19 }
 0x97d   : > { %694 = vst.msk [vmem:[%s227_s25] sm:$0xf] %vm693_vm5, %v692_v20 }
 0x97e PF: > { %s14_s14 = sadd.s32 1, %s959_s14   ;;  %s1140_s12 = smov %s955_s13 }
 0x97f   : > { %p11_p8 = scmp.ge.s32.totalorder %s14_s14, 4   ;;  %s1141_s13 = smov %s1143_s16 }
 0x981   :  { %13 = sbr.rel (!%p11_p8) target bundleno = 2 (0x2), region = 70 }
 0x986   :  { %720 = vsyncpa [#allocation3], 1 }
 0x987   :  { %722 = vsyncpa [#allocation3 + $0x1], 1 }

// kernel: transformer_forward.84
= control target key start
LH: loop header
LB: loop body
LE: loop exit
PB: predicated region body
PF: predicated region fallthrough
CT: control target
= control target key end

     0   :  { %9 = vsyncpa [#allocation3], 0  ;;  %s181_s18 = smov [#allocation2]   ;;  %s182_s20 = smov 64   ;;  %s236_s0 = inlined_call_operand.vmem [shape: bf16[16,32], index: 0, kind: input, shape index: {}]   ;;  %s237_s1 = inlined_call_operand.hbm [shape: bf16[32,32], index: 1, kind: input, shape index: {}]   ;;  %s238_s2 = inlined_call_operand.vmem [shape: f32[1,32], index: 2, kind: input, shape index: {}]   ;;  %s239_s3 = inlined_call_operand.vmem [shape: f32[16,32], index: 3, kind: input, shape index: {}]   ;;  %s240_s4 = inlined_call_operand.vmem [shape: f32[16,32], index: 4, kind: output, shape index: {}]  }
   0x1   :  { %s16_s17 = sshll.u32 %s237_s1, 4  ;;  %s18_s19 = sshll.u32 %s181_s18, 4  ;;  %s17_s17 = int_to_ptr.hbm [resolvable:$true] %s16_s17  ;;  %s19_s19 = int_to_ptr.vmem [resolvable:$true] %s18_s19 }
   0x2   :  { %s183_s21 = smov 4  }
   0x3   :  { %24 = dma.hbm_to_vmem [thread:$0]  %s17_s17, 256, %s19_s19, [#allocation3], %s182_s20, %s182_s20, %s183_s21  }
   0x4   :  { %179 = dma.done.wait [#allocation3], 256  }
   0x5   :  { %180 = vsyncadd [#allocation3], 4294967040  ;;  %v141_v0 = vld [vmem:[%s236_s0] sm:$0xff]   ;;  %vm40_vm0 = vcmask 261120   ;;  %v184_v7 = vmov 32.0   ;;  %v139_v13 = vld [vmem:[#allocation2 + $0x8] sm:$0xff] }
   0x6   :  { %v142_v1 = vunpack.c.l.bf16 %v141_v0  ;;  %v143_v3 = vunpack.c.h.bf16 %v141_v0  ;;  %149 = vrcp.f32 %v184_v7  ;;  %114 = vmatpush.bf16.msra.mxu0 %v139_v13  ;;  %v138_v15 = vld [vmem:[#allocation2] sm:$0xff]  ;;  %v92_v45 = vld [vmem:[%s239_s3 + $0x8] sm:$0xff] }
   0x7   :  { %v148_v36 = vld [vmem:[%s238_s2] ss:$0 sm:$0xff] }
   0x8   :  { %v38_v2 = vmul.f32 %v142_v1, %v142_v1  ;;  %v39_v5 = vmul.f32 %v143_v3, %v143_v3  ;;  %v91_v42 = vld [vmem:[%s239_s3] sm:$0xff] }
   0xa   :  { %v41_v4 = vsel %vm40_vm0, %v38_v2, 0.0  ;;  %v44_v6 = vsel %vm40_vm0, %v39_v5, 0.0  ;;  %115 = vmatpush.bf16.msra.mxu0 %v138_v15 }
   0xb   :  { %42 = vadd.xlane.f32.xlu0 %v41_v4 }
   0xc   :  { %v150_v8 = vpop.eup %149 }
   0xd   :  { %v48_v9 = vmul.f32 32.0, %v150_v8  ;;  %vm52_vm1 = vweird.f32 %v150_v8 }
   0xf   :  { %v49_v10 = vsub.f32 1.0, %v48_v9 }
  0x11   :  { %v50_v11 = vmul.f32 %v150_v8, %v49_v10 }
  0x13   :  { %45 = vadd.xlane.f32.xlu0 %v44_v6  ;;  %v51_v12 = vadd.f32 %v150_v8, %v50_v11 }
  0x15   :  { %v53_v14 = vsel %vm52_vm1, %v150_v8, %v51_v12 }
  0x7e   :  { %v43_v16 = vpop.xlane.xlu0 %42 }
  0x7f   :  { %v54_v17 = vmul.f32 %v53_v14, %v43_v16 }
  0x81   :  { %v56_v18 = vadd.f32 1e-06, %v54_v17 }
  0x83   :  { %151 = vrsqrt.f32 %v56_v18  ;;  %vm64_vm3 = vweird.f32 %v56_v18 }
  0x86   :  { %v46_v19 = vpop.xlane.xlu0 %45 }
  0x87   :  { %v55_v20 = vmul.f32 %v53_v14, %v46_v19 }
  0x89   :  { %v152_v21 = vpop.eup %151  ;;  %v57_v22 = vadd.f32 1e-06, %v55_v20 }
  0x8a   :  { %v59_v23 = vmul.f32 %v152_v21, %v56_v18  ;;  %vm65_vm2 = vweird.f32 %v152_v21 }
  0x8b   :  { %153 = vrsqrt.f32 %v57_v22  ;;  %vm66_vm4 = vmor %vm64_vm3, %vm65_vm2  ;;  %vm74_vm6 = vweird.f32 %v57_v22 }
  0x8c   :  { %v60_v24 = vmul.f32 %v152_v21, %v59_v23 }
  0x8e   :  { %v61_v25 = vmul.f32 0.5, %v60_v24 }
  0x90   :  { %v62_v26 = vsub.f32 1.5, %v61_v25 }
  0x91   :  { %v154_v27 = vpop.eup %153 }
  0x92   :  { %v69_v28 = vmul.f32 %v154_v27, %v57_v22  ;;  %v63_v29 = vmul.f32 %v152_v21, %v62_v26  ;;  %vm75_vm5 = vweird.f32 %v154_v27 }
  0x93   :  { %vm76_vm7 = vmor %vm74_vm6, %vm75_vm5 }
  0x94   :  { %v70_v30 = vmul.f32 %v154_v27, %v69_v28  ;;  %v67_v32 = vsel %vm66_vm4, %v152_v21, %v63_v29 }
  0x95   :  { %v78_v35 = vmul.f32 %v142_v1, %v67_v32 }
  0x96   :  { %v71_v31 = vmul.f32 0.5, %v70_v30 }
  0x97   :  { %v84_v39 = vmul.f32 %v148_v36, %v78_v35 }
  0x98   :  { %v72_v33 = vsub.f32 1.5, %v71_v31 }
  0x9a   :  { %v73_v34 = vmul.f32 %v154_v27, %v72_v33 }
  0x9c   :  { %v77_v37 = vsel %vm76_vm7, %v154_v27, %v73_v34 }
  0x9d   :  { %v79_v38 = vmul.f32 %v143_v3, %v77_v37 }
  0x9f   :  { %v85_v40 = vmul.f32 %v148_v36, %v79_v38 }
  0xa1   :  { %v86_v41 = vpack.c.bf16 %v85_v40, %v84_v39 }
  0xa3   :  { %137 = vmatmul.msk.bf16.vlgmr.msra.gmra.mxu0 %vm40_vm0, %v86_v41 }
 0x120   :  { %v117_v43 = vpop.f32.mrf.mxu0 }
 0x121   :  { %v118_v44 = vadd.f32 %v117_v43, %v91_v42 }
 0x123   :  { %122 = vst.msk [vmem:[%s240_s4] sm:$0xff] %vm40_vm0, %v118_v44 }
 0x128   :  { %v119_v46 = vpop.f32.mrf.mxu0 }
 0x129   :  { %v120_v47 = vadd.f32 %v119_v46, %v92_v45 }
 0x12b   :  { %123 = vst.msk [vmem:[%s240_s4 + $0x8] sm:$0xff] %vm40_vm0, %v120_v47 }
 0x12c   :  { %128 = vsyncpa [#allocation3], 1 }

// kernel: transformer_forward.85
= control target key start
LH: loop header
LB: loop body
LE: loop exit
PB: predicated region body
PF: predicated region fallthrough
CT: control target
= control target key end

     0   :  { %9 = vsyncpa [#allocation3], 0  ;;  %s181_s18 = smov [#allocation2]   ;;  %s182_s20 = smov 64   ;;  %s234_s0 = inlined_call_operand.vmem [shape: f32[16,32], index: 0, kind: input, shape index: {}]   ;;  %s235_s1 = inlined_call_operand.hbm [shape: bf16[32,64], index: 1, kind: input, shape index: {}]   ;;  %s236_s2 = inlined_call_operand.vmem [shape: f32[1,32], index: 2, kind: input, shape index: {}]   ;;  %s237_s3 = inlined_call_operand.vmem [shape: f32[1,64], index: 3, kind: input, shape index: {}]   ;;  %s238_s4 = inlined_call_operand.vmem [shape: bf16[16,64], index: 4, kind: output, shape index: {}]  }
   0x1   :  { %s16_s17 = sshll.u32 %s235_s1, 4  ;;  %s18_s19 = sshll.u32 %s181_s18, 4  ;;  %s17_s17 = int_to_ptr.hbm [resolvable:$true] %s16_s17  ;;  %s19_s19 = int_to_ptr.vmem [resolvable:$true] %s18_s19 }
   0x2   :  { %s183_s21 = smov 4  }
   0x3   :  { %24 = dma.hbm_to_vmem [thread:$0]  %s17_s17, 256, %s19_s19, [#allocation3], %s182_s20, %s182_s20, %s183_s21  }
   0x4   :  { %179 = dma.done.wait [#allocation3], 256  }
   0x5   :  { %180 = vsyncadd [#allocation3], 4294967040  ;;  %v34_v0 = vld [vmem:[%s234_s0] sm:$0xff]  ;;  %vm38_vm0 = vcmask 261120   ;;  %v35_v2 = vld [vmem:[%s234_s0 + $0x8] sm:$0xff]  ;;  %v184_v6 = vmov 32.0  }
   0x6   :  { %v36_v1 = vmul.f32 %v34_v0, %v34_v0  ;;  %v37_v4 = vmul.f32 %v35_v2, %v35_v2  ;;  %149 = vrcp.f32 %v184_v6  ;;  %v142_v12 = vld [vmem:[#allocation2 + $0x8] sm:$0xff]  ;;  %v141_v14 = vld [vmem:[#allocation2] sm:$0xff]  ;;  %vm124_vm8 = vcmask 519168  }
   0x7   :  { %114 = vmatpush.bf16.msra.mxu0 %v142_v12  ;;  %v147_v35 = vld [vmem:[%s236_s2] ss:$0 sm:$0xff] }
   0x8   :  { %v39_v3 = vsel %vm38_vm0, %v36_v1, 0.0  ;;  %v42_v5 = vsel %vm38_vm0, %v37_v4, 0.0  ;;  %v148_v41 = vld [vmem:[%s237_s3] ss:$0 sm:$0xff] }
   0x9   :  { %40 = vadd.xlane.f32.xlu0 %v39_v3 }
   0xb   :  { %115 = vmatpush.bf16.msra.mxu0 %v141_v14 }
   0xc   :  { %v150_v7 = vpop.eup %149 }
   0xd   :  { %v46_v8 = vmul.f32 32.0, %v150_v7  ;;  %vm50_vm1 = vweird.f32 %v150_v7 }
   0xf   :  { %v47_v9 = vsub.f32 1.0, %v46_v8 }
  0x11   :  { %43 = vadd.xlane.f32.xlu0 %v42_v5  ;;  %v48_v10 = vmul.f32 %v150_v7, %v47_v9 }
  0x13   :  { %v49_v11 = vadd.f32 %v150_v7, %v48_v10 }
  0x15   :  { %v51_v13 = vsel %vm50_vm1, %v150_v7, %v49_v11 }
  0x7c   :  { %v41_v15 = vpop.xlane.xlu0 %40 }
  0x7d   :  { %v52_v16 = vmul.f32 %v51_v13, %v41_v15 }
  0x7f   :  { %v54_v17 = vadd.f32 1e-06, %v52_v16 }
  0x81   :  { %151 = vrsqrt.f32 %v54_v17  ;;  %vm62_vm3 = vweird.f32 %v54_v17 }
  0x84   :  { %v44_v18 = vpop.xlane.xlu0 %43 }
  0x85   :  { %v53_v19 = vmul.f32 %v51_v13, %v44_v18 }
  0x87   :  { %v152_v20 = vpop.eup %151  ;;  %v55_v21 = vadd.f32 1e-06, %v53_v19 }
  0x88   :  { %v57_v22 = vmul.f32 %v152_v20, %v54_v17  ;;  %vm63_vm2 = vweird.f32 %v152_v20 }
  0x89   :  { %153 = vrsqrt.f32 %v55_v21  ;;  %vm64_vm4 = vmor %vm62_vm3, %vm63_vm2  ;;  %vm72_vm6 = vweird.f32 %v55_v21 }
  0x8a   :  { %v58_v23 = vmul.f32 %v152_v20, %v57_v22 }
  0x8c   :  { %v59_v24 = vmul.f32 0.5, %v58_v23 }
  0x8e   :  { %v60_v25 = vsub.f32 1.5, %v59_v24 }
  0x8f   :  { %v154_v26 = vpop.eup %153 }
  0x90   :  { %v67_v27 = vmul.f32 %v154_v26, %v55_v21  ;;  %v61_v28 = vmul.f32 %v152_v20, %v60_v25  ;;  %vm73_vm5 = vweird.f32 %v154_v26 }
  0x91   :  { %vm74_vm7 = vmor %vm72_vm6, %vm73_vm5 }
  0x92   :  { %v68_v29 = vmul.f32 %v154_v26, %v67_v27  ;;  %v65_v31 = vsel %vm64_vm4, %v152_v20, %v61_v28 }
  0x93   :  { %v76_v34 = vmul.f32 %v65_v31, %v34_v0 }
  0x94   :  { %v69_v30 = vmul.f32 0.5, %v68_v29 }
  0x95   :  { %v82_v38 = vmul.f32 %v147_v35, %v76_v34 }
  0x96   :  { %v70_v32 = vsub.f32 1.5, %v69_v30 }
  0x98   :  { %v71_v33 = vmul.f32 %v154_v26, %v70_v32 }
  0x9a   :  { %v75_v36 = vsel %vm74_vm7, %v154_v26, %v71_v33 }
  0x9b   :  { %v77_v37 = vmul.f32 %v75_v36, %v35_v2 }
  0x9d   :  { %v83_v39 = vmul.f32 %v147_v35, %v77_v37 }
  0x9f   :  { %v84_v40 = vpack.c.bf16 %v83_v39, %v82_v38 }
  0xa1   :  { %140 = vmatmul.msk.bf16.vlgmr.msra.gmra.mxu0 %vm38_vm0, %v84_v40 }
 0x11e   :  { %v117_v42 = vpop.f32.mrf.mxu0 }
 0x11f   :  { %v118_v43 = vadd.f32 %v148_v41, %v117_v42 }
 0x121   :  { %v122_v44 = vpack.c.bf16 %v118_v43, %v118_v43 }
 0x123   :  { %125 = vst.msk [vmem:[%s238_s4] sm:$0xf] %vm124_vm8, %v122_v44 }
 0x126   :  { %v119_v45 = vpop.f32.mrf.mxu0 }
 0x127   :  { %v120_v46 = vadd.f32 %v148_v41, %v119_v45 }
 0x129   :  { %v123_v47 = vpack.c.bf16 %v120_v46, %v120_v46 }
 0x12b   :  { %126 = vst.msk [vmem:[%s238_s4 + $0x4] sm:$0xf] %vm124_vm8, %v123_v47 }
 0x12c   :  { %131 = vsyncpa [#allocation3], 1 }

// kernel: transformer_forward.89
= control target key start
LH: loop header
LB: loop body
LE: loop exit
PB: predicated region body
PF: predicated region fallthrough
CT: control target
= control target key end

     0   :  { %s160_s0 = inlined_call_operand.vmem [shape: f32[16,32], index: 0, kind: input, shape index: {}]   ;;  %s161_s1 = inlined_call_operand.vmem [shape: bf16[32,64], index: 1, kind: input, shape index: {}]   ;;  %s162_s2 = inlined_call_operand.vmem [shape: f32[1,64], index: 2, kind: input, shape index: {}]   ;;  %s163_s3 = inlined_call_operand.hbm [shape: f32[16,64], index: 3, kind: output, shape index: {}]  }
   0x1   :  { %v88_v0 = vld [vmem:[%s161_s1 + $0x8] sm:$0xff]  ;;  %v87_v1 = vld [vmem:[%s161_s1] sm:$0xff] }
   0x2   :  { %49 = vmatpush.bf16.msra.mxu0 %v88_v0  ;;  %v16_v2 = vld [vmem:[%s160_s0] sm:$0xff]  ;;  %v17_v3 = vld [vmem:[%s160_s0 + $0x8] sm:$0xff] }
   0x3   :  { %8 = vsyncpa [#allocation3], 0  ;;  %v18_v4 = vpack.c.bf16 %v17_v3, %v16_v2  ;;  %vm39_vm0 = vcmask 261120   ;;  %v92_v5 = vld [vmem:[%s162_s2] ss:$0 sm:$0xff]  ;;  %vm57_vm1 = vcmask 523264  }
   0x4   :  { %s119_s1 = smov [#allocation2]   ;;  %s66_s25 = sshll.u32 %s163_s3, 4  ;;  %s67_s25 = int_to_ptr.hbm [resolvable:$true] %s66_s25 }
   0x5   :  { %s64_s22 = sshll.u32 %s119_s1, 4  ;;  %s120_s0 = smov 128   ;;  %s65_s22 = int_to_ptr.vmem [resolvable:$true] %s64_s22 }
   0x6   :  { %50 = vmatpush.bf16.msra.mxu0 %v87_v1  ;;  %s121_s26 = smov 8  }
   0x9   :  { %86 = vmatmul.msk.bf16.vlgmr.msra.gmra.mxu0 %vm39_vm0, %v18_v4 }
  0x86   :  { %v52_v6 = vpop.f32.mrf.mxu0 }
  0x87   :  { %v53_v7 = vadd.f32 %v92_v5, %v52_v6 }
  0x89   :  { %58 = vst.msk [vmem:[#allocation2] sm:$0xff] %vm57_vm1, %v53_v7 }
  0x8e   :  { %v54_v8 = vpop.f32.mrf.mxu0 }
  0x8f   :  { %v55_v9 = vadd.f32 %v92_v5, %v54_v8 }
  0x91   :  { %59 = vst.msk [vmem:[#allocation2 + $0x8] sm:$0xff] %vm57_vm1, %v55_v9 }
  0x92   :  { %72 = dma.vmem_to_hbm [thread:$0]  %s65_s22, 256, %s67_s25, [#allocation3], %s120_s0, %s120_s0, %s121_s26  }
  0x93   :  { %117 = dma.done.wait [#allocation3], 256  }
  0x94   :  { %118 = vsyncadd [#allocation3], 4294967040 }
  0x95   :  { %77 = vsyncpa [#allocation3], 1 }

</bundles_post_ra>
